<compile_context>
chip_gen: v7x
topology: tpu7x:2x2x1
jax: 0.10.0
libtpu: 0.0.40
codegen_flags: <defaults>
</compile_context>

<pallas_src>
import math

import jax
import jax.numpy as jnp
import numpy as np
from jax.experimental import pallas as pl
from jax.experimental.pallas import tpu as pltpu

VMEM = pltpu.MemorySpace.VMEM


# ----------------------------- fused kernel --------------------------------

def _caml_kernel(ids_ref, emb_ref, conv_w_ref, conv_b_ref, u_w_ref,
                 final_w_ref, final_b_ref, target_ref, yhat_ref, loss_ref):
    L, B = ids_ref.shape          # (seq_len, batch)
    V, E = emb_ref.shape          # (vocab, text_embed_dim)
    K = conv_w_ref.shape[0]       # kernel_size
    NL, NF = u_w_ref.shape        # (num_labels, num_kernels)
    pad = K // 2

    # Hoisted constants (built once, reused for every batch element).
    vocab_iota = jax.lax.broadcasted_iota(jnp.int32, (L, V), 1)
    row = jax.lax.broadcasted_iota(jnp.int32, (L, L), 0)
    col = jax.lax.broadcasted_iota(jnp.int32, (L, L), 1)

    emb = emb_ref[...]            # (V, E)
    conv_b = conv_b_ref[...]      # (1, NF)
    u_w = u_w_ref[...]            # (NL, NF)
    final_w = final_w_ref[...]    # (NL, NF)
    final_b = final_b_ref[...]    # (NL, 1)

    for b in range(B):            # B == 2: static unroll inside one kernel call
        # -- embedding lookup as one-hot matmul (MXU) -----------------------
        ids_col = ids_ref[:, pl.ds(b, 1)]                          # (L, 1) int32
        onehot = (ids_col == vocab_iota).astype(jnp.float32)       # (L, V)
        x = jnp.dot(onehot, emb, preferred_element_type=jnp.float32)  # (L, E)
        # TODO(synk): nn.Dropout(p=0.2) on the embedding omitted (eval mode).

        # -- Conv1d as K shifted matmuls ------------------------------------
        y = conv_b                                                  # (1, NF) -> broadcast
        for k in range(K):
            s = k - pad
            shift = (col == (row + s)).astype(jnp.float32)          # (L, L): picks x[t+s]
            xs = jnp.dot(shift, x, preferred_element_type=jnp.float32)        # (L, E)
            y = y + jnp.dot(xs, conv_w_ref[k],
                            preferred_element_type=jnp.float32)               # (L, NF)
        feats = jnp.maximum(y, 0.0)                                 # relu -> (L, NF)

        # -- label-wise attention -------------------------------------------
        logits = jax.lax.dot_general(                               # (NL, L) = U @ feats^T
            u_w, feats, (((1,), (1,)), ((), ())),
            preferred_element_type=jnp.float32)
        m = jnp.max(logits, axis=-1, keepdims=True)
        e = jnp.exp(logits - m)
        alpha = e / jnp.sum(e, axis=-1, keepdims=True)              # softmax over L
        attn = jnp.dot(alpha, feats, preferred_element_type=jnp.float32)  # (NL, NF)

        # -- per-label score --------------------------------------------------
        yhat_b = jnp.sum(final_w * attn, axis=-1, keepdims=True) + final_b   # (NL, 1)
        yhat_ref[:, pl.ds(b, 1)] = yhat_b.astype(yhat_ref.dtype)

    # -- BCE-with-logits loss (mean reduction), lmbda == 0 path --------------
    yh = yhat_ref[...]                                              # (NL, B)
    tg = target_ref[...]                                            # (NL, B)
    bce = jnp.maximum(yh, 0.0) - yh * tg + jnp.log(1.0 + jnp.exp(-jnp.abs(yh)))
    total = jnp.sum(jnp.sum(bce, axis=1, keepdims=True), axis=0, keepdims=True)
    loss_ref[...] = total / float(NL * B)


def caml_forward(params, ids, target):
    """Fused Pallas CAML forward. Returns (yhat (B, NL), scalar loss)."""
    B, L = ids.shape
    NF = params["conv_w"].shape[0]
    NL = params["u_w"].shape[0]

    # Trace-time layout plumbing (hoisted out of the kernel):
    ids_t = ids.astype(jnp.int32).T                                 # (L, B)
    conv_w_kef = jnp.transpose(params["conv_w"], (2, 1, 0))         # (K, E, NF)
    conv_b = params["conv_b"].reshape(1, NF)
    final_b = params["final_b"].reshape(NL, 1)
    target_t = target.astype(jnp.float32).T                         # (NL, B)

    yhat_t, loss = pl.pallas_call(
        _caml_kernel,
        out_shape=(jax.ShapeDtypeStruct((NL, B), jnp.float32),
                   jax.ShapeDtypeStruct((1, 1), jnp.float32)),
        in_specs=[pl.BlockSpec(memory_space=VMEM)] * 8,
        out_specs=(pl.BlockSpec(memory_space=VMEM),
                   pl.BlockSpec(memory_space=VMEM)),
    )(ids_t, params["emb"], conv_w_kef, conv_b, params["u_w"],
      params["final_w"], final_b, target_t)
    return yhat_t.T, loss[0, 0]


# ----------------------------- pure-JAX reference --------------------------

def reference_forward(params, ids, target):
    K = params["conv_w"].shape[2]
    emb = params["emb"][ids]                                        # (B, L, E)
    x = jnp.transpose(emb, (0, 2, 1))                               # (B, E, L)
    conv = jax.lax.conv_general_dilated(
        x, params["conv_w"], window_strides=(1,),
        padding=[(K // 2, K // 2)], dimension_numbers=("NCH", "OIH", "NCH"))
    feats = jnp.maximum(conv + params["conv_b"][None, :, None], 0.0)  # (B, NF, L)
    feats = jnp.transpose(feats, (0, 2, 1))                         # (B, L, NF)
    logits = jnp.einsum("nf,blf->bnl", params["u_w"], feats)
    alpha = jax.nn.softmax(logits, axis=2)
    attn = jnp.einsum("bnl,blf->bnf", alpha, feats)
    yhat = jnp.sum(params["final_w"][None] * attn, axis=-1) + params["final_b"][None]
    t = target.astype(jnp.float32)
    bce = jnp.maximum(yhat, 0.0) - yhat * t + jnp.log1p(jnp.exp(-jnp.abs(yhat)))
    return yhat, jnp.mean(bce)


# ----------------------------------------------------------------------------

def _bf16_exact(x):
    # Snap test weights to the bf16 grid so default-precision MXU matmuls are
    # exact and the kernel can be compared tightly against the XLA reference.
    return x.astype(jnp.bfloat16).astype(jnp.float32)


if __name__ == "__main__":
    B, L = 2, 128          # batch, sequence length
    V, E = 512, 64         # vocab size, text_embed_dim
    NF, K = 128, 3         # num_kernels, kernel_size
    NL = 32                # number of labels

    key = jax.random.PRNGKey(0)
    key, k_ids, k_emb, k_cw, k_cb, k_uw, k_fw, k_fb, k_tg = jax.random.split(key, 9)

    def xavier(k, shape, fan_in, fan_out):
        lim = math.sqrt(6.0 / (fan_in + fan_out))
        return jax.random.uniform(k, shape, jnp.float32, -lim, lim)

    params = {
        "emb": _bf16_exact(0.1 * jax.random.normal(k_emb, (V, E), jnp.float32)),
        "conv_w": _bf16_exact(xavier(k_cw, (NF, E, K), E * K, NF * K)),  # PyTorch (out,in,k)
        "conv_b": _bf16_exact(0.1 * jax.random.normal(k_cb, (NF,), jnp.float32)),
        "u_w": _bf16_exact(xavier(k_uw, (NL, NF), NF, NL)),              # U.weight
        "final_w": _bf16_exact(xavier(k_fw, (NL, NF), NF, NL)),          # final.weight
        "final_b": _bf16_exact(0.1 * jax.random.normal(k_fb, (NL,), jnp.float32)),
    }

    ids = jax.random.randint(k_ids, (B, L), 0, V, jnp.int32)
    target = jax.random.bernoulli(k_tg, 0.3, (B, NL)).astype(jnp.float32)

    yhat, loss = caml_forward(params, ids, target)
    yhat, loss = jax.block_until_ready((yhat, loss))

    yhat_ref, loss_ref = reference_forward(params, ids, target)
    assert yhat.shape == (B, NL)
    np.testing.assert_allclose(np.asarray(yhat), np.asarray(yhat_ref),
                               rtol=1e-3, atol=1e-3)
    np.testing.assert_allclose(float(loss), float(loss_ref), rtol=1e-3, atol=1e-3)

    print("KERNEL_OK")
</pallas_src>

<mosaic_0001>
module attributes {stable_mosaic.version = 11 : i64} {
  func.func @_caml_kernel(%arg0: memref<128x2xi32, #tpu.memory_space<vmem>>, %arg1: memref<512x64xf32, #tpu.memory_space<vmem>>, %arg2: memref<3x64x128xf32, #tpu.memory_space<vmem>>, %arg3: memref<1x128xf32, #tpu.memory_space<vmem>>, %arg4: memref<32x128xf32, #tpu.memory_space<vmem>>, %arg5: memref<32x128xf32, #tpu.memory_space<vmem>>, %arg6: memref<32x1xf32, #tpu.memory_space<vmem>>, %arg7: memref<32x2xf32, #tpu.memory_space<vmem>>, %arg8: memref<32x2xf32, #tpu.memory_space<vmem>>, %arg9: memref<1x1xf32, #tpu.memory_space<vmem>>) attributes {dimension_semantics = [], scalar_prefetch = 0 : i64, scratch_operands = 0 : i64, tpu.core_type = #tpu.core_type<tc>} {
    %0 = tpu.iota {dimensions = array<i32: 1>} : vector<128x512xi32>
    %1 = tpu.iota {dimensions = array<i32: 0>} : vector<128x128xi32>
    %2 = tpu.iota {dimensions = array<i32: 1>} : vector<128x128xi32>
    %c0 = arith.constant 0 : index
    %c0_0 = arith.constant 0 : index
    %3 = vector.load %arg1[%c0, %c0_0] : memref<512x64xf32, #tpu.memory_space<vmem>>, vector<512x64xf32>
    %c0_1 = arith.constant 0 : index
    %c0_2 = arith.constant 0 : index
    %4 = vector.load %arg3[%c0_1, %c0_2] : memref<1x128xf32, #tpu.memory_space<vmem>>, vector<1x128xf32>
    %c0_3 = arith.constant 0 : index
    %c0_4 = arith.constant 0 : index
    %5 = vector.load %arg4[%c0_3, %c0_4] : memref<32x128xf32, #tpu.memory_space<vmem>>, vector<32x128xf32>
    %c0_5 = arith.constant 0 : index
    %c0_6 = arith.constant 0 : index
    %6 = vector.load %arg5[%c0_5, %c0_6] : memref<32x128xf32, #tpu.memory_space<vmem>>, vector<32x128xf32>
    %c0_7 = arith.constant 0 : index
    %c0_8 = arith.constant 0 : index
    %7 = vector.load %arg6[%c0_7, %c0_8] : memref<32x1xf32, #tpu.memory_space<vmem>>, vector<32x1xf32>
    %c0_9 = arith.constant 0 : index
    %c0_10 = arith.constant 0 : index
    %8 = vector.load %arg0[%c0_9, %c0_10] : memref<128x2xi32, #tpu.memory_space<vmem>>, vector<128x1xi32>
    %9 = vector.broadcast %8 : vector<128x1xi32> to vector<128x512xi32>
    %10 = arith.cmpi eq, %9, %0 : vector<128x512xi32>
    %11 = arith.extui %10 : vector<128x512xi1> to vector<128x512xi32>
    %12 = arith.sitofp %11 : vector<128x512xi32> to vector<128x512xf32>
    %cst = arith.constant dense<0.000000e+00> : vector<128x64xf32>
    %13 = tpu.matmul %12, %3, %cst {dimension_numbers = #tpu.dot_dimension_numbers<[1], [0], [0], [1], [0, 0, 1, 1], [], []>} : vector<128x512xf32>, vector<512x64xf32>, vector<128x64xf32> -> vector<128x64xf32>
    %c-1_i32 = arith.constant -1 : i32
    %14 = vector.broadcast %c-1_i32 : i32 to vector<128x128xi32>
    %15 = arith.addi %1, %14 : vector<128x128xi32>
    %16 = arith.cmpi eq, %2, %15 : vector<128x128xi32>
    %17 = arith.extui %16 : vector<128x128xi1> to vector<128x128xi32>
    %18 = arith.sitofp %17 : vector<128x128xi32> to vector<128x128xf32>
    %cst_11 = arith.constant dense<0.000000e+00> : vector<128x64xf32>
    %19 = tpu.matmul %18, %13, %cst_11 {dimension_numbers = #tpu.dot_dimension_numbers<[1], [0], [0], [1], [0, 0, 1, 1], [], []>} : vector<128x128xf32>, vector<128x64xf32>, vector<128x64xf32> -> vector<128x64xf32>
    %c0_12 = arith.constant 0 : index
    %c0_13 = arith.constant 0 : index
    %c0_14 = arith.constant 0 : index
    %20 = vector.load %arg2[%c0_12, %c0_13, %c0_14] : memref<3x64x128xf32, #tpu.memory_space<vmem>>, vector<1x64x128xf32>
    %21 = vector.shape_cast %20 : vector<1x64x128xf32> to vector<64x128xf32>
    %cst_15 = arith.constant dense<0.000000e+00> : vector<128x128xf32>
    %22 = tpu.matmul %19, %21, %cst_15 {dimension_numbers = #tpu.dot_dimension_numbers<[1], [0], [0], [1], [0, 0, 1, 1], [], []>} : vector<128x64xf32>, vector<64x128xf32>, vector<128x128xf32> -> vector<128x128xf32>
    %23 = vector.broadcast %4 : vector<1x128xf32> to vector<128x128xf32>
    %24 = arith.addf %23, %22 : vector<128x128xf32>
    %c0_i32 = arith.constant 0 : i32
    %25 = vector.broadcast %c0_i32 : i32 to vector<128x128xi32>
    %26 = arith.addi %1, %25 : vector<128x128xi32>
    %27 = arith.cmpi eq, %2, %26 : vector<128x128xi32>
    %28 = arith.extui %27 : vector<128x128xi1> to vector<128x128xi32>
    %29 = arith.sitofp %28 : vector<128x128xi32> to vector<128x128xf32>
    %cst_16 = arith.constant dense<0.000000e+00> : vector<128x64xf32>
    %30 = tpu.matmul %29, %13, %cst_16 {dimension_numbers = #tpu.dot_dimension_numbers<[1], [0], [0], [1], [0, 0, 1, 1], [], []>} : vector<128x128xf32>, vector<128x64xf32>, vector<128x64xf32> -> vector<128x64xf32>
    %c1 = arith.constant 1 : index
    %c0_17 = arith.constant 0 : index
    %c0_18 = arith.constant 0 : index
    %31 = vector.load %arg2[%c1, %c0_17, %c0_18] : memref<3x64x128xf32, #tpu.memory_space<vmem>>, vector<1x64x128xf32>
    %32 = vector.shape_cast %31 : vector<1x64x128xf32> to vector<64x128xf32>
    %cst_19 = arith.constant dense<0.000000e+00> : vector<128x128xf32>
    %33 = tpu.matmul %30, %32, %cst_19 {dimension_numbers = #tpu.dot_dimension_numbers<[1], [0], [0], [1], [0, 0, 1, 1], [], []>} : vector<128x64xf32>, vector<64x128xf32>, vector<128x128xf32> -> vector<128x128xf32>
    %34 = arith.addf %24, %33 : vector<128x128xf32>
    %c1_i32 = arith.constant 1 : i32
    %35 = vector.broadcast %c1_i32 : i32 to vector<128x128xi32>
    %36 = arith.addi %1, %35 : vector<128x128xi32>
    %37 = arith.cmpi eq, %2, %36 : vector<128x128xi32>
    %38 = arith.extui %37 : vector<128x128xi1> to vector<128x128xi32>
    %39 = arith.sitofp %38 : vector<128x128xi32> to vector<128x128xf32>
    %cst_20 = arith.constant dense<0.000000e+00> : vector<128x64xf32>
    %40 = tpu.matmul %39, %13, %cst_20 {dimension_numbers = #tpu.dot_dimension_numbers<[1], [0], [0], [1], [0, 0, 1, 1], [], []>} : vector<128x128xf32>, vector<128x64xf32>, vector<128x64xf32> -> vector<128x64xf32>
    %c2 = arith.constant 2 : index
    %c0_21 = arith.constant 0 : index
    %c0_22 = arith.constant 0 : index
    %41 = vector.load %arg2[%c2, %c0_21, %c0_22] : memref<3x64x128xf32, #tpu.memory_space<vmem>>, vector<1x64x128xf32>
    %42 = vector.shape_cast %41 : vector<1x64x128xf32> to vector<64x128xf32>
    %cst_23 = arith.constant dense<0.000000e+00> : vector<128x128xf32>
    %43 = tpu.matmul %40, %42, %cst_23 {dimension_numbers = #tpu.dot_dimension_numbers<[1], [0], [0], [1], [0, 0, 1, 1], [], []>} : vector<128x64xf32>, vector<64x128xf32>, vector<128x128xf32> -> vector<128x128xf32>
    %44 = arith.addf %34, %43 : vector<128x128xf32>
    %cst_24 = arith.constant 0.000000e+00 : f32
    %45 = vector.broadcast %cst_24 : f32 to vector<128x128xf32>
    %46 = arith.maximumf %44, %45 : vector<128x128xf32>
    %cst_25 = arith.constant dense<0.000000e+00> : vector<32x128xf32>
    %47 = tpu.matmul %5, %46, %cst_25 {dimension_numbers = #tpu.dot_dimension_numbers<[1], [1], [0], [0], [0, 0, 1, 0], [], []>} : vector<32x128xf32>, vector<128x128xf32>, vector<32x128xf32> -> vector<32x128xf32>
    %cst_26 = arith.constant dense<0xFF800000> : vector<32xf32>
    %48 = vector.multi_reduction <maximumf>, %47, %cst_26 [1] : vector<32x128xf32> to vector<32xf32>
    %49 = vector.shape_cast %48 : vector<32xf32> to vector<32x1xf32>
    %50 = vector.broadcast %49 : vector<32x1xf32> to vector<32x128xf32>
    %51 = arith.subf %47, %50 : vector<32x128xf32>
    %52 = math.exp %51 : vector<32x128xf32>
    %cst_27 = arith.constant dense<0.000000e+00> : vector<32xf32>
    %53 = vector.multi_reduction <add>, %52, %cst_27 [1] : vector<32x128xf32> to vector<32xf32>
    %54 = vector.shape_cast %53 : vector<32xf32> to vector<32x1xf32>
    %55 = vector.broadcast %54 : vector<32x1xf32> to vector<32x128xf32>
    %56 = arith.divf %52, %55 : vector<32x128xf32>
    %cst_28 = arith.constant dense<0.000000e+00> : vector<32x128xf32>
    %57 = tpu.matmul %56, %46, %cst_28 {dimension_numbers = #tpu.dot_dimension_numbers<[1], [0], [0], [1], [0, 0, 1, 1], [], []>} : vector<32x128xf32>, vector<128x128xf32>, vector<32x128xf32> -> vector<32x128xf32>
    %58 = arith.mulf %6, %57 : vector<32x128xf32>
    %cst_29 = arith.constant dense<0.000000e+00> : vector<32xf32>
    %59 = vector.multi_reduction <add>, %58, %cst_29 [1] : vector<32x128xf32> to vector<32xf32>
    %60 = vector.shape_cast %59 : vector<32xf32> to vector<32x1xf32>
    %61 = arith.addf %60, %7 : vector<32x1xf32>
    %c0_30 = arith.constant 0 : index
    %c0_31 = arith.constant 0 : index
    %62 = vector.load %arg8[%c0_30, %c0_31] : memref<32x2xf32, #tpu.memory_space<vmem>>, vector<32x1xf32>
    tpu.vector_store %arg8[%c0_30, %c0_31], %61 {strides = array<i32>} : memref<32x2xf32, #tpu.memory_space<vmem>>, vector<32x1xf32>,
    %c0_32 = arith.constant 0 : index
    %c1_33 = arith.constant 1 : index
    %63 = vector.load %arg0[%c0_32, %c1_33] : memref<128x2xi32, #tpu.memory_space<vmem>>, vector<128x1xi32>
    %64 = vector.broadcast %63 : vector<128x1xi32> to vector<128x512xi32>
    %65 = arith.cmpi eq, %64, %0 : vector<128x512xi32>
    %66 = arith.extui %65 : vector<128x512xi1> to vector<128x512xi32>
    %67 = arith.sitofp %66 : vector<128x512xi32> to vector<128x512xf32>
    %cst_34 = arith.constant dense<0.000000e+00> : vector<128x64xf32>
    %68 = tpu.matmul %67, %3, %cst_34 {dimension_numbers = #tpu.dot_dimension_numbers<[1], [0], [0], [1], [0, 0, 1, 1], [], []>} : vector<128x512xf32>, vector<512x64xf32>, vector<128x64xf32> -> vector<128x64xf32>
    %c-1_i32_35 = arith.constant -1 : i32
    %69 = vector.broadcast %c-1_i32_35 : i32 to vector<128x128xi32>
    %70 = arith.addi %1, %69 : vector<128x128xi32>
    %71 = arith.cmpi eq, %2, %70 : vector<128x128xi32>
    %72 = arith.extui %71 : vector<128x128xi1> to vector<128x128xi32>
    %73 = arith.sitofp %72 : vector<128x128xi32> to vector<128x128xf32>
    %cst_36 = arith.constant dense<0.000000e+00> : vector<128x64xf32>
    %74 = tpu.matmul %73, %68, %cst_36 {dimension_numbers = #tpu.dot_dimension_numbers<[1], [0], [0], [1], [0, 0, 1, 1], [], []>} : vector<128x128xf32>, vector<128x64xf32>, vector<128x64xf32> -> vector<128x64xf32>
    %c0_37 = arith.constant 0 : index
    %c0_38 = arith.constant 0 : index
    %c0_39 = arith.constant 0 : index
    %75 = vector.load %arg2[%c0_37, %c0_38, %c0_39] : memref<3x64x128xf32, #tpu.memory_space<vmem>>, vector<1x64x128xf32>
    %76 = vector.shape_cast %75 : vector<1x64x128xf32> to vector<64x128xf32>
    %cst_40 = arith.constant dense<0.000000e+00> : vector<128x128xf32>
    %77 = tpu.matmul %74, %76, %cst_40 {dimension_numbers = #tpu.dot_dimension_numbers<[1], [0], [0], [1], [0, 0, 1, 1], [], []>} : vector<128x64xf32>, vector<64x128xf32>, vector<128x128xf32> -> vector<128x128xf32>
    %78 = vector.broadcast %4 : vector<1x128xf32> to vector<128x128xf32>
    %79 = arith.addf %78, %77 : vector<128x128xf32>
    %c0_i32_41 = arith.constant 0 : i32
    %80 = vector.broadcast %c0_i32_41 : i32 to vector<128x128xi32>
    %81 = arith.addi %1, %80 : vector<128x128xi32>
    %82 = arith.cmpi eq, %2, %81 : vector<128x128xi32>
    %83 = arith.extui %82 : vector<128x128xi1> to vector<128x128xi32>
    %84 = arith.sitofp %83 : vector<128x128xi32> to vector<128x128xf32>
    %cst_42 = arith.constant dense<0.000000e+00> : vector<128x64xf32>
    %85 = tpu.matmul %84, %68, %cst_42 {dimension_numbers = #tpu.dot_dimension_numbers<[1], [0], [0], [1], [0, 0, 1, 1], [], []>} : vector<128x128xf32>, vector<128x64xf32>, vector<128x64xf32> -> vector<128x64xf32>
    %c1_43 = arith.constant 1 : index
    %c0_44 = arith.constant 0 : index
    %c0_45 = arith.constant 0 : index
    %86 = vector.load %arg2[%c1_43, %c0_44, %c0_45] : memref<3x64x128xf32, #tpu.memory_space<vmem>>, vector<1x64x128xf32>
    %87 = vector.shape_cast %86 : vector<1x64x128xf32> to vector<64x128xf32>
    %cst_46 = arith.constant dense<0.000000e+00> : vector<128x128xf32>
    %88 = tpu.matmul %85, %87, %cst_46 {dimension_numbers = #tpu.dot_dimension_numbers<[1], [0], [0], [1], [0, 0, 1, 1], [], []>} : vector<128x64xf32>, vector<64x128xf32>, vector<128x128xf32> -> vector<128x128xf32>
    %89 = arith.addf %79, %88 : vector<128x128xf32>
    %c1_i32_47 = arith.constant 1 : i32
    %90 = vector.broadcast %c1_i32_47 : i32 to vector<128x128xi32>
    %91 = arith.addi %1, %90 : vector<128x128xi32>
    %92 = arith.cmpi eq, %2, %91 : vector<128x128xi32>
    %93 = arith.extui %92 : vector<128x128xi1> to vector<128x128xi32>
    %94 = arith.sitofp %93 : vector<128x128xi32> to vector<128x128xf32>
    %cst_48 = arith.constant dense<0.000000e+00> : vector<128x64xf32>
    %95 = tpu.matmul %94, %68, %cst_48 {dimension_numbers = #tpu.dot_dimension_numbers<[1], [0], [0], [1], [0, 0, 1, 1], [], []>} : vector<128x128xf32>, vector<128x64xf32>, vector<128x64xf32> -> vector<128x64xf32>
    %c2_49 = arith.constant 2 : index
    %c0_50 = arith.constant 0 : index
    %c0_51 = arith.constant 0 : index
    %96 = vector.load %arg2[%c2_49, %c0_50, %c0_51] : memref<3x64x128xf32, #tpu.memory_space<vmem>>, vector<1x64x128xf32>
    %97 = vector.shape_cast %96 : vector<1x64x128xf32> to vector<64x128xf32>
    %cst_52 = arith.constant dense<0.000000e+00> : vector<128x128xf32>
    %98 = tpu.matmul %95, %97, %cst_52 {dimension_numbers = #tpu.dot_dimension_numbers<[1], [0], [0], [1], [0, 0, 1, 1], [], []>} : vector<128x64xf32>, vector<64x128xf32>, vector<128x128xf32> -> vector<128x128xf32>
    %99 = arith.addf %89, %98 : vector<128x128xf32>
    %cst_53 = arith.constant 0.000000e+00 : f32
    %100 = vector.broadcast %cst_53 : f32 to vector<128x128xf32>
    %101 = arith.maximumf %99, %100 : vector<128x128xf32>
    %cst_54 = arith.constant dense<0.000000e+00> : vector<32x128xf32>
    %102 = tpu.matmul %5, %101, %cst_54 {dimension_numbers = #tpu.dot_dimension_numbers<[1], [1], [0], [0], [0, 0, 1, 0], [], []>} : vector<32x128xf32>, vector<128x128xf32>, vector<32x128xf32> -> vector<32x128xf32>
    %cst_55 = arith.constant dense<0xFF800000> : vector<32xf32>
    %103 = vector.multi_reduction <maximumf>, %102, %cst_55 [1] : vector<32x128xf32> to vector<32xf32>
    %104 = vector.shape_cast %103 : vector<32xf32> to vector<32x1xf32>
    %105 = vector.broadcast %104 : vector<32x1xf32> to vector<32x128xf32>
    %106 = arith.subf %102, %105 : vector<32x128xf32>
    %107 = math.exp %106 : vector<32x128xf32>
    %cst_56 = arith.constant dense<0.000000e+00> : vector<32xf32>
    %108 = vector.multi_reduction <add>, %107, %cst_56 [1] : vector<32x128xf32> to vector<32xf32>
    %109 = vector.shape_cast %108 : vector<32xf32> to vector<32x1xf32>
    %110 = vector.broadcast %109 : vector<32x1xf32> to vector<32x128xf32>
    %111 = arith.divf %107, %110 : vector<32x128xf32>
    %cst_57 = arith.constant dense<0.000000e+00> : vector<32x128xf32>
    %112 = tpu.matmul %111, %101, %cst_57 {dimension_numbers = #tpu.dot_dimension_numbers<[1], [0], [0], [1], [0, 0, 1, 1], [], []>} : vector<32x128xf32>, vector<128x128xf32>, vector<32x128xf32> -> vector<32x128xf32>
    %113 = arith.mulf %6, %112 : vector<32x128xf32>
    %cst_58 = arith.constant dense<0.000000e+00> : vector<32xf32>
    %114 = vector.multi_reduction <add>, %113, %cst_58 [1] : vector<32x128xf32> to vector<32xf32>
    %115 = vector.shape_cast %114 : vector<32xf32> to vector<32x1xf32>
    %116 = arith.addf %115, %7 : vector<32x1xf32>
    %c0_59 = arith.constant 0 : index
    %c1_60 = arith.constant 1 : index
    %117 = vector.load %arg8[%c0_59, %c1_60] : memref<32x2xf32, #tpu.memory_space<vmem>>, vector<32x1xf32>
    tpu.vector_store %arg8[%c0_59, %c1_60], %116 {strides = array<i32>} : memref<32x2xf32, #tpu.memory_space<vmem>>, vector<32x1xf32>,
    %c0_61 = arith.constant 0 : index
    %c0_62 = arith.constant 0 : index
    %118 = vector.load %arg8[%c0_61, %c0_62] : memref<32x2xf32, #tpu.memory_space<vmem>>, vector<32x2xf32>
    %c0_63 = arith.constant 0 : index
    %c0_64 = arith.constant 0 : index
    %119 = vector.load %arg7[%c0_63, %c0_64] : memref<32x2xf32, #tpu.memory_space<vmem>>, vector<32x2xf32>
    %cst_65 = arith.constant 0.000000e+00 : f32
    %120 = vector.broadcast %cst_65 : f32 to vector<32x2xf32>
    %121 = arith.maximumf %118, %120 : vector<32x2xf32>
    %122 = arith.mulf %118, %119 : vector<32x2xf32>
    %123 = arith.subf %121, %122 : vector<32x2xf32>
    %124 = math.absf %118 : vector<32x2xf32>
    %cst_66 = arith.constant 0.000000e+00 : f32
    %125 = vector.broadcast %cst_66 : f32 to vector<32x2xf32>
    %126 = arith.subf %125, %124 : vector<32x2xf32>
    %127 = math.exp %126 : vector<32x2xf32>
    %cst_67 = arith.constant 1.000000e+00 : f32
    %128 = vector.broadcast %cst_67 : f32 to vector<32x2xf32>
    %129 = arith.addf %128, %127 : vector<32x2xf32>
    %130 = math.log %129 : vector<32x2xf32>
    %131 = arith.addf %123, %130 : vector<32x2xf32>
    %cst_68 = arith.constant dense<0.000000e+00> : vector<32xf32>
    %132 = vector.multi_reduction <add>, %131, %cst_68 [1] : vector<32x2xf32> to vector<32xf32>
    %133 = vector.shape_cast %132 : vector<32xf32> to vector<32x1xf32>
    %cst_69 = arith.constant dense<0.000000e+00> : vector<1xf32>
    %134 = vector.multi_reduction <add>, %133, %cst_69 [0] : vector<32x1xf32> to vector<1xf32>
    %135 = vector.shape_cast %134 : vector<1xf32> to vector<1x1xf32>
    %cst_70 = arith.constant 6.400000e+01 : f32
    %136 = vector.broadcast %cst_70 : f32 to vector<1x1xf32>
    %137 = arith.divf %135, %136 : vector<1x1xf32>
    %c0_71 = arith.constant 0 : index
    %c0_72 = arith.constant 0 : index
    %138 = vector.load %arg9[%c0_71, %c0_72] : memref<1x1xf32, #tpu.memory_space<vmem>>, vector<1x1xf32>
    tpu.vector_store %arg9[%c0_71, %c0_72], %137 {strides = array<i32>} : memref<1x1xf32, #tpu.memory_space<vmem>>, vector<1x1xf32>,
    return
  }
}

</mosaic_0001>

<bundles_post_ra>
// kernel: tpu_custom_call.1
= control target key start
LH: loop header
LB: loop body
LE: loop exit
PB: predicated region body
PF: predicated region fallthrough
CT: control target
= control target key end

     0   :  { %v6897_v2 = vmov 0   ;;  %s8841_s0 = inlined_call_operand.vmem [shape: s32[128,2], index: 0, kind: input, shape index: {}]   ;;  %s8842_s1 = inlined_call_operand.vmem [shape: f32[512,64], index: 1, kind: input, shape index: {}]   ;;  %s8843_s2 = inlined_call_operand.vmem [shape: f32[3,64,128], index: 2, kind: input, shape index: {}]   ;;  %s8844_s3 = inlined_call_operand.vmem [shape: f32[1,128], index: 3, kind: input, shape index: {}]   ;;  %s8845_s4 = inlined_call_operand.vmem [shape: f32[32,128], index: 4, kind: input, shape index: {}]   ;;  %s8846_s5 = inlined_call_operand.vmem [shape: f32[32,128], index: 5, kind: input, shape index: {}]   ;;  %s8847_s6 = inlined_call_operand.vmem [shape: f32[32,1], index: 6, kind: input, shape index: {}]   ;;  %s8848_s7 = inlined_call_operand.vmem [shape: f32[32,2], index: 7, kind: input, shape index: {}]   ;;  %s8849_s8 = inlined_call_operand.vmem [shape: f32[32,2], index: 8, kind: output, shape index: {0}]   ;;  %s8850_s9 = inlined_call_operand.hbm [shape: f32[1,1], index: 9, kind: output, shape index: {1}]  }
   0x1   :  { %v133_v0 = vld [vmem:[%s8841_s0 + $0x10] sm:$0xff]  ;;  %v131_v1 = vld [vmem:[%s8841_s0] sm:$0xff]  ;;  %6817 = vset.pattern.permute.xlu1 %v6897_v2  ;;  %6816 = vset.pattern.permute.xlu0 %v6897_v2  ;;  %v134_v3 = vld [vmem:[%s8841_s0 + $0x18] sm:$0xff] }
   0x2   :  { %154 = vperm.xlu1 %6817, %v133_v0   ;;  %148 = vperm.xlu0 %6816, %v131_v1   ;;  %v132_v4 = vld [vmem:[%s8841_s0 + $0x8] sm:$0xff]  ;;  %v135_v6 = vld [vmem:[%s8841_s0 + $0x20] sm:$0xff]  ;;  %v72_v19 = vld [vmem:[%s8842_s1 + $0x90] sm:$0xff] }
   0x3   :  { %v136_v5 = vld [vmem:[%s8841_s0 + $0x28] sm:$0xff]  ;;  %v70_v7 = vld [vmem:[%s8842_s1 + $0x80] sm:$0xff]  ;;  %v73_v20 = vld [vmem:[%s8842_s1 + $0x98] sm:$0xff] }
   0x4   :  { %v71_v8 = vld [vmem:[%s8842_s1 + $0x88] sm:$0xff]  ;;  %v102_v10 = vld [vmem:[%s8842_s1 + $0x180] sm:$0xff]  ;;  %v104_v21 = vld [vmem:[%s8842_s1 + $0x190] sm:$0xff]  ;;  %v7019_v24 = vpack.c.bf16 %v73_v20, %v72_v19 }
   0x5   :  { %v6976_v9 = vpack.c.bf16 %v71_v8, %v70_v7  ;;  %v103_v11 = vld [vmem:[%s8842_s1 + $0x188] sm:$0xff]  ;;  %v54_v12 = vld [vmem:[%s8842_s1] sm:$0xff]  ;;  %v138_v22 = vld [vmem:[%s8841_s0 + $0x38] sm:$0xff] }
   0x6   :  { %157 = vperm.xlu1 %6817, %v134_v3   ;;  %151 = vperm.xlu0 %6816, %v132_v4   ;;  %v6987_v13 = vpack.c.bf16 %v103_v11, %v102_v10  ;;  %v55_v14 = vld [vmem:[%s8842_s1 + $0x8] sm:$0xff]  ;;  %v86_v15 = vld [vmem:[%s8842_s1 + $0x100] sm:$0xff]  ;;  %v137_v23 = vld [vmem:[%s8841_s0 + $0x30] sm:$0xff] }
   0x7   :  { %v87_v16 = vld [vmem:[%s8842_s1 + $0x108] sm:$0xff]  ;;  %6172 = vmatprep.subr.bf16.mxu0 %v6976_v9  ;;  %v6999_v17 = vpack.c.bf16 %v55_v14, %v54_v12  ;;  %v105_v25 = vld [vmem:[%s8842_s1 + $0x198] sm:$0xff]  ;;  %v56_v26 = vld [vmem:[%s8842_s1 + $0x10] sm:$0xff] }
   0x8   :  { %v7001_v18 = vpack.c.bf16 %v87_v16, %v86_v15  ;;  %6204 = vmatprep.subr.bf16.mxu1 %v6987_v13  ;;  %v57_v27 = vld [vmem:[%s8842_s1 + $0x18] sm:$0xff]  ;;  %v7030_v28 = vpack.c.bf16 %v105_v25, %v104_v21  ;;  %v88_v29 = vld [vmem:[%s8842_s1 + $0x110] sm:$0xff]  ;;  %v74_v31 = vld [vmem:[%s8842_s1 + $0xa0] sm:$0xff] }
   0x9   :  { %v89_v30 = vld [vmem:[%s8842_s1 + $0x118] sm:$0xff]  ;;  %6174 = vmatpush3.bf16.msra.mxu0 %v6999_v17  ;;  %v7043_v32 = vpack.c.bf16 %v57_v27, %v56_v26  ;;  %v75_v34 = vld [vmem:[%s8842_s1 + $0xa8] sm:$0xff]  ;;  %v106_v35 = vld [vmem:[%s8842_s1 + $0x1a0] sm:$0xff] }
   0xa   :  { %163 = vperm.xlu1 %6817, %v136_v5   ;;  %160 = vperm.xlu0 %6816, %v135_v6   ;;  %v7045_v33 = vpack.c.bf16 %v89_v30, %v88_v29  ;;  %v107_v36 = vld [vmem:[%s8842_s1 + $0x1a8] sm:$0xff]  ;;  %v7058_v37 = vpack.c.bf16 %v75_v34, %v74_v31  ;;  %v58_v39 = vld [vmem:[%s8842_s1 + $0x20] sm:$0xff]  ;;  %v76_v43 = vld [vmem:[%s8842_s1 + $0xb0] sm:$0xff] }
   0xb   :  { %6206 = vmatpush3.bf16.msra.mxu1 %v7001_v18  ;;  %6176 = vmatprep.subr.bf16.mxu0 %v7019_v24  ;;  %v7060_v38 = vpack.c.bf16 %v107_v36, %v106_v35  ;;  %v59_v40 = vld [vmem:[%s8842_s1 + $0x28] sm:$0xff]  ;;  %v90_v41 = vld [vmem:[%s8842_s1 + $0x120] sm:$0xff]  ;;  %v77_v44 = vld [vmem:[%s8842_s1 + $0xb8] sm:$0xff] }
   0xc   :  { %6208 = vmatprep.subr.bf16.mxu1 %v7030_v28  ;;  %v91_v42 = vld [vmem:[%s8842_s1 + $0x128] sm:$0xff]  ;;  %v108_v46 = vld [vmem:[%s8842_s1 + $0x1b0] sm:$0xff]  ;;  %v109_v47 = vld [vmem:[%s8842_s1 + $0x1b8] sm:$0xff]  ;;  %v7094_v49 = vpack.c.bf16 %v59_v40, %v58_v39  ;;  %v7106_v53 = vpack.c.bf16 %v77_v44, %v76_v43 }
   0xd   :  { %v140_v45 = vld [vmem:[%s8841_s0 + $0x48] sm:$0xff]  ;;  %v139_v48 = vld [vmem:[%s8841_s0 + $0x40] sm:$0xff]  ;;  %6178 = vmatpush3.bf16.msra.mxu0 %v7043_v32  ;;  %v7096_v50 = vpack.c.bf16 %v91_v42, %v90_v41  ;;  %v60_v51 = vld [vmem:[%s8842_s1 + $0x30] sm:$0xff]  ;;  %v7108_v54 = vpack.c.bf16 %v109_v47, %v108_v46 }
   0xe   :  { %169 = vperm.xlu1 %6817, %v138_v22   ;;  %166 = vperm.xlu0 %6816, %v137_v23   ;;  %v61_v52 = vld [vmem:[%s8842_s1 + $0x38] sm:$0xff]  ;;  %v92_v55 = vld [vmem:[%s8842_s1 + $0x130] sm:$0xff]  ;;  %v78_v57 = vld [vmem:[%s8842_s1 + $0xc0] sm:$0xff] }
   0xf   :  { %6210 = vmatpush3.bf16.msra.mxu1 %v7045_v33  ;;  %6180 = vmatprep.subr.bf16.mxu0 %v7058_v37  ;;  %v93_v56 = vld [vmem:[%s8842_s1 + $0x138] sm:$0xff]  ;;  %v79_v58 = vld [vmem:[%s8842_s1 + $0xc8] sm:$0xff]  ;;  %v110_v59 = vld [vmem:[%s8842_s1 + $0x1c0] sm:$0xff]  ;;  %v7136_v63 = vpack.c.bf16 %v61_v52, %v60_v51 }
  0x10   :  { %6212 = vmatprep.subr.bf16.mxu1 %v7060_v38  ;;  %v111_v60 = vld [vmem:[%s8842_s1 + $0x1c8] sm:$0xff]  ;;  %v142_v61 = vld [vmem:[%s8841_s0 + $0x58] sm:$0xff]  ;;  %v141_v62 = vld [vmem:[%s8841_s0 + $0x50] sm:$0xff]  ;;  %v7138_v0 = vpack.c.bf16 %v93_v56, %v92_v55  ;;  %v7148_v3 = vpack.c.bf16 %v79_v58, %v78_v57 }
  0x11   :  { %6182 = vmatpush3.bf16.msra.mxu0 %v7094_v49  ;;  %v62_v1 = vld [vmem:[%s8842_s1 + $0x40] sm:$0xff]  ;;  %v63_v2 = vld [vmem:[%s8842_s1 + $0x48] sm:$0xff]  ;;  %v7150_v4 = vpack.c.bf16 %v111_v60, %v110_v59  ;;  %v80_v7 = vld [vmem:[%s8842_s1 + $0xd0] sm:$0xff] }
  0x12   :  { %175 = vperm.xlu1 %6817, %v140_v45   ;;  %172 = vperm.xlu0 %6816, %v139_v48   ;;  %v94_v5 = vld [vmem:[%s8842_s1 + $0x140] sm:$0xff]  ;;  %v95_v6 = vld [vmem:[%s8842_s1 + $0x148] sm:$0xff]  ;;  %v81_v8 = vld [vmem:[%s8842_s1 + $0xd8] sm:$0xff]  ;;  %v7178_v15 = vpack.c.bf16 %v63_v2, %v62_v1 }
  0x13   :  { %6214 = vmatpush3.bf16.msra.mxu1 %v7096_v50  ;;  %6184 = vmatprep.subr.bf16.mxu0 %v7106_v53  ;;  %v112_v10 = vld [vmem:[%s8842_s1 + $0x1d0] sm:$0xff]  ;;  %v113_v11 = vld [vmem:[%s8842_s1 + $0x1d8] sm:$0xff]  ;;  %v144_v12 = vld [vmem:[%s8841_s0 + $0x68] sm:$0xff]  ;;  %v7180_v16 = vpack.c.bf16 %v95_v6, %v94_v5  ;;  %v7190_v21 = vpack.c.bf16 %v81_v8, %v80_v7 }
  0x14   :  { %6216 = vmatprep.subr.bf16.mxu1 %v7108_v54  ;;  %v143_v14 = vld [vmem:[%s8841_s0 + $0x60] sm:$0xff]  ;;  %v64_v19 = vld [vmem:[%s8842_s1 + $0x50] sm:$0xff]  ;;  %v65_v20 = vld [vmem:[%s8842_s1 + $0x58] sm:$0xff]  ;;  %v7192_v22 = vpack.c.bf16 %v113_v11, %v112_v10 }
  0x15   :  { %6186 = vmatpush3.bf16.msra.mxu0 %v7136_v63  ;;  %v96_v23 = vld [vmem:[%s8842_s1 + $0x150] sm:$0xff]  ;;  %v97_v25 = vld [vmem:[%s8842_s1 + $0x158] sm:$0xff]  ;;  %v82_v26 = vld [vmem:[%s8842_s1 + $0xe0] sm:$0xff] }
  0x16   :  { %181 = vperm.xlu1 %6817, %v142_v61   ;;  %178 = vperm.xlu0 %6816, %v141_v62   ;;  %v83_v27 = vld [vmem:[%s8842_s1 + $0xe8] sm:$0xff]  ;;  %v114_v29 = vld [vmem:[%s8842_s1 + $0x1e0] sm:$0xff]  ;;  %v146_v31 = vld [vmem:[%s8841_s0 + $0x78] sm:$0xff] }
  0x17   :  { %6218 = vmatpush3.bf16.msra.mxu1 %v7138_v0  ;;  %6188 = vmatprep.subr.bf16.mxu0 %v7148_v3  ;;  %v115_v30 = vld [vmem:[%s8842_s1 + $0x1e8] sm:$0xff] }
  0x18   :  { %6220 = vmatprep.subr.bf16.mxu1 %v7150_v4 }
  0x1a   :  { %187 = vperm.xlu1 %6817, %v144_v12   ;;  %184 = vperm.xlu0 %6816, %v143_v14  }
  0x1b   :  { %15 = vsyncpa [#allocation3], 0  ;;  %v145_v34 = vld [vmem:[%s8841_s0 + $0x70] sm:$0xff]  ;;  %6190 = vmatpush3.bf16.msra.mxu0 %v7178_v15  ;;  %6222 = vmatpush3.bf16.msra.mxu1 %v7180_v16  ;;  %v7220_v35 = vpack.c.bf16 %v65_v20, %v64_v19  ;;  %v7222_v36 = vpack.c.bf16 %v97_v25, %v96_v23  ;;  %v66_v39 = vld [vmem:[%s8842_s1 + $0x60] sm:$0xff]  ;;  %v7232_v41 = vpack.c.bf16 %v83_v27, %v82_v26  ;;  %v32_v1 = vlaneseq  ;;  %s6900_s21 = smov 1  }
  0x1c   :  { %v67_v40 = vld [vmem:[%s8842_s1 + $0x68] sm:$0xff]  ;;  %6192 = vmatprep.subr.bf16.mxu0 %v7190_v21  ;;  %6224 = vmatprep.subr.bf16.mxu1 %v7192_v22  ;;  %v7234_v42 = vpack.c.bf16 %v115_v30, %v114_v29  ;;  %v98_v43 = vld [vmem:[%s8842_s1 + $0x160] sm:$0xff]  ;;  %v84_v45 = vld [vmem:[%s8842_s1 + $0xf0] sm:$0xff]  ;;  %v8851_v10 = vmov 1.0  }
  0x1d   :  { %v99_v44 = vld [vmem:[%s8842_s1 + $0x168] sm:$0xff]  ;;  %v85_v46 = vld [vmem:[%s8842_s1 + $0xf8] sm:$0xff]  ;;  %v116_v47 = vld [vmem:[%s8842_s1 + $0x1f0] sm:$0xff]  ;;  %v7256_v51 = vpack.c.bf16 %v67_v40, %v66_v39  ;;  %v7289_v2 = vand.u32 127, %v32_v1 }
  0x1e   :  { %v117_v48 = vld [vmem:[%s8842_s1 + $0x1f8] sm:$0xff]  ;;  %193 = vperm.xlu1 %6817, %v146_v31   ;;  %190 = vperm.xlu0 %6816, %v145_v34   ;;  %v7258_v52 = vpack.c.bf16 %v99_v44, %v98_v43  ;;  %v68_v55 = vld [vmem:[%s8842_s1 + $0x70] sm:$0xff]  ;;  %v7265_v56 = vpack.c.bf16 %v85_v46, %v84_v45  ;;  %v7429_v43 = vshrl.u32 %v32_v1, 7 }
  0x1f   :  { %6194 = vmatpush3.bf16.msra.mxu0 %v7220_v35  ;;  %6226 = vmatpush3.bf16.msra.mxu1 %v7222_v36  ;;  %v7267_v57 = vpack.c.bf16 %v117_v48, %v116_v47  ;;  %v69_v58 = vld [vmem:[%s8842_s1 + $0x78] sm:$0xff]  ;;  %v100_v59 = vld [vmem:[%s8842_s1 + $0x170] sm:$0xff]  ;;  %v7292_v5 = vadd.s32 128, %v7289_v2  ;;  %v7295_v6 = vadd.s32 384, %v7289_v2  ;;  %v7298_v7 = vadd.s32 256, %v7289_v2 }
  0x20   :  { %6196 = vmatprep.subr.bf16.mxu0 %v7232_v41  ;;  %6228 = vmatprep.subr.bf16.mxu1 %v7234_v42  ;;  %v101_v60 = vld [vmem:[%s8842_s1 + $0x178] sm:$0xff]  ;;  %v7280_v61 = vpack.c.bf16 %v69_v58, %v68_v55  ;;  %v7432_v44 = vadd.s32 4294967295, %v7429_v43 }
  0x21   :  { %v7282_v62 = vpack.c.bf16 %v101_v60, %v100_v59  ;;  %8935 = vst [vmem:[#allocation6_spill] sm:$0xff] %v7292_v5 }
  0x22   :  { %8934 = vst [vmem:[#allocation5_spill] sm:$0xff] %v7280_v61  ;;  %8936 = vst [vmem:[#allocation7_spill] sm:$0xff] %v7432_v44 }
  0x23   :  { %6198 = vmatpush3.bf16.msra.mxu0 %v7256_v51  ;;  %6230 = vmatpush3.bf16.msra.mxu1 %v7258_v52 }
  0x24   :  { %6200 = vmatprep.subr.bf16.mxu0 %v7265_v56  ;;  %6232 = vmatprep.subr.bf16.mxu1 %v7267_v57 }
  0x27   :  { %6202 = vmatpush3.bf16.msra.mxu0 %v7280_v61  ;;  %6234 = vmatpush3.bf16.msra.mxu1 %v7282_v62  ;;  %v7650_v61 = vadd.s32 120, %v7429_v43 }
  0x29   :  { %8958 = vst [vmem:[#allocation28_spill] sm:$0xff] %v7650_v61 }
  0x81   :  { %v149_v8 = vpop.permute.xlu0 %148  ;;  %v155_v11 = vpop.permute.xlu1 %154 }
  0x82   :  { %vm196_vm0 = vcmp.eq.s32.totalorder %v149_v8, %v7292_v5  ;;  %vm198_vm1 = vcmp.eq.s32.totalorder %v149_v8, %v7295_v6  ;;  %vm195_vm2 = vcmp.eq.s32.totalorder %v149_v8, %v7289_v2  ;;  %vm197_vm3 = vcmp.eq.s32.totalorder %v149_v8, %v7298_v7 }
  0x83   :  { %4242 = vmatprep.mubr.msk.f32.mxu0 %vm196_vm0, %v8851_v10  ;;  %4274 = vmatprep.mubr.msk.f32.mxu1 %vm198_vm1, %v8851_v10  ;;  %vm204_vm4 = vcmp.eq.s32.totalorder %v155_v11, %v7292_v5  ;;  %vm206_vm5 = vcmp.eq.s32.totalorder %v155_v11, %v7295_v6  ;;  %vm203_vm10 = vcmp.eq.s32.totalorder %v155_v11, %v7289_v2 }
  0x84   :  { %4243 = vmatmul.mubr.msk.f32.vlgmr.msra.gmra.mrb[0].mxu0 %vm195_vm2, %v8851_v10  ;;  %4275 = vmatmul.mubr.msk.f32.vlgmr.msra.gmra.mrb[0].mxu1 %vm197_vm3, %v8851_v10  ;;  %vm205_vm11 = vcmp.eq.s32.totalorder %v155_v11, %v7298_v7 }
  0x85   :  { %v152_v12 = vpop.permute.xlu0 %151  ;;  %v158_v14 = vpop.permute.xlu1 %157 }
  0x86   :  { %vm200_vm6 = vcmp.eq.s32.totalorder %v152_v12, %v7292_v5  ;;  %vm202_vm7 = vcmp.eq.s32.totalorder %v152_v12, %v7295_v6  ;;  %vm199_vm8 = vcmp.eq.s32.totalorder %v152_v12, %v7289_v2  ;;  %vm201_vm9 = vcmp.eq.s32.totalorder %v152_v12, %v7298_v7 }
  0x87   :  { %4244 = vmatprep.mubr.msk.f32.mxu0 %vm200_vm6, %v8851_v10  ;;  %4276 = vmatprep.mubr.msk.f32.mxu1 %vm202_vm7, %v8851_v10  ;;  %vm208_vm12 = vcmp.eq.s32.totalorder %v158_v14, %v7292_v5  ;;  %vm210_vm13 = vcmp.eq.s32.totalorder %v158_v14, %v7295_v6  ;;  %vm207_vm14 = vcmp.eq.s32.totalorder %v158_v14, %v7289_v2 }
  0x88   :  { %4245 = vmatmul.mubr.msk.f32.gmra.mrb[2].mxu0 %vm199_vm8, %v8851_v10  ;;  %4277 = vmatmul.mubr.msk.f32.gmra.mrb[2].mxu1 %vm201_vm9, %v8851_v10  ;;  %vm209_vm15 = vcmp.eq.s32.totalorder %v158_v14, %v7298_v7 }
  0x89   :  { %4246 = vmatprep.mubr.msk.f32.mxu0 %vm204_vm4, %v8851_v10  ;;  %4278 = vmatprep.mubr.msk.f32.mxu1 %vm206_vm5, %v8851_v10  ;;  %v161_v19 = vpop.permute.xlu0 %160  ;;  %v164_v20 = vpop.permute.xlu1 %163 }
  0x8a   :  { %vm212_vm0 = vcmp.eq.s32.totalorder %v161_v19, %v7292_v5  ;;  %vm214_vm1 = vcmp.eq.s32.totalorder %v161_v19, %v7295_v6  ;;  %vm211_vm2 = vcmp.eq.s32.totalorder %v161_v19, %v7289_v2  ;;  %vm213_vm3 = vcmp.eq.s32.totalorder %v161_v19, %v7298_v7 }
  0x8b   :  { %vm216_vm4 = vcmp.eq.s32.totalorder %v164_v20, %v7292_v5  ;;  %vm218_vm5 = vcmp.eq.s32.totalorder %v164_v20, %v7295_v6  ;;  %vm215_vm6 = vcmp.eq.s32.totalorder %v164_v20, %v7289_v2  ;;  %vm217_vm7 = vcmp.eq.s32.totalorder %v164_v20, %v7298_v7 }
  0x8c   :  { %4247 = vmatmul.mubr.msk.f32.gmra.mrb[4].mxu0 %vm203_vm10, %v8851_v10  ;;  %4279 = vmatmul.mubr.msk.f32.gmra.mrb[4].mxu1 %vm205_vm11, %v8851_v10 }
  0x8d   :  { %4248 = vmatprep.mubr.msk.f32.mxu0 %vm208_vm12, %v8851_v10  ;;  %4280 = vmatprep.mubr.msk.f32.mxu1 %vm210_vm13, %v8851_v10  ;;  %v167_v23 = vpop.permute.xlu0 %166  ;;  %v170_v25 = vpop.permute.xlu1 %169 }
  0x8e   :  { %vm220_vm8 = vcmp.eq.s32.totalorder %v167_v23, %v7292_v5  ;;  %vm222_vm9 = vcmp.eq.s32.totalorder %v167_v23, %v7295_v6  ;;  %vm219_vm10 = vcmp.eq.s32.totalorder %v167_v23, %v7289_v2  ;;  %vm221_vm11 = vcmp.eq.s32.totalorder %v167_v23, %v7298_v7 }
  0x8f   :  { %vm224_vm12 = vcmp.eq.s32.totalorder %v170_v25, %v7292_v5  ;;  %vm226_vm13 = vcmp.eq.s32.totalorder %v170_v25, %v7295_v6 }
  0x90   :  { %4249 = vmatmul.mubr.msk.f32.gmra.mrb[6].mxu0 %vm207_vm14, %v8851_v10  ;;  %4281 = vmatmul.mubr.msk.f32.gmra.mrb[6].mxu1 %vm209_vm15, %v8851_v10  ;;  %vm223_vm14 = vcmp.eq.s32.totalorder %v170_v25, %v7289_v2  ;;  %vm225_vm15 = vcmp.eq.s32.totalorder %v170_v25, %v7298_v7 }
  0x91   :  { %4250 = vmatprep.mubr.msk.f32.mxu0 %vm212_vm0, %v8851_v10  ;;  %4282 = vmatprep.mubr.msk.f32.mxu1 %vm214_vm1, %v8851_v10  ;;  %v173_v26 = vpop.permute.xlu0 %172  ;;  %v176_v27 = vpop.permute.xlu1 %175 }
  0x92   :  { %vm228_vm0 = vcmp.eq.s32.totalorder %v173_v26, %v7292_v5  ;;  %vm230_vm1 = vcmp.eq.s32.totalorder %v173_v26, %v7295_v6 }
  0x94   :  { %4251 = vmatmul.mubr.msk.f32.gmra.mrb[8].mxu0 %vm211_vm2, %v8851_v10  ;;  %4283 = vmatmul.mubr.msk.f32.gmra.mrb[8].mxu1 %vm213_vm3, %v8851_v10  ;;  %vm227_vm2 = vcmp.eq.s32.totalorder %v173_v26, %v7289_v2  ;;  %vm229_vm3 = vcmp.eq.s32.totalorder %v173_v26, %v7298_v7 }
  0x95   :  { %4252 = vmatprep.mubr.msk.f32.mxu0 %vm216_vm4, %v8851_v10  ;;  %4284 = vmatprep.mubr.msk.f32.mxu1 %vm218_vm5, %v8851_v10  ;;  %vm232_vm4 = vcmp.eq.s32.totalorder %v176_v27, %v7292_v5  ;;  %vm234_vm5 = vcmp.eq.s32.totalorder %v176_v27, %v7295_v6  ;;  %v179_v29 = vpop.permute.xlu0 %178  ;;  %v182_v30 = vpop.permute.xlu1 %181 }
  0x98   :  { %4253 = vmatmul.mubr.msk.f32.gmra.mrb[10].mxu0 %vm215_vm6, %v8851_v10  ;;  %4285 = vmatmul.mubr.msk.f32.gmra.mrb[10].mxu1 %vm217_vm7, %v8851_v10  ;;  %vm231_vm6 = vcmp.eq.s32.totalorder %v176_v27, %v7289_v2  ;;  %vm233_vm7 = vcmp.eq.s32.totalorder %v176_v27, %v7298_v7 }
  0x99   :  { %4254 = vmatprep.mubr.msk.f32.mxu0 %vm220_vm8, %v8851_v10  ;;  %4286 = vmatprep.mubr.msk.f32.mxu1 %vm222_vm9, %v8851_v10  ;;  %vm236_vm8 = vcmp.eq.s32.totalorder %v179_v29, %v7292_v5  ;;  %vm238_vm9 = vcmp.eq.s32.totalorder %v179_v29, %v7295_v6  ;;  %v185_v31 = vpop.permute.xlu0 %184  ;;  %v188_v34 = vpop.permute.xlu1 %187 }
  0x9c   :  { %4255 = vmatmul.mubr.msk.f32.gmra.mrb[12].mxu0 %vm219_vm10, %v8851_v10  ;;  %4287 = vmatmul.mubr.msk.f32.gmra.mrb[12].mxu1 %vm221_vm11, %v8851_v10  ;;  %vm235_vm10 = vcmp.eq.s32.totalorder %v179_v29, %v7289_v2  ;;  %vm237_vm11 = vcmp.eq.s32.totalorder %v179_v29, %v7298_v7 }
  0x9d   :  { %4256 = vmatprep.mubr.msk.f32.mxu0 %vm224_vm12, %v8851_v10  ;;  %4288 = vmatprep.mubr.msk.f32.mxu1 %vm226_vm13, %v8851_v10  ;;  %vm240_vm12 = vcmp.eq.s32.totalorder %v182_v30, %v7292_v5  ;;  %vm242_vm13 = vcmp.eq.s32.totalorder %v182_v30, %v7295_v6  ;;  %v191_v39 = vpop.permute.xlu0 %190  ;;  %v194_v40 = vpop.permute.xlu1 %193 }
  0xa0   :  { %4257 = vmatmul.mubr.msk.f32.gmra.mrb[14].mxu0 %vm223_vm14, %v8851_v10  ;;  %4289 = vmatmul.mubr.msk.f32.gmra.mrb[14].mxu1 %vm225_vm15, %v8851_v10  ;;  %vm239_vm14 = vcmp.eq.s32.totalorder %v182_v30, %v7289_v2  ;;  %vm241_vm15 = vcmp.eq.s32.totalorder %v182_v30, %v7298_v7 }
  0xa1   :  { %4258 = vmatprep.mubr.msk.f32.mxu0 %vm228_vm0, %v8851_v10  ;;  %4290 = vmatprep.mubr.msk.f32.mxu1 %vm230_vm1, %v8851_v10  ;;  %vm244_vm0 = vcmp.eq.s32.totalorder %v185_v31, %v7292_v5  ;;  %vm246_vm1 = vcmp.eq.s32.totalorder %v185_v31, %v7295_v6 }
  0xa4   :  { %4259 = vmatmul.mubr.msk.f32.gmra.mrb[16].mxu0 %vm227_vm2, %v8851_v10  ;;  %4291 = vmatmul.mubr.msk.f32.gmra.mrb[16].mxu1 %vm229_vm3, %v8851_v10  ;;  %vm243_vm2 = vcmp.eq.s32.totalorder %v185_v31, %v7289_v2  ;;  %vm245_vm3 = vcmp.eq.s32.totalorder %v185_v31, %v7298_v7 }
  0xa5   :  { %4260 = vmatprep.mubr.msk.f32.mxu0 %vm232_vm4, %v8851_v10  ;;  %4292 = vmatprep.mubr.msk.f32.mxu1 %vm234_vm5, %v8851_v10  ;;  %vm248_vm4 = vcmp.eq.s32.totalorder %v188_v34, %v7292_v5  ;;  %vm250_vm5 = vcmp.eq.s32.totalorder %v188_v34, %v7295_v6 }
  0xa8   :  { %4261 = vmatmul.mubr.msk.f32.gmra.mrb[18].mxu0 %vm231_vm6, %v8851_v10  ;;  %4293 = vmatmul.mubr.msk.f32.gmra.mrb[18].mxu1 %vm233_vm7, %v8851_v10  ;;  %vm247_vm6 = vcmp.eq.s32.totalorder %v188_v34, %v7289_v2  ;;  %vm249_vm7 = vcmp.eq.s32.totalorder %v188_v34, %v7298_v7 }
  0xa9   :  { %4262 = vmatprep.mubr.msk.f32.mxu0 %vm236_vm8, %v8851_v10  ;;  %4294 = vmatprep.mubr.msk.f32.mxu1 %vm238_vm9, %v8851_v10  ;;  %vm252_vm8 = vcmp.eq.s32.totalorder %v191_v39, %v7292_v5  ;;  %vm254_vm9 = vcmp.eq.s32.totalorder %v191_v39, %v7295_v6 }
  0xac   :  { %4263 = vmatmul.mubr.msk.f32.gmra.mrb[20].mxu0 %vm235_vm10, %v8851_v10  ;;  %4295 = vmatmul.mubr.msk.f32.gmra.mrb[20].mxu1 %vm237_vm11, %v8851_v10  ;;  %vm251_vm10 = vcmp.eq.s32.totalorder %v191_v39, %v7289_v2  ;;  %vm253_vm11 = vcmp.eq.s32.totalorder %v191_v39, %v7298_v7 }
  0xad   :  { %4264 = vmatprep.mubr.msk.f32.mxu0 %vm240_vm12, %v8851_v10  ;;  %4296 = vmatprep.mubr.msk.f32.mxu1 %vm242_vm13, %v8851_v10  ;;  %vm256_vm12 = vcmp.eq.s32.totalorder %v194_v40, %v7292_v5  ;;  %vm258_vm13 = vcmp.eq.s32.totalorder %v194_v40, %v7295_v6 }
  0xb0   :  { %4265 = vmatmul.mubr.msk.f32.gmra.mrb[22].mxu0 %vm239_vm14, %v8851_v10  ;;  %4297 = vmatmul.mubr.msk.f32.gmra.mrb[22].mxu1 %vm241_vm15, %v8851_v10  ;;  %vm255_vm14 = vcmp.eq.s32.totalorder %v194_v40, %v7289_v2  ;;  %vm257_vm15 = vcmp.eq.s32.totalorder %v194_v40, %v7298_v7 }
  0xb1   :  { %4266 = vmatprep.mubr.msk.f32.mxu0 %vm244_vm0, %v8851_v10  ;;  %4298 = vmatprep.mubr.msk.f32.mxu1 %vm246_vm1, %v8851_v10  ;;  %vm693_vm0 = vcmp.eq.s32.totalorder %v7289_v2, %v7432_v44 }
  0xb4   :  { %4267 = vmatmul.mubr.msk.f32.gmra.mrb[24].mxu0 %vm243_vm2, %v8851_v10  ;;  %4299 = vmatmul.mubr.msk.f32.gmra.mrb[24].mxu1 %vm245_vm3, %v8851_v10 }
  0xb5   :  { %4268 = vmatprep.mubr.msk.f32.mxu0 %vm248_vm4, %v8851_v10  ;;  %4300 = vmatprep.mubr.msk.f32.mxu1 %vm250_vm5, %v8851_v10 }
  0xb8   :  { %4269 = vmatmul.mubr.msk.f32.gmra.mrb[26].mxu0 %vm247_vm6, %v8851_v10  ;;  %4301 = vmatmul.mubr.msk.f32.gmra.mrb[26].mxu1 %vm249_vm7, %v8851_v10 }
  0xb9   :  { %4270 = vmatprep.mubr.msk.f32.mxu0 %vm252_vm8, %v8851_v10  ;;  %4302 = vmatprep.mubr.msk.f32.mxu1 %vm254_vm9, %v8851_v10 }
  0xbc   :  { %4271 = vmatmul.mubr.msk.f32.gmra.mrb[28].mxu0 %vm251_vm10, %v8851_v10  ;;  %4303 = vmatmul.mubr.msk.f32.gmra.mrb[28].mxu1 %vm253_vm11, %v8851_v10 }
  0xbd   :  { %4272 = vmatprep.mubr.msk.f32.mxu0 %vm256_vm12, %v8851_v10  ;;  %4304 = vmatprep.mubr.msk.f32.mxu1 %vm258_vm13, %v8851_v10 }
  0xc0   :  { %4273 = vmatmul.mubr.msk.f32.gmra.mrb[30].mxu0 %vm255_vm14, %v8851_v10  ;;  %4305 = vmatmul.mubr.msk.f32.gmra.mrb[30].mxu1 %vm257_vm15, %v8851_v10 }
  0xc1   :  { %5475 = vmatprep.mubr.msk.f32.mxu0 %vm693_vm0, %v8851_v10 }
 0x157   :  { %v4739_v45 = vpop.f32.mrb[0].mxu0  ;;  %v4819_v46 = vpop.f32.mrb[0].mxu1 }
 0x158   :  { %v4740_v47 = vpop.f32.mrb[1].mxu0  ;;  %v4820_v48 = vpop.f32.mrb[1].mxu1 }
 0x159   :  { %v4741_v55 = vadd.f32 %v4740_v47, %v4739_v45  ;;  %v4821_v58 = vadd.f32 %v4820_v48, %v4819_v46 }
 0x15b   :  { %v599_v59 = vadd.f32 %v4821_v58, %v4741_v55  ;;  %v4742_v60 = vpop.f32.mrb[2].mxu0  ;;  %v4822_v1 = vpop.f32.mrb[2].mxu1 }
 0x15c   :  { %v4743_v8 = vpop.f32.mrb[3].mxu0  ;;  %v4823_v11 = vpop.f32.mrb[3].mxu1 }
 0x15d   :  { %v4744_v12 = vadd.f32 %v4743_v8, %v4742_v60  ;;  %v4824_v14 = vadd.f32 %v4823_v11, %v4822_v1 }
 0x15f   :  { %v604_v19 = vadd.f32 %v4824_v14, %v4744_v12  ;;  %v4745_v20 = vpop.f32.mrb[4].mxu0  ;;  %v4825_v23 = vpop.f32.mrb[4].mxu1 }
 0x160   :  { %v4746_v25 = vpop.f32.mrb[5].mxu0  ;;  %v4826_v26 = vpop.f32.mrb[5].mxu1 }
 0x161   :  { %v7440_v27 = vpack.c.bf16 %v604_v19, %v599_v59  ;;  %v4747_v29 = vadd.f32 %v4746_v25, %v4745_v20  ;;  %v4827_v30 = vadd.f32 %v4826_v26, %v4825_v23 }
 0x163   :  { %v609_v31 = vadd.f32 %v4827_v30, %v4747_v29  ;;  %v4748_v34 = vpop.f32.mrb[6].mxu0  ;;  %v4828_v39 = vpop.f32.mrb[6].mxu1  ;;  %6236 = vmatprep.subr.bf16.mxu0 %v7440_v27 }
 0x164   :  { %v4749_v40 = vpop.f32.mrb[7].mxu0  ;;  %v4829_v45 = vpop.f32.mrb[7].mxu1  ;;  %6238 = vmatpush3.bf16.msra.mxu0 %v7440_v27 }
 0x165   :  { %v4750_v46 = vadd.f32 %v4749_v40, %v4748_v34  ;;  %v4830_v47 = vadd.f32 %v4829_v45, %v4828_v39 }
 0x167   :  { %v614_v48 = vadd.f32 %v4830_v47, %v4750_v46  ;;  %v4751_v55 = vpop.f32.mrb[8].mxu0  ;;  %v4831_v58 = vpop.f32.mrb[8].mxu1 }
 0x168   :  { %v4752_v60 = vpop.f32.mrb[9].mxu0  ;;  %v4832_v1 = vpop.f32.mrb[9].mxu1 }
 0x169   :  { %v7444_v59 = vpack.c.bf16 %v614_v48, %v609_v31  ;;  %v4753_v8 = vadd.f32 %v4752_v60, %v4751_v55  ;;  %v4833_v11 = vadd.f32 %v4832_v1, %v4831_v58 }
 0x16b   :  { %v619_v12 = vadd.f32 %v4833_v11, %v4753_v8  ;;  %v4754_v14 = vpop.f32.mrb[10].mxu0  ;;  %v4834_v19 = vpop.f32.mrb[10].mxu1  ;;  %6240 = vmatprep.subr.bf16.mxu0 %v7444_v59 }
 0x16c   :  { %v4755_v20 = vpop.f32.mrb[11].mxu0  ;;  %v4835_v23 = vpop.f32.mrb[11].mxu1  ;;  %6242 = vmatpush3.bf16.msra.mxu0 %v7444_v59 }
 0x16d   :  { %v4756_v25 = vadd.f32 %v4755_v20, %v4754_v14  ;;  %v4836_v26 = vadd.f32 %v4835_v23, %v4834_v19 }
 0x16f   :  { %v624_v29 = vadd.f32 %v4836_v26, %v4756_v25  ;;  %v4757_v30 = vpop.f32.mrb[12].mxu0  ;;  %v4837_v34 = vpop.f32.mrb[12].mxu1 }
 0x170   :  { %v4758_v39 = vpop.f32.mrb[13].mxu0  ;;  %v4838_v40 = vpop.f32.mrb[13].mxu1 }
 0x171   :  { %v7448_v31 = vpack.c.bf16 %v624_v29, %v619_v12  ;;  %v4759_v45 = vadd.f32 %v4758_v39, %v4757_v30  ;;  %v4839_v46 = vadd.f32 %v4838_v40, %v4837_v34  ;;  %v886_v39 = vld [vmem:[%s8843_s2] sm:$0xff]  ;;  %v887_v40 = vld [vmem:[%s8843_s2 + $0x8] sm:$0xff] }
 0x173   :  { %v629_v47 = vadd.f32 %v4839_v46, %v4759_v45  ;;  %v4760_v48 = vpop.f32.mrb[14].mxu0  ;;  %v4840_v55 = vpop.f32.mrb[14].mxu1  ;;  %6244 = vmatprep.subr.bf16.mxu0 %v7448_v31  ;;  %v888_v45 = vld [vmem:[%s8843_s2 + $0x10] sm:$0xff] }
 0x174   :  { %v4761_v58 = vpop.f32.mrb[15].mxu0  ;;  %v4841_v60 = vpop.f32.mrb[15].mxu1  ;;  %6246 = vmatpush3.bf16.msra.mxu0 %v7448_v31 }
 0x175   :  { %v4762_v1 = vadd.f32 %v4761_v58, %v4760_v48  ;;  %v4842_v8 = vadd.f32 %v4841_v60, %v4840_v55  ;;  %v6267_v48 = vpack.c.bf16 %v887_v40, %v886_v39  ;;  %v889_v55 = vld [vmem:[%s8843_s2 + $0x18] sm:$0xff]  ;;  %v892_v40 = vld [vmem:[%s8843_s2 + $0x30] sm:$0xff] }
 0x177   :  { %v634_v11 = vadd.f32 %v4842_v8, %v4762_v1  ;;  %v4763_v14 = vpop.f32.mrb[16].mxu0  ;;  %v4843_v19 = vpop.f32.mrb[16].mxu1  ;;  %v6271_v1 = vpack.c.bf16 %v889_v55, %v888_v45  ;;  %v890_v8 = vld [vmem:[%s8843_s2 + $0x20] sm:$0xff]  ;;  %6268 = vmatprep.subr.bf16.mxu1 %v6267_v48  ;;  %v893_v45 = vld [vmem:[%s8843_s2 + $0x38] sm:$0xff] }
 0x178   :  { %v4764_v20 = vpop.f32.mrb[17].mxu0  ;;  %v4844_v23 = vpop.f32.mrb[17].mxu1  ;;  %6270 = vmatpush3.bf16.msra.mxu1 %v6267_v48 }
 0x179   :  { %v7452_v12 = vpack.c.bf16 %v634_v11, %v629_v47  ;;  %v4765_v25 = vadd.f32 %v4764_v20, %v4763_v14  ;;  %v4845_v26 = vadd.f32 %v4844_v23, %v4843_v19  ;;  %v891_v11 = vld [vmem:[%s8843_s2 + $0x28] sm:$0xff]  ;;  %6272 = vmatprep.subr.bf16.mxu1 %v6271_v1 }
 0x17b   :  { %v639_v29 = vadd.f32 %v4845_v26, %v4765_v25  ;;  %v4766_v30 = vpop.f32.mrb[18].mxu0  ;;  %v4846_v34 = vpop.f32.mrb[18].mxu1  ;;  %6248 = vmatprep.subr.bf16.mxu0 %v7452_v12  ;;  %v6275_v26 = vpack.c.bf16 %v891_v11, %v890_v8 }
 0x17c   :  { %v4767_v46 = vpop.f32.mrb[19].mxu0  ;;  %v4847_v47 = vpop.f32.mrb[19].mxu1  ;;  %6250 = vmatpush3.bf16.msra.mxu0 %v7452_v12  ;;  %6274 = vmatpush3.bf16.msra.mxu1 %v6271_v1 }
 0x17d   :  { %v4768_v58 = vadd.f32 %v4767_v46, %v4766_v30  ;;  %v4848_v60 = vadd.f32 %v4847_v47, %v4846_v34  ;;  %6276 = vmatprep.subr.bf16.mxu1 %v6275_v26 }
 0x17f   :  { %v644_v14 = vadd.f32 %v4848_v60, %v4768_v58  ;;  %v4769_v19 = vpop.f32.mrb[20].mxu0  ;;  %v4849_v20 = vpop.f32.mrb[20].mxu1 }
 0x180   :  { %v4770_v23 = vpop.f32.mrb[21].mxu0  ;;  %v4850_v25 = vpop.f32.mrb[21].mxu1  ;;  %6278 = vmatpush3.bf16.msra.mxu1 %v6275_v26 }
 0x181   :  { %v7474_v30 = vpack.c.bf16 %v644_v14, %v639_v29  ;;  %v4771_v34 = vadd.f32 %v4770_v23, %v4769_v19  ;;  %v4851_v39 = vadd.f32 %v4850_v25, %v4849_v20  ;;  %v6279_v29 = vpack.c.bf16 %v893_v45, %v892_v40 }
 0x183   :  { %v649_v46 = vadd.f32 %v4851_v39, %v4771_v34  ;;  %v4772_v47 = vpop.f32.mrb[22].mxu0  ;;  %v4852_v55 = vpop.f32.mrb[22].mxu1  ;;  %6252 = vmatprep.subr.bf16.mxu0 %v7474_v30  ;;  %6280 = vmatprep.subr.bf16.mxu1 %v6279_v29 }
 0x184   :  { %v4773_v48 = vpop.f32.mrb[23].mxu0  ;;  %v4853_v58 = vpop.f32.mrb[23].mxu1  ;;  %6254 = vmatpush3.bf16.msra.mxu0 %v7474_v30  ;;  %6282 = vmatpush3.bf16.msra.mxu1 %v6279_v29 }
 0x185   :  { %v4774_v60 = vadd.f32 %v4773_v48, %v4772_v47  ;;  %v4854_v8 = vadd.f32 %v4853_v58, %v4852_v55 }
 0x187   :  { %v654_v11 = vadd.f32 %v4854_v8, %v4774_v60  ;;  %v4775_v14 = vpop.f32.mrb[24].mxu0  ;;  %v4855_v19 = vpop.f32.mrb[24].mxu1 }
 0x188   :  { %v4776_v20 = vpop.f32.mrb[25].mxu0  ;;  %v4856_v23 = vpop.f32.mrb[25].mxu1 }
 0x189   :  { %v7484_v25 = vpack.c.bf16 %v654_v11, %v649_v46  ;;  %v4777_v34 = vadd.f32 %v4776_v20, %v4775_v14  ;;  %v4857_v39 = vadd.f32 %v4856_v23, %v4855_v19 }
 0x18b   :  { %v659_v1 = vadd.f32 %v4857_v39, %v4777_v34  ;;  %v4778_v10 = vpop.f32.mrb[26].mxu0  ;;  %v4858_v44 = vpop.f32.mrb[26].mxu1  ;;  %6256 = vmatprep.subr.bf16.mxu0 %v7484_v25 }
 0x18c   :  { %v4779_v40 = vpop.f32.mrb[27].mxu0  ;;  %v4859_v45 = vpop.f32.mrb[27].mxu1  ;;  %6258 = vmatpush3.bf16.msra.mxu0 %v7484_v25 }
 0x18d   :  { %v4780_v47 = vadd.f32 %v4779_v40, %v4778_v10  ;;  %v4860_v55 = vadd.f32 %v4859_v45, %v4858_v44  ;;  %v7493_v10 = vadd.s32 8, %v7429_v43  ;;  %v7496_v40 = vadd.s32 16, %v7429_v43 }
 0x18f   :  { %v664_v26 = vadd.f32 %v4860_v55, %v4780_v47  ;;  %v4781_v48 = vpop.f32.mrb[28].mxu0  ;;  %v4861_v58 = vpop.f32.mrb[28].mxu1  ;;  %v7499_v45 = vadd.s32 4294967295, %v7493_v10  ;;  %v7502_v47 = vadd.s32 24, %v7429_v43 }
 0x190   :  { %v4782_v60 = vpop.f32.mrb[29].mxu0  ;;  %v4862_v46 = vpop.f32.mrb[29].mxu1 }
 0x191   :  { %v7488_v8 = vpack.c.bf16 %v664_v26, %v659_v1  ;;  %v4783_v11 = vadd.f32 %v4782_v60, %v4781_v48  ;;  %v4863_v14 = vadd.f32 %v4862_v46, %v4861_v58  ;;  %8937 = vst [vmem:[#allocation8_spill] sm:$0xff] %v7499_v45  ;;  %v7507_v26 = vadd.s32 4294967295, %v7496_v40 }
 0x192   :  { %v7510_v48 = vadd.s32 32, %v7429_v43  ;;  %vm694_vm1 = vcmp.eq.s32.totalorder %v7289_v2, %v7499_v45  ;;  %v7517_v58 = vadd.s32 4294967295, %v7502_v47  ;;  %v7520_v60 = vadd.s32 40, %v7429_v43 }
 0x193   :  { %v669_v19 = vadd.f32 %v4863_v14, %v4783_v11  ;;  %v4784_v20 = vpop.f32.mrb[30].mxu0  ;;  %v4864_v23 = vpop.f32.mrb[30].mxu1  ;;  %6260 = vmatprep.subr.bf16.mxu0 %v7488_v8  ;;  %8938 = vst [vmem:[#allocation9_spill] sm:$0xff] %v7507_v26  ;;  %vm695_vm2 = vcmp.eq.s32.totalorder %v7289_v2, %v7507_v26  ;;  %v7529_v11 = vadd.s32 48, %v7429_v43  ;;  %v8943_v14 = vmov 1.0  }
 0x194   :  { %v4785_v29 = vpop.f32.mrb[31].mxu0  ;;  %v4865_v34 = vpop.f32.mrb[31].mxu1  ;;  %6262 = vmatpush3.bf16.msra.mxu0 %v7488_v8  ;;  %8939 = vst [vmem:[#allocation10_spill] sm:$0xff] %v7517_v58  ;;  %8940 = vst [vmem:[#allocation11_spill] sm:$0xff] %v7520_v60  ;;  %v7526_v46 = vadd.s32 4294967295, %v7510_v48  ;;  %vm696_vm3 = vcmp.eq.s32.totalorder %v7289_v2, %v7517_v58  ;;  %v7598_v58 = vadd.s32 88, %v7429_v43 }
 0x195   :  { %v4786_v44 = vadd.f32 %v4785_v29, %v4784_v20  ;;  %v4866_v39 = vadd.f32 %v4865_v34, %v4864_v23  ;;  %8942 = vst [vmem:[#allocation13_spill] sm:$0xff] %v7529_v11  ;;  %v7546_v20 = vadd.s32 56, %v7429_v43  ;;  %v7552_v23 = vadd.s32 4294967295, %v7529_v11 }
 0x196   :  { %8941 = vst [vmem:[#allocation12_spill] sm:$0xff] %v7526_v46  ;;  %vm697_vm4 = vcmp.eq.s32.totalorder %v7289_v2, %v7526_v46  ;;  %v7555_v29 = vadd.s32 64, %v7429_v43  ;;  %8953 = vst [vmem:[#allocation23_spill] sm:$0xff] %v7598_v58  ;;  %v7621_v26 = vadd.s32 4294967295, %v7598_v58  ;;  %v7624_v45 = vadd.s32 104, %v7429_v43 }
 0x197   :  { %v674_v1 = vadd.f32 %v4866_v39, %v4786_v44  ;;  %8945 = vst [vmem:[#allocation15_spill] sm:$0xff] %v7546_v20  ;;  %8946 = vst [vmem:[#allocation16_spill] sm:$0xff] %v7552_v23  ;;  %v7569_v34 = vadd.s32 4294967295, %v7546_v20  ;;  %v7572_v44 = vadd.s32 72, %v7429_v43  ;;  %vm699_vm6 = vcmp.eq.s32.totalorder %v7289_v2, %v7552_v23 }
 0x198   :  { %8947 = vst [vmem:[#allocation17_spill] sm:$0xff] %v7555_v29  ;;  %v7578_v39 = vadd.s32 4294967295, %v7555_v29  ;;  %v7607_v23 = vadd.s32 96, %v7429_v43  ;;  %8956 = vst [vmem:[#allocation26_spill] sm:$0xff] %v7624_v45  ;;  %vm8931_vm11 = vcmp.eq.s32.totalorder %v7289_v2, %v7621_v26  ;;  %v7647_v5 = vadd.s32 4294967295, %v7624_v45 }
 0x199   :  { %v7504_v55 = vpack.c.bf16 %v674_v1, %v669_v19  ;;  %v7543_v19 = vadd.s32 4294967295, %v7520_v60  ;;  %8948 = vst [vmem:[#allocation18_spill] sm:$0xff] %v7569_v34  ;;  %8949 = vst [vmem:[#allocation19_spill] sm:$0xff] %v7572_v44  ;;  %v7581_v1 = vadd.s32 80, %v7429_v43  ;;  %vm700_vm7 = vcmp.eq.s32.totalorder %v7289_v2, %v7569_v34 }
 0x19a   :  { %8950 = vst [vmem:[#allocation20_spill] sm:$0xff] %v7578_v39  ;;  %v7595_v46 = vadd.s32 4294967295, %v7572_v44  ;;  %vm701_vm8 = vcmp.eq.s32.totalorder %v7289_v2, %v7578_v39  ;;  %8955 = vst [vmem:[#allocation25_spill] sm:$0xff] %v7607_v23  ;;  %v7630_v34 = vadd.s32 4294967295, %v7607_v23  ;;  %v7633_v39 = vadd.s32 112, %v7429_v43 }
 0x19b   :  { %6264 = vmatprep.subr.bf16.mxu0 %v7504_v55  ;;  %8944 = vst [vmem:[#allocation14_spill] sm:$0xff] %v7543_v19  ;;  %vm698_vm5 = vcmp.eq.s32.totalorder %v7289_v2, %v7543_v19  ;;  %8951 = vst [vmem:[#allocation21_spill] sm:$0xff] %v7581_v1  ;;  %v7604_v19 = vadd.s32 4294967295, %v7581_v1  ;;  %vm8869_vm13 = vcmp.eq.s32.totalorder %v7289_v2, %v7647_v5 }
 0x19c   :  { %6266 = vmatpush3.bf16.msra.mxu0 %v7504_v55  ;;  %8952 = vst [vmem:[#allocation22_spill] sm:$0xff] %v7595_v46  ;;  %vm8933_vm9 = vcmp.eq.s32.totalorder %v7289_v2, %v7595_v46  ;;  %8957 = vst [vmem:[#allocation27_spill] sm:$0xff] %v7633_v39  ;;  %vm8867_vm12 = vcmp.eq.s32.totalorder %v7289_v2, %v7630_v34  ;;  %v7656_v46 = vadd.s32 4294967295, %v7633_v39 }
 0x19d   :  { %6284 = vmatprep.subr.bf16.mxu0 %v7440_v27  ;;  %8954 = vst [vmem:[#allocation24_spill] sm:$0xff] %v7604_v19  ;;  %vm8932_vm10 = vcmp.eq.s32.totalorder %v7289_v2, %v7604_v19  ;;  %v7670_v19 = vadd.s32 4294967295, %v7650_v61 }
 0x19e   :  { %vm8868_vm14 = vcmp.eq.s32.totalorder %v7289_v2, %v7656_v46 }
 0x19f   :  { %5476 = vmatmul.mubr.msk.f32.vlgmr.msra.gmra.mrb[32].mxu0 %vm694_vm1, %v8943_v14  ;;  %vm8871_vm15 = vcmp.eq.s32.totalorder %v7289_v2, %v7670_v19 }
 0x1a0   :  { %6286 = vmatpush3.bf16.msra.mxu0 %v7440_v27  ;;  %5478 = vmatprep.mubr.msk.f32.mxu0 %vm695_vm2, %v8943_v14 }
 0x1a1   :  { %6288 = vmatprep.subr.bf16.mxu0 %v7444_v59 }
 0x1a3   :  { %5479 = vmatmul.mubr.msk.f32.gmra.mrb[34].mxu0 %vm696_vm3, %v8943_v14 }
 0x1a4   :  { %6290 = vmatpush3.bf16.msra.mxu0 %v7444_v59  ;;  %5481 = vmatprep.mubr.msk.f32.mxu0 %vm697_vm4, %v8943_v14 }
 0x1a5   :  { %6292 = vmatprep.subr.bf16.mxu0 %v7448_v31 }
 0x1a7   :  { %5482 = vmatmul.mubr.msk.f32.gmra.mrb[36].mxu0 %vm698_vm5, %v8943_v14 }
 0x1a8   :  { %6294 = vmatpush3.bf16.msra.mxu0 %v7448_v31  ;;  %5484 = vmatprep.mubr.msk.f32.mxu0 %vm699_vm6, %v8943_v14 }
 0x1a9   :  { %6296 = vmatprep.subr.bf16.mxu0 %v7452_v12 }
 0x1ab   :  { %5485 = vmatmul.mubr.msk.f32.gmra.mrb[38].mxu0 %vm700_vm7, %v8943_v14 }
 0x1ac   :  { %6298 = vmatpush3.bf16.msra.mxu0 %v7452_v12  ;;  %5487 = vmatprep.mubr.msk.f32.mxu0 %vm701_vm8, %v8943_v14 }
 0x1ad   :  { %6300 = vmatprep.subr.bf16.mxu0 %v7474_v30 }
 0x1af   :  { %5488 = vmatmul.mubr.msk.f32.gmra.mrb[40].mxu0 %vm8933_vm9, %v8943_v14 }
 0x1b0   :  { %6302 = vmatpush3.bf16.msra.mxu0 %v7474_v30  ;;  %5490 = vmatprep.mubr.msk.f32.mxu0 %vm8932_vm10, %v8943_v14 }
 0x1b1   :  { %6304 = vmatprep.subr.bf16.mxu0 %v7484_v25 }
 0x1b3   :  { %5491 = vmatmul.mubr.msk.f32.gmra.mrb[42].mxu0 %vm8931_vm11, %v8943_v14 }
 0x1b4   :  { %6306 = vmatpush3.bf16.msra.mxu0 %v7484_v25  ;;  %5493 = vmatprep.mubr.msk.f32.mxu0 %vm8867_vm12, %v8943_v14  ;;  %vm8870_vm12 = vcmp.eq.s32.totalorder %v7289_v2, %v7429_v43 }
 0x1b5   :  { %6308 = vmatprep.subr.bf16.mxu0 %v7488_v8 }
 0x1b7   :  { %5494 = vmatmul.mubr.msk.f32.gmra.mrb[44].mxu0 %vm8869_vm13, %v8943_v14  ;;  %vm8872_vm13 = vcmp.eq.s32.totalorder %v7289_v2, %v7496_v40 }
 0x1b8   :  { %6310 = vmatpush3.bf16.msra.mxu0 %v7488_v8  ;;  %5496 = vmatprep.mubr.msk.f32.mxu0 %vm8868_vm14, %v8943_v14  ;;  %vm8873_vm14 = vcmp.eq.s32.totalorder %v7289_v2, %v7493_v10 }
 0x1b9   :  { %6312 = vmatprep.subr.bf16.mxu0 %v7504_v55 }
 0x1bb   :  { %5497 = vmatmul.mubr.msk.f32.gmra.mrb[46].mxu0 %vm8871_vm15, %v8943_v14  ;;  %vm8874_vm15 = vcmp.eq.s32.totalorder %v7289_v2, %v7510_v48 }
 0x1bc   :  { %6314 = vmatpush3.bf16.msra.mxu0 %v7504_v55  ;;  %5571 = vmatprep.mubr.msk.f32.mxu0 %vm8870_vm12, %v8943_v14  ;;  %vm8875_vm12 = vcmp.eq.s32.totalorder %v7289_v2, %v7502_v47 }
 0x1bd   :  { %6332 = vmatprep.subr.bf16.mxu0 %v7440_v27 }
 0x1bf   :  { %5572 = vmatmul.mubr.msk.f32.vlgmr.msra.gmra.mrb[48].mxu0 %vm8873_vm14, %v8943_v14  ;;  %vm8876_vm14 = vcmp.eq.s32.totalorder %v7289_v2, %v7529_v11 }
 0x1c0   :  { %6334 = vmatpush3.bf16.msra.mxu0 %v7440_v27  ;;  %5574 = vmatprep.mubr.msk.f32.mxu0 %vm8872_vm13, %v8943_v14  ;;  %vm8877_vm13 = vcmp.eq.s32.totalorder %v7289_v2, %v7520_v60  ;;  %v7788_v27 = vadd.s32 1, %v7429_v43 }
 0x1c1   :  { %6336 = vmatprep.subr.bf16.mxu0 %v7444_v59 }
 0x1c2   :  { %8959 = vst [vmem:[#allocation29_spill] sm:$0xff] %v7788_v27 }
 0x1c3   :  { %5575 = vmatmul.mubr.msk.f32.gmra.mrb[50].mxu0 %vm8875_vm12, %v8943_v14  ;;  %vm8878_vm12 = vcmp.eq.s32.totalorder %v7289_v2, %v7555_v29 }
 0x1c4   :  { %6338 = vmatpush3.bf16.msra.mxu0 %v7444_v59  ;;  %5577 = vmatprep.mubr.msk.f32.mxu0 %vm8874_vm15, %v8943_v14  ;;  %vm8879_vm15 = vcmp.eq.s32.totalorder %v7289_v2, %v7546_v20  ;;  %v7802_v59 = vadd.s32 1, %v7493_v10 }
 0x1c5   :  { %6340 = vmatprep.subr.bf16.mxu0 %v7448_v31 }
 0x1c6   :  { %8960 = vst [vmem:[#allocation30_spill] sm:$0xff] %v7802_v59 }
 0x1c7   :  { %5578 = vmatmul.mubr.msk.f32.gmra.mrb[52].mxu0 %vm8877_vm13, %v8943_v14  ;;  %vm8880_vm13 = vcmp.eq.s32.totalorder %v7289_v2, %v7581_v1 }
 0x1c8   :  { %6342 = vmatpush3.bf16.msra.mxu0 %v7448_v31  ;;  %5580 = vmatprep.mubr.msk.f32.mxu0 %vm8876_vm14, %v8943_v14  ;;  %vm8881_vm14 = vcmp.eq.s32.totalorder %v7289_v2, %v7572_v44  ;;  %v7808_v31 = vadd.s32 1, %v7496_v40 }
 0x1c9   :  { %6344 = vmatprep.subr.bf16.mxu0 %v7452_v12 }
 0x1ca   :  { %8961 = vst [vmem:[#allocation31_spill] sm:$0xff] %v7808_v31 }
 0x1cb   :  { %5581 = vmatmul.mubr.msk.f32.gmra.mrb[54].mxu0 %vm8879_vm15, %v8943_v14  ;;  %vm8882_vm15 = vcmp.eq.s32.totalorder %v7289_v2, %v7607_v23 }
 0x1cc   :  { %6346 = vmatpush3.bf16.msra.mxu0 %v7452_v12  ;;  %5583 = vmatprep.mubr.msk.f32.mxu0 %vm8878_vm12, %v8943_v14  ;;  %vm8883_vm12 = vcmp.eq.s32.totalorder %v7289_v2, %v7598_v58  ;;  %v7822_v12 = vadd.s32 1, %v7502_v47 }
 0x1cd   :  { %6348 = vmatprep.subr.bf16.mxu0 %v7474_v30 }
 0x1ce   :  { %8962 = vst [vmem:[#allocation32_spill] sm:$0xff] %v7822_v12 }
 0x1cf   :  { %5584 = vmatmul.mubr.msk.f32.gmra.mrb[56].mxu0 %vm8881_vm14, %v8943_v14  ;;  %vm8884_vm14 = vcmp.eq.s32.totalorder %v7289_v2, %v7633_v39 }
 0x1d0   :  { %6350 = vmatpush3.bf16.msra.mxu0 %v7474_v30  ;;  %5586 = vmatprep.mubr.msk.f32.mxu0 %vm8880_vm13, %v8943_v14  ;;  %vm8885_vm13 = vcmp.eq.s32.totalorder %v7289_v2, %v7624_v45  ;;  %v7827_v30 = vadd.s32 1, %v7510_v48 }
 0x1d1   :  { %6352 = vmatprep.subr.bf16.mxu0 %v7484_v25 }
 0x1d2   :  { %8963 = vst [vmem:[#allocation33_spill] sm:$0xff] %v7827_v30 }
 0x1d3   :  { %5587 = vmatmul.mubr.msk.f32.gmra.mrb[58].mxu0 %vm8883_vm12, %v8943_v14  ;;  %vm8886_vm12 = vcmp.eq.s32.totalorder %v7289_v2, %v7788_v27 }
 0x1d4   :  { %6354 = vmatpush3.bf16.msra.mxu0 %v7484_v25  ;;  %5589 = vmatprep.mubr.msk.f32.mxu0 %vm8882_vm15, %v8943_v14  ;;  %vm8887_vm15 = vcmp.eq.s32.totalorder %v7289_v2, %v7650_v61  ;;  %v7840_v25 = vadd.s32 1, %v7520_v60 }
 0x1d5   :  { %6356 = vmatprep.subr.bf16.mxu0 %v7488_v8 }
 0x1d6   :  { %8964 = vst [vmem:[#allocation34_spill] sm:$0xff] %v7840_v25 }
 0x1d7   :  { %5590 = vmatmul.mubr.msk.f32.gmra.mrb[60].mxu0 %vm8885_vm13, %v8943_v14  ;;  %vm8888_vm13 = vcmp.eq.s32.totalorder %v7289_v2, %v7808_v31  ;;  %v7863_v31 = vadd.s32 1, %v7555_v29 }
 0x1d8   :  { %6358 = vmatpush3.bf16.msra.mxu0 %v7488_v8  ;;  %5592 = vmatprep.mubr.msk.f32.mxu0 %vm8884_vm14, %v8943_v14  ;;  %vm8889_vm14 = vcmp.eq.s32.totalorder %v7289_v2, %v7802_v59  ;;  %v7845_v8 = vadd.s32 1, %v7529_v11 }
 0x1d9   :  { %6360 = vmatprep.subr.bf16.mxu0 %v7504_v55  ;;  %8967 = vst [vmem:[#allocation37_spill] sm:$0xff] %v7863_v31 }
 0x1da   :  { %8965 = vst [vmem:[#allocation35_spill] sm:$0xff] %v7845_v8 }
 0x1db   :  { %5593 = vmatmul.mubr.msk.f32.gmra.mrb[62].mxu0 %vm8887_vm15, %v8943_v14  ;;  %vm8891_vm15 = vcmp.eq.s32.totalorder %v7289_v2, %v7827_v30  ;;  %v7876_v30 = vadd.s32 1, %v7572_v44 }
 0x1dc   :  { %6362 = vmatpush3.bf16.msra.mxu0 %v7504_v55  ;;  %5667 = vmatprep.mubr.msk.f32.mxu0 %vm8886_vm12, %v8943_v14  ;;  %vm8893_vm12 = vcmp.eq.s32.totalorder %v7289_v2, %v7822_v12  ;;  %v7858_v55 = vadd.s32 1, %v7546_v20  ;;  %v7881_v12 = vadd.s32 1, %v7581_v1 }
 0x1dd   :  { %8968 = vst [vmem:[#allocation38_spill] sm:$0xff] %v7876_v30 }
 0x1de   :  { %8966 = vst [vmem:[#allocation36_spill] sm:$0xff] %v7858_v55  ;;  %8969 = vst [vmem:[#allocation39_spill] sm:$0xff] %v7881_v12 }
 0x1df   :  { %5668 = vmatmul.mubr.msk.f32.vlgmr.msra.gmra.mrb[64].mxu0 %vm8889_vm14, %v8943_v14  ;;  %vm8895_vm14 = vcmp.eq.s32.totalorder %v7289_v2, %v7845_v8  ;;  %v7894_v8 = vadd.s32 1, %v7598_v58 }
 0x1e0   :  { %5670 = vmatprep.mubr.msk.f32.mxu0 %vm8888_vm13, %v8943_v14  ;;  %vm8897_vm13 = vcmp.eq.s32.totalorder %v7289_v2, %v7840_v25  ;;  %v7899_v25 = vadd.s32 1, %v7607_v23 }
 0x1e1   :  { %8970 = vst [vmem:[#allocation40_spill] sm:$0xff] %v7894_v8 }
 0x1e2   :  { %8971 = vst [vmem:[#allocation41_spill] sm:$0xff] %v7899_v25 }
 0x1e3   :  { %5671 = vmatmul.mubr.msk.f32.gmra.mrb[66].mxu0 %vm8893_vm12, %v8943_v14  ;;  %vm8899_vm12 = vcmp.eq.s32.totalorder %v7289_v2, %v7863_v31  ;;  %v7912_v31 = vadd.s32 1, %v7624_v45 }
 0x1e4   :  { %5673 = vmatprep.mubr.msk.f32.mxu0 %vm8891_vm15, %v8943_v14  ;;  %vm8901_vm15 = vcmp.eq.s32.totalorder %v7289_v2, %v7858_v55  ;;  %v7917_v55 = vadd.s32 1, %v7633_v39 }
 0x1e5   :  { %8972 = vst [vmem:[#allocation42_spill] sm:$0xff] %v7912_v31 }
 0x1e6   :  { %8973 = vst [vmem:[#allocation43_spill] sm:$0xff] %v7917_v55 }
 0x1e7   :  { %5674 = vmatmul.mubr.msk.f32.gmra.mrb[68].mxu0 %vm8897_vm13, %v8943_v14  ;;  %vm8903_vm13 = vcmp.eq.s32.totalorder %v7289_v2, %v7881_v12  ;;  %v7930_v12 = vadd.s32 1, %v7650_v61 }
 0x1e8   :  { %5676 = vmatprep.mubr.msk.f32.mxu0 %vm8895_vm14, %v8943_v14  ;;  %vm8905_vm14 = vcmp.eq.s32.totalorder %v7289_v2, %v7876_v30 }
 0x1e9   :  { %8974 = vst [vmem:[#allocation44_spill] sm:$0xff] %v7930_v12 }
 0x1eb   :  { %5677 = vmatmul.mubr.msk.f32.gmra.mrb[70].mxu0 %vm8901_vm15, %v8943_v14  ;;  %vm8906_vm15 = vcmp.eq.s32.totalorder %v7289_v2, %v7899_v25  ;;  %v4387_v25 = vld [vmem:[%s8843_s2 + $0x40] sm:$0xff] }
 0x1ec   :  { %5679 = vmatprep.mubr.msk.f32.mxu0 %vm8899_vm12, %v8943_v14  ;;  %vm8930_vm12 = vcmp.eq.s32.totalorder %v7289_v2, %v7894_v8  ;;  %v4388_v8 = vld [vmem:[%s8843_s2 + $0x48] sm:$0xff] }
 0x1ed   :  { %v6315_v30 = vpack.c.bf16 %v4388_v8, %v4387_v25  ;;  %v4391_v25 = vld [vmem:[%s8843_s2 + $0x60] sm:$0xff]  ;;  %v4392_v8 = vld [vmem:[%s8843_s2 + $0x68] sm:$0xff] }
 0x1ee   :  { %v6323_v45 = vpack.c.bf16 %v4392_v8, %v4391_v25  ;;  %v4444_v25 = vld [vmem:[%s8843_s2 + $0x88] sm:$0xff] }
 0x1ef   :  { %5680 = vmatmul.mubr.msk.f32.gmra.mrb[72].mxu0 %vm8905_vm14, %v8943_v14  ;;  %vm8912_vm14 = vcmp.eq.s32.totalorder %v7289_v2, %v7917_v55  ;;  %6316 = vmatprep.subr.bf16.mxu1 %v6315_v30  ;;  %v4389_v55 = vld [vmem:[%s8843_s2 + $0x50] sm:$0xff] }
 0x1f0   :  { %5682 = vmatprep.mubr.msk.f32.mxu0 %vm8903_vm13, %v8943_v14  ;;  %vm8929_vm13 = vcmp.eq.s32.totalorder %v7289_v2, %v7912_v31  ;;  %v4390_v31 = vld [vmem:[%s8843_s2 + $0x58] sm:$0xff] }
 0x1f1   :  { %v6319_v61 = vpack.c.bf16 %v4390_v31, %v4389_v55  ;;  %v4394_v31 = vld [vmem:[%s8843_s2 + $0x78] sm:$0xff] }
 0x1f3   :  { %5683 = vmatmul.mubr.msk.f32.gmra.mrb[74].mxu0 %vm8930_vm12, %v8943_v14 }
 0x1f4   :  { %5685 = vmatprep.mubr.msk.f32.mxu0 %vm8906_vm15, %v8943_v14  ;;  %vm8928_vm15 = vcmp.eq.s32.totalorder %v7289_v2, %v7930_v12 }
 0x1f7   :  { %5686 = vmatmul.mubr.msk.f32.gmra.mrb[76].mxu0 %vm8929_vm13, %v8943_v14 }
 0x1f8   :  { %5688 = vmatprep.mubr.msk.f32.mxu0 %vm8912_vm14, %v8943_v14  ;;  %vm8927_vm14 = vcmask 523264  }
 0x1fb   :  { %5689 = vmatmul.mubr.msk.f32.gmra.mrb[78].mxu0 %vm8928_vm15, %v8943_v14 }
 0x272   :  { %v5477_v59 = vpop.f32.mrb[32].mxu0 }
 0x273   :  { %v807_v27 = vpop.f32.mrb[33].mxu0 }
 0x274   :  { %5515 = vmatprep.mubr.msk.f32.mxu1 %vm8927_vm14, %v807_v27  ;;  %v4393_v27 = vld [vmem:[%s8843_s2 + $0x70] sm:$0xff] }
 0x275   :  { %5516 = vmatmul.mubr.msk.f32.vlgmr.msra.gmra.mrb[32].mxu1 %vm8927_vm14, %v5477_v59 }
 0x276   :  { %v5480_v12 = vpop.f32.mrb[34].mxu0  ;;  %6318 = vmatpush3.bf16.msra.mxu1 %v6315_v30  ;;  %v6327_v30 = vpack.c.bf16 %v4394_v31, %v4393_v27 }
 0x277   :  { %v817_v39 = vpop.f32.mrb[35].mxu0  ;;  %6320 = vmatprep.subr.bf16.mxu1 %v6319_v61 }
 0x278   :  { %5518 = vmatprep.mubr.msk.f32.mxu1 %vm8927_vm14, %v817_v39  ;;  %v4443_v39 = vld [vmem:[%s8843_s2 + $0x80] sm:$0xff] }
 0x279   :  { %5519 = vmatmul.mubr.msk.f32.gmra.mrb[34].mxu1 %vm8927_vm14, %v5480_v12 }
 0x27a   :  { %v5483_v55 = vpop.f32.mrb[36].mxu0  ;;  %6322 = vmatpush3.bf16.msra.mxu1 %v6319_v61  ;;  %v6363_v61 = vpack.c.bf16 %v4444_v25, %v4443_v39  ;;  %v4445_v25 = vld [vmem:[%s8843_s2 + $0x90] sm:$0xff] }
 0x27b   :  { %v827_v59 = vpop.f32.mrb[37].mxu0  ;;  %6324 = vmatprep.subr.bf16.mxu1 %v6323_v45 }
 0x27c   :  { %5521 = vmatprep.mubr.msk.f32.mxu1 %vm8927_vm14, %v827_v59 }
 0x27d   :  { %5522 = vmatmul.mubr.msk.f32.gmra.mrb[36].mxu1 %vm8927_vm14, %v5483_v55 }
 0x27e   :  { %v5486_v8 = vpop.f32.mrb[38].mxu0  ;;  %6326 = vmatpush3.bf16.msra.mxu1 %v6323_v45 }
 0x27f   :  { %v837_v12 = vpop.f32.mrb[39].mxu0  ;;  %6328 = vmatprep.subr.bf16.mxu1 %v6327_v30 }
 0x280   :  { %5524 = vmatprep.mubr.msk.f32.mxu1 %vm8927_vm14, %v837_v12 }
 0x281   :  { %5525 = vmatmul.mubr.msk.f32.gmra.mrb[38].mxu1 %vm8927_vm14, %v5486_v8 }
 0x282   :  { %v5489_v27 = vpop.f32.mrb[40].mxu0  ;;  %6330 = vmatpush3.bf16.msra.mxu1 %v6327_v30 }
 0x283   :  { %v847_v31 = vpop.f32.mrb[41].mxu0  ;;  %6364 = vmatprep.subr.bf16.mxu1 %v6363_v61 }
 0x284   :  { %5527 = vmatprep.mubr.msk.f32.mxu1 %vm8927_vm14, %v847_v31  ;;  %v4447_v31 = vld [vmem:[%s8843_s2 + $0xa0] sm:$0xff] }
 0x285   :  { %5528 = vmatmul.mubr.msk.f32.gmra.mrb[40].mxu1 %vm8927_vm14, %v5489_v27 }
 0x286   :  { %v5492_v59 = vpop.f32.mrb[42].mxu0 }
 0x287   :  { %v857_v23 = vpop.f32.mrb[43].mxu0 }
 0x288   :  { %5530 = vmatprep.mubr.msk.f32.mxu1 %vm8927_vm14, %v857_v23  ;;  %v4446_v23 = vld [vmem:[%s8843_s2 + $0x98] sm:$0xff] }
 0x289   :  { %5531 = vmatmul.mubr.msk.f32.gmra.mrb[42].mxu1 %vm8927_vm14, %v5492_v59  ;;  %v6367_v27 = vpack.c.bf16 %v4446_v23, %v4445_v25  ;;  %v4448_v59 = vld [vmem:[%s8843_s2 + $0xa8] sm:$0xff]  ;;  %v4450_v25 = vld [vmem:[%s8843_s2 + $0xb8] sm:$0xff] }
 0x28a   :  { %v5495_v45 = vpop.f32.mrb[44].mxu0 }
 0x28b   :  { %v867_v55 = vpop.f32.mrb[45].mxu0 }
 0x28c   :  { %5533 = vmatprep.mubr.msk.f32.mxu1 %vm8927_vm14, %v867_v55 }
 0x28d   :  { %5534 = vmatmul.mubr.msk.f32.gmra.mrb[44].mxu1 %vm8927_vm14, %v5495_v45 }
 0x28e   :  { %v5498_v39 = vpop.f32.mrb[46].mxu0 }
 0x28f   :  { %v877_v30 = vpop.f32.mrb[47].mxu0 }
 0x290   :  { %5536 = vmatprep.mubr.msk.f32.mxu1 %vm8927_vm14, %v877_v30  ;;  %v4449_v30 = vld [vmem:[%s8843_s2 + $0xb0] sm:$0xff] }
 0x291   :  { %5537 = vmatmul.mubr.msk.f32.gmra.mrb[46].mxu1 %vm8927_vm14, %v5498_v39  ;;  %v6371_v39 = vpack.c.bf16 %v4448_v59, %v4447_v31 }
 0x292   :  { %v5573_v8 = vpop.f32.mrb[48].mxu0 }
 0x293   :  { %v1224_v12 = vpop.f32.mrb[49].mxu0 }
 0x294   :  { %5611 = vmatprep.mubr.msk.f32.mxu1 %vm8927_vm14, %v1224_v12 }
 0x295   :  { %5612 = vmatmul.mubr.msk.f32.vlgmr.msra.gmra.mrb[32].mxu1 %vm8927_vm14, %v5573_v8 }
 0x296   :  { %v5576_v45 = vpop.f32.mrb[50].mxu0  ;;  %6366 = vmatpush3.bf16.msra.mxu1 %v6363_v61  ;;  %v6375_v61 = vpack.c.bf16 %v4450_v25, %v4449_v30 }
 0x297   :  { %v1234_v55 = vpop.f32.mrb[51].mxu0  ;;  %6368 = vmatprep.subr.bf16.mxu1 %v6367_v27 }
 0x298   :  { %5614 = vmatprep.mubr.msk.f32.mxu1 %vm8927_vm14, %v1234_v55 }
 0x299   :  { %5615 = vmatmul.mubr.msk.f32.gmra.mrb[34].mxu1 %vm8927_vm14, %v5576_v45 }
 0x29a   :  { %v5579_v23 = vpop.f32.mrb[52].mxu0  ;;  %6370 = vmatpush3.bf16.msra.mxu1 %v6367_v27 }
 0x29b   :  { %v1244_v8 = vpop.f32.mrb[53].mxu0  ;;  %6372 = vmatprep.subr.bf16.mxu1 %v6371_v39 }
 0x29c   :  { %5617 = vmatprep.mubr.msk.f32.mxu1 %vm8927_vm14, %v1244_v8 }
 0x29d   :  { %5618 = vmatmul.mubr.msk.f32.gmra.mrb[36].mxu1 %vm8927_vm14, %v5579_v23 }
 0x29e   :  { %v5582_v12 = vpop.f32.mrb[54].mxu0  ;;  %6374 = vmatpush3.bf16.msra.mxu1 %v6371_v39 }
 0x29f   :  { %v1254_v31 = vpop.f32.mrb[55].mxu0  ;;  %6376 = vmatprep.subr.bf16.mxu1 %v6375_v61 }
 0x2a0   :  { %5620 = vmatprep.mubr.msk.f32.mxu1 %vm8927_vm14, %v1254_v31 }
 0x2a1   :  { %5621 = vmatmul.mubr.msk.f32.gmra.mrb[38].mxu1 %vm8927_vm14, %v5582_v12 }
 0x2a2   :  { %v5585_v59 = vpop.f32.mrb[56].mxu0  ;;  %6378 = vmatpush3.bf16.msra.mxu1 %v6375_v61 }
 0x2a3   :  { %v1264_v45 = vpop.f32.mrb[57].mxu0 }
 0x2a4   :  { %5623 = vmatprep.mubr.msk.f32.mxu1 %vm8927_vm14, %v1264_v45 }
 0x2a5   :  { %5624 = vmatmul.mubr.msk.f32.gmra.mrb[40].mxu1 %vm8927_vm14, %v5585_v59 }
 0x2a6   :  { %v5588_v27 = vpop.f32.mrb[58].mxu0 }
 0x2a7   :  { %v1274_v55 = vpop.f32.mrb[59].mxu0 }
 0x2a8   :  { %5626 = vmatprep.mubr.msk.f32.mxu1 %vm8927_vm14, %v1274_v55 }
 0x2a9   :  { %5627 = vmatmul.mubr.msk.f32.gmra.mrb[42].mxu1 %vm8927_vm14, %v5588_v27 }
 0x2aa   :  { %v5591_v39 = vpop.f32.mrb[60].mxu0 }
 0x2ab   :  { %v1284_v30 = vpop.f32.mrb[61].mxu0 }
 0x2ac   :  { %5629 = vmatprep.mubr.msk.f32.mxu1 %vm8927_vm14, %v1284_v30 }
 0x2ad   :  { %5630 = vmatmul.mubr.msk.f32.gmra.mrb[44].mxu1 %vm8927_vm14, %v5591_v39 }
 0x2ae   :  { %v5594_v25 = vpop.f32.mrb[62].mxu0 }
 0x2af   :  { %v1294_v23 = vpop.f32.mrb[63].mxu0 }
 0x2b0   :  { %5632 = vmatprep.mubr.msk.f32.mxu1 %vm8927_vm14, %v1294_v23 }
 0x2b1   :  { %5633 = vmatmul.mubr.msk.f32.gmra.mrb[46].mxu1 %vm8927_vm14, %v5594_v25 }
 0x2b2   :  { %v5669_v8 = vpop.f32.mrb[64].mxu0 }
 0x2b3   :  { %v1651_v61 = vpop.f32.mrb[65].mxu0 }
 0x2b4   :  { %5707 = vmatprep.mubr.msk.f32.mxu1 %vm8927_vm14, %v1651_v61 }
 0x2b5   :  { %5708 = vmatmul.mubr.msk.f32.vlgmr.msra.gmra.mrb[32].mxu1 %vm8927_vm14, %v5669_v8 }
 0x2b6   :  { %v5672_v12 = vpop.f32.mrb[66].mxu0 }
 0x2b7   :  { %v1661_v31 = vpop.f32.mrb[67].mxu0 }
 0x2b8   :  { %5710 = vmatprep.mubr.msk.f32.mxu1 %vm8927_vm14, %v1661_v31 }
 0x2b9   :  { %5711 = vmatmul.mubr.msk.f32.gmra.mrb[34].mxu1 %vm8927_vm14, %v5672_v12 }
 0x2ba   :  { %v5675_v59 = vpop.f32.mrb[68].mxu0 }
 0x2bb   :  { %v1671_v45 = vpop.f32.mrb[69].mxu0 }
 0x2bc   :  { %5713 = vmatprep.mubr.msk.f32.mxu1 %vm8927_vm14, %v1671_v45  ;;  %v8050_v45 = vld [vmem:[%s8844_s3] ss:$0 sm:$0xff] }
 0x2bd   :  { %5714 = vmatmul.mubr.msk.f32.gmra.mrb[36].mxu1 %vm8927_vm14, %v5675_v59  ;;  %v119_v59 = vld [vmem:[%s8845_s4] sm:$0xff] }
 0x2be   :  { %v5678_v27 = vpop.f32.mrb[70].mxu0  ;;  %5763 = vmatprep.mubr.f32.mxu0 %v119_v59 }
 0x2bf   :  { %v1681_v55 = vpop.f32.mrb[71].mxu0 }
 0x2c0   :  { %5716 = vmatprep.mubr.msk.f32.mxu1 %vm8927_vm14, %v1681_v55 }
 0x2c1   :  { %5717 = vmatmul.mubr.msk.f32.gmra.mrb[38].mxu1 %vm8927_vm14, %v5678_v27 }
 0x2c2   :  { %v5681_v39 = vpop.f32.mrb[72].mxu0 }
 0x2c3   :  { %v1691_v30 = vpop.f32.mrb[73].mxu0 }
 0x2c4   :  { %5719 = vmatprep.mubr.msk.f32.mxu1 %vm8927_vm14, %v1691_v30 }
 0x2c5   :  { %5720 = vmatmul.mubr.msk.f32.gmra.mrb[40].mxu1 %vm8927_vm14, %v5681_v39 }
 0x2c6   :  { %v5684_v25 = vpop.f32.mrb[74].mxu0 }
 0x2c7   :  { %v1701_v23 = vpop.f32.mrb[75].mxu0 }
 0x2c8   :  { %5722 = vmatprep.mubr.msk.f32.mxu1 %vm8927_vm14, %v1701_v23 }
 0x2c9   :  { %5723 = vmatmul.mubr.msk.f32.gmra.mrb[42].mxu1 %vm8927_vm14, %v5684_v25 }
 0x2ca   :  { %v5687_v8 = vpop.f32.mrb[76].mxu0 }
 0x2cb   :  { %v1711_v61 = vpop.f32.mrb[77].mxu0 }
 0x2cc   :  { %5725 = vmatprep.mubr.msk.f32.mxu1 %vm8927_vm14, %v1711_v61 }
 0x2cd   :  { %5726 = vmatmul.mubr.msk.f32.gmra.mrb[44].mxu1 %vm8927_vm14, %v5687_v8 }
 0x2ce   :  { %v5690_v12 = vpop.f32.mrb[78].mxu0 }
 0x2cf   :  { %v1721_v31 = vpop.f32.mrb[79].mxu0 }
 0x2d0   :  { %5728 = vmatprep.mubr.msk.f32.mxu1 %vm8927_vm14, %v1721_v31 }
 0x2d1   :  { %5729 = vmatmul.mubr.msk.f32.gmra.mrb[46].mxu1 %vm8927_vm14, %v5690_v12 }
 0x388   :  { %v5709_v27 = vpop.f32.mrb[32].mxu1 }
 0x389   :  { %v6715_v55 = vadd.f32 %v5709_v27, %v8050_v45  ;;  %v1853_v39 = vpop.f32.mrb[33].mxu1 }
 0x38a   :  { %v6716_v30 = vadd.f32 %v8050_v45, %v1853_v39 }
 0x38b   :  { %v1949_v25 = vmax.f32 %v6715_v55, 0.0 }
 0x38c   :  { %v1948_v23 = vmax.f32 %v6716_v30, 0.0  ;;  %v5712_v8 = vpop.f32.mrb[34].mxu1 }
 0x38d   :  { %v6717_v61 = vadd.f32 %v5712_v8, %v8050_v45  ;;  %v1863_v12 = vpop.f32.mrb[35].mxu1 }
 0x38e   :  { %v6379_v31 = vpack.c.bf16 %v1949_v25, %v1948_v23  ;;  %v6718_v59 = vadd.f32 %v8050_v45, %v1863_v12 }
 0x38f   :  { %v1951_v58 = vmax.f32 %v6717_v61, 0.0 }
 0x390   :  { %v1950_v1 = vmax.f32 %v6718_v59, 0.0  ;;  %v5715_v44 = vpop.f32.mrb[36].mxu1  ;;  %6380 = vmatprep.subr.bf16.mxu0 %v6379_v31  ;;  %6412 = vmatprep.subr.bf16.mxu1 %v6379_v31 }
 0x391   :  { %v6719_v29 = vadd.f32 %v5715_v44, %v8050_v45  ;;  %v1873_v27 = vpop.f32.mrb[37].mxu1  ;;  %6382 = vmatpush3.bf16.xpose.msra.mxu0 %v6379_v31  ;;  %6414 = vmatpush3.bf16.msra.mxu1 %v6379_v31 }
 0x392   :  { %v6383_v39 = vpack.c.bf16 %v1951_v58, %v1950_v1  ;;  %v6720_v55 = vadd.f32 %v8050_v45, %v1873_v27 }
 0x393   :  { %v1953_v30 = vmax.f32 %v6719_v29, 0.0 }
 0x394   :  { %v1952_v20 = vmax.f32 %v6720_v55, 0.0  ;;  %v5718_v8 = vpop.f32.mrb[38].mxu1  ;;  %6384 = vmatprep.subr.bf16.mxu0 %v6383_v39  ;;  %6416 = vmatprep.subr.bf16.mxu1 %v6383_v39 }
 0x395   :  { %v6721_v25 = vadd.f32 %v5718_v8, %v8050_v45  ;;  %v1883_v23 = vpop.f32.mrb[39].mxu1  ;;  %6418 = vmatpush3.bf16.msra.mxu1 %v6383_v39 }
 0x396   :  { %v6387_v61 = vpack.c.bf16 %v1953_v30, %v1952_v20  ;;  %v6722_v12 = vadd.f32 %v8050_v45, %v1883_v23 }
 0x397   :  { %v1955_v59 = vmax.f32 %v6721_v25, 0.0 }
 0x398   :  { %v1954_v44 = vmax.f32 %v6722_v12, 0.0  ;;  %v5721_v11 = vpop.f32.mrb[40].mxu1  ;;  %6420 = vmatprep.subr.bf16.mxu1 %v6387_v61 }
 0x399   :  { %v6723_v58 = vadd.f32 %v5721_v11, %v8050_v45  ;;  %v1893_v1 = vpop.f32.mrb[41].mxu1  ;;  %6386 = vmatpush3.bf16.xpose.msra.mxu0 %v6383_v39  ;;  %6422 = vmatpush3.bf16.msra.mxu1 %v6387_v61 }
 0x39a   :  { %v6391_v29 = vpack.c.bf16 %v1955_v59, %v1954_v44  ;;  %v6724_v31 = vadd.f32 %v8050_v45, %v1893_v1  ;;  %6388 = vmatprep.subr.bf16.mxu0 %v6387_v61 }
 0x39b   :  { %v1957_v27 = vmax.f32 %v6723_v58, 0.0 }
 0x39c   :  { %v1956_v55 = vmax.f32 %v6724_v31, 0.0  ;;  %v5724_v8 = vpop.f32.mrb[42].mxu1  ;;  %6424 = vmatprep.subr.bf16.mxu1 %v6391_v29 }
 0x39d   :  { %v6725_v20 = vadd.f32 %v5724_v8, %v8050_v45  ;;  %v1903_v30 = vpop.f32.mrb[43].mxu1  ;;  %6426 = vmatpush3.bf16.msra.mxu1 %v6391_v29 }
 0x39e   :  { %v6395_v25 = vpack.c.bf16 %v1957_v27, %v1956_v55  ;;  %v6726_v23 = vadd.f32 %v8050_v45, %v1903_v30 }
 0x39f   :  { %v1959_v12 = vmax.f32 %v6725_v20, 0.0 }
 0x3a0   :  { %v1958_v11 = vmax.f32 %v6726_v23, 0.0  ;;  %v5727_v60 = vpop.f32.mrb[44].mxu1  ;;  %6428 = vmatprep.subr.bf16.mxu1 %v6395_v25 }
 0x3a1   :  { %v6727_v39 = vadd.f32 %v5727_v60, %v8050_v45  ;;  %v1913_v59 = vpop.f32.mrb[45].mxu1  ;;  %6390 = vmatpush3.bf16.xpose.msra.mxu0 %v6387_v61  ;;  %6430 = vmatpush3.bf16.msra.mxu1 %v6395_v25 }
 0x3a2   :  { %v6399_v44 = vpack.c.bf16 %v1959_v12, %v1958_v11  ;;  %v6728_v58 = vadd.f32 %v8050_v45, %v1913_v59  ;;  %6392 = vmatprep.subr.bf16.mxu0 %v6391_v29  ;;  %v2193_v59 = vld [vmem:[%s8841_s0 + $0x10] sm:$0xff] }
 0x3a3   :  { %v1961_v1 = vmax.f32 %v6727_v39, 0.0 }
 0x3a4   :  { %v1960_v31 = vmax.f32 %v6728_v58, 0.0  ;;  %v5730_v8 = vpop.f32.mrb[46].mxu1  ;;  %6432 = vmatprep.subr.bf16.mxu1 %v6399_v44  ;;  %v2201_v58 = vld [vmem:[%s8841_s0 + $0x50] sm:$0xff] }
 0x3a5   :  { %v6729_v27 = vadd.f32 %v5730_v8, %v8050_v45  ;;  %v1923_v55 = vpop.f32.mrb[47].mxu1  ;;  %6434 = vmatpush3.bf16.msra.mxu1 %v6399_v44 }
 0x3a6   :  { %v6403_v20 = vpack.c.bf16 %v1961_v1, %v1960_v31  ;;  %v6730_v30 = vadd.f32 %v8050_v45, %v1923_v55  ;;  %v120_v45 = vld [vmem:[%s8845_s4 + $0x8] sm:$0xff]  ;;  %v2203_v31 = vld [vmem:[%s8841_s0 + $0x60] sm:$0xff] }
 0x3a7   :  { %v1963_v23 = vmax.f32 %v6729_v27, 0.0  ;;  %v2205_v27 = vld [vmem:[%s8841_s0 + $0x70] sm:$0xff] }
 0x3a8   :  { %v1962_v60 = vmax.f32 %v6730_v30, 0.0  ;;  %6436 = vmatprep.subr.bf16.mxu1 %v6403_v20  ;;  %v2195_v30 = vld [vmem:[%s8841_s0 + $0x20] sm:$0xff] }
 0x3a9   :  { %6394 = vmatpush3.bf16.xpose.msra.mxu0 %v6391_v29  ;;  %6438 = vmatpush3.bf16.msra.mxu1 %v6403_v20  ;;  %v121_v29 = vld [vmem:[%s8845_s4 + $0x10] sm:$0xff] }
 0x3aa   :  { %v6407_v61 = vpack.c.bf16 %v1963_v23, %v1962_v60  ;;  %6396 = vmatprep.subr.bf16.mxu0 %v6395_v25  ;;  %v2196_v23 = vld [vmem:[%s8841_s0 + $0x28] sm:$0xff]  ;;  %v2197_v60 = vld [vmem:[%s8841_s0 + $0x30] sm:$0xff] }
 0x3ac   :  { %6440 = vmatprep.subr.bf16.mxu1 %v6407_v61 }
 0x3ad   :  { %6442 = vmatpush3.bf16.msra.mxu1 %v6407_v61 }
 0x3ae   :  { %6444 = vmatprep.subr.bf16.mxu1 %v6976_v9  ;;  %v122_v9 = vld [vmem:[%s8845_s4 + $0x18] sm:$0xff] }
 0x3b1   :  { %6398 = vmatpush3.bf16.xpose.msra.mxu0 %v6395_v25 }
 0x3b2   :  { %6400 = vmatprep.subr.bf16.mxu0 %v6399_v44 }
 0x3b9   :  { %6402 = vmatpush3.bf16.xpose.msra.mxu0 %v6399_v44  ;;  %v2192_v44 = vld [vmem:[%s8841_s0 + $0x8] sm:$0xff] }
 0x3ba   :  { %6404 = vmatprep.subr.bf16.mxu0 %v6403_v20 }
 0x3c1   :  { %6406 = vmatpush3.bf16.xpose.msra.mxu0 %v6403_v20  ;;  %v2194_v20 = vld [vmem:[%s8841_s0 + $0x18] sm:$0xff] }
 0x3c2   :  { %6408 = vmatprep.subr.bf16.mxu0 %v6407_v61 }
 0x3c9   :  { %6410 = vmatpush3.bf16.xpose.msra.mxu0 %v6407_v61  ;;  %v2198_v61 = vld [vmem:[%s8841_s0 + $0x38] sm:$0xff] }
 0x3ca   :  { %6476 = vmatprep.subr.bf16.mxu0 %v6987_v13  ;;  %v6899_v13 = vmov 1  }
 0x3cb   :  { %6818 = vset.pattern.permute.xlu1 %v6899_v13  ;;  %6819 = vset.pattern.permute.xlu0 %v6899_v13  ;;  %v2204_v13 = vld [vmem:[%s8841_s0 + $0x68] sm:$0xff] }
 0x3d0   :  { %5764 = vmatmul.mubr.f32.vlgmr.msra.gmra.mrb[80].mxu0 %v120_v45  ;;  %v2199_v45 = vld [vmem:[%s8841_s0 + $0x40] sm:$0xff] }
 0x3d1   :  { %5766 = vmatprep.mubr.f32.mxu0 %v121_v29  ;;  %6478 = vmatpush3.bf16.msra.mxu0 %v7001_v18  ;;  %v2200_v29 = vld [vmem:[%s8841_s0 + $0x48] sm:$0xff] }
 0x3d2   :  { %6480 = vmatprep.subr.bf16.mxu0 %v7030_v28 }
 0x3d4   :  { %5767 = vmatmul.mubr.f32.gmra.mrb[82].mxu0 %v122_v9  ;;  %v2202_v9 = vld [vmem:[%s8841_s0 + $0x58] sm:$0xff] }
 0x3d5   :  { %6482 = vmatpush3.bf16.msra.mxu0 %v7045_v33 }
 0x3d6   :  { %6484 = vmatprep.subr.bf16.mxu0 %v7060_v38 }
 0x3d9   :  { %6486 = vmatpush3.bf16.msra.mxu0 %v7096_v50  ;;  %v2191_v50 = vld [vmem:[%s8841_s0] sm:$0xff] }
 0x3da   :  { %6488 = vmatprep.subr.bf16.mxu0 %v7108_v54 }
 0x3dd   :  { %6490 = vmatpush3.bf16.msra.mxu0 %v7138_v0 }
 0x3de   :  { %6492 = vmatprep.subr.bf16.mxu0 %v7150_v4 }
 0x3e1   :  { %6494 = vmatpush3.bf16.msra.mxu0 %v7180_v16 }
 0x3e2   :  { %6496 = vmatprep.subr.bf16.mxu0 %v7192_v22 }
 0x3e5   :  { %6498 = vmatpush3.bf16.msra.mxu0 %v7222_v36 }
 0x3e6   :  { %6500 = vmatprep.subr.bf16.mxu0 %v7234_v42 }
 0x3e9   :  { %6502 = vmatpush3.bf16.msra.mxu0 %v7258_v52 }
 0x3ea   :  { %6504 = vmatprep.subr.bf16.mxu0 %v7267_v57 }
 0x3ed   :  { %6506 = vmatpush3.bf16.msra.mxu0 %v7282_v62 }
 0x4a3   :  { %v5765_v18 = vpop.f32.mrb[80].mxu0 }
 0x4a4   :  { %2051 = vmax.xlane.f32.xlu1 %v5765_v18  ;;  %v2030_v28 = vpop.f32.mrb[81].mxu0 }
 0x4a5   :  { %2049 = vmax.xlane.f32.xlu0 %v2030_v28 }
 0x4a7   :  { %v5768_v33 = vpop.f32.mrb[82].mxu0 }
 0x4a8   :  { %v2040_v38 = vpop.f32.mrb[83].mxu0 }
 0x4a9   :  { %2053 = vmax.xlane.f32.xlu0 %v2040_v38 }
 0x4ad   :  { %2055 = vmax.xlane.f32.xlu0 %v5768_v33 }
 0x4b5   :  { %2208 = vperm.xlu1 %6818, %v2191_v50  }
 0x531   :  { %v2052_v54 = vpop.xlane.xlu1 %2051 }
 0x532   :  { %v2058_v0 = vsub.f32 %v5765_v18, %v2052_v54  ;;  %v2050_v4 = vpop.xlane.xlu0 %2049  ;;  %v2206_v18 = vld [vmem:[%s8841_s0 + $0x78] sm:$0xff] }
 0x533   :  { %v2057_v16 = vsub.f32 %v2030_v28, %v2050_v4 }
 0x534   :  { %v2063_v22 = vmul.f32 1.442695, %v2058_v0 }
 0x535   :  { %v2061_v36 = vmul.f32 1.442695, %v2057_v16  ;;  %v8097_v42 = vpop.permute.xlu1 %2208 }
 0x536   :  { %6820 = vpow2.f32 %v2063_v22  ;;  %v2054_v52 = vpop.xlane.xlu0 %2053  ;;  %vm2257_vm14 = vcmp.eq.s32.totalorder %v8097_v42, %v7298_v7  ;;  %vm2258_vm15 = vcmp.eq.s32.totalorder %v8097_v42, %v7295_v6  ;;  %vm2255_vm9 = vcmp.eq.s32.totalorder %v8097_v42, %v7289_v2 }
 0x537   :  { %6822 = vpow2.f32 %v2061_v36  ;;  %4563 = vmatprep.mubr.msk.f32.mxu0 %vm2258_vm15, %v8943_v14  ;;  %v2059_v1 = vsub.f32 %v2040_v38, %v2054_v52 }
 0x538   :  { %4564 = vmatmul.mubr.msk.f32.vlgmr.msra.gmra.mrb[84].mxu0 %vm2257_vm14, %v8943_v14 }
 0x539   :  { %v2065_v8 = vmul.f32 1.442695, %v2059_v1 }
 0x53a   :  { %v2056_v57 = vpop.xlane.xlu0 %2055 }
 0x53b   :  { %v2060_v62 = vsub.f32 %v5768_v33, %v2056_v57 }
 0x53d   :  { %v2067_v25 = vmul.f32 1.442695, %v2060_v62 }
 0x53f   :  { %6824 = vpow2.f32 %v2067_v25 }
 0x540   :  { %v6821_v12 = vpop.eup %6820  ;;  %6826 = vpow2.f32 %v2065_v8 }
 0x541   :  { %v6823_v11 = vpop.eup %6822  ;;  %2071 = vadd.xlane.f32.xlu0 %v6821_v12 }
 0x542   :  { %2069 = vadd.xlane.f32.xlu1 %v6823_v11 }
 0x549   :  { %v8105_v39 = vpop.eup %6824 }
 0x54a   :  { %2075 = vadd.xlane.f32.xlu0 %v8105_v39  ;;  %v8123_v55 = vpop.eup %6826 }
 0x553   :  { %2214 = vperm.xlu1 %6818, %v2193_v59  }
 0x560   :  { %2211 = vperm.xlu0 %6819, %v2192_v44  }
 0x564   :  { %2238 = vperm.xlu0 %6819, %v2201_v58  }
 0x568   :  { %2244 = vperm.xlu0 %6819, %v2203_v31  }
 0x56c   :  { %2250 = vperm.xlu0 %6819, %v2205_v27  }
 0x577   :  { %2073 = vadd.xlane.f32.xlu1 %v8123_v55 }
 0x588   :  { %2217 = vperm.xlu1 %6818, %v2194_v20  }
 0x58c   :  { %2220 = vperm.xlu1 %6818, %v2195_v30  }
 0x590   :  { %2223 = vperm.xlu1 %6818, %v2196_v23  }
 0x594   :  { %2226 = vperm.xlu1 %6818, %v2197_v60  }
 0x598   :  { %2229 = vperm.xlu1 %6818, %v2198_v61  }
 0x59c   :  { %2232 = vperm.xlu1 %6818, %v2199_v45  }
 0x5a0   :  { %2235 = vperm.xlu1 %6818, %v2200_v29  }
 0x5a4   :  { %2241 = vperm.xlu1 %6818, %v2202_v9  }
 0x5a8   :  { %2247 = vperm.xlu1 %6818, %v2204_v13  }
 0x5ac   :  { %2253 = vperm.xlu1 %6818, %v2206_v18  }
 0x5ce   :  { %v2072_v28 = vpop.xlane.xlu0 %2071 }
 0x5cf   :  { %6828 = vrcp.f32 %v2072_v28  ;;  %v2070_v33 = vpop.xlane.xlu1 %2069 }
 0x5d0   :  { %6830 = vrcp.f32 %v2070_v33 }
 0x5d3   :  { %v8156_v16 = vpop.permute.xlu1 %2214 }
 0x5d4   :  { %vm2266_vm13 = vcmp.eq.s32.totalorder %v8156_v16, %v7295_v6  ;;  %vm2265_vm12 = vcmp.eq.s32.totalorder %v8156_v16, %v7298_v7 }
 0x5d7   :  { %v2076_v54 = vpop.xlane.xlu0 %2075 }
 0x5d8   :  { %6832 = vrcp.f32 %v2076_v54 }
 0x5d9   :  { %v6829_v38 = vpop.eup %6828 }
 0x5da   :  { %v6831_v50 = vpop.eup %6830  ;;  %v2080_v4 = vmul.f32 %v6829_v38, %v6821_v12 }
 0x5db   :  { %v2078_v0 = vmul.f32 %v6831_v50, %v6823_v11 }
 0x5dd   :  { %5801 = vmatprep.mubr.f32.mxu1 %v2078_v0 }
 0x5de   :  { %5802 = vmatmul.mubr.f32.vlgmr.msra.gmra.mrb[48].mxu1 %v2080_v4 }
 0x5df   :  { %v8158_v22 = vpop.permute.xlu0 %2211  ;;  %6446 = vmatpush3.bf16.msra.mxu1 %v6999_v17  ;;  %v8975_v17 = vld [vmem:[#allocation5_spill] sm:$0xff] }
 0x5e0   :  { %vm2262_vm14 = vcmp.eq.s32.totalorder %v8158_v22, %v7295_v6  ;;  %vm2261_vm15 = vcmp.eq.s32.totalorder %v8158_v22, %v7298_v7  ;;  %6448 = vmatprep.subr.bf16.mxu1 %v7019_v24 }
 0x5e1   :  { %4565 = vmatprep.mubr.msk.f32.mxu0 %vm2262_vm14, %v8943_v14 }
 0x5e2   :  { %4566 = vmatmul.mubr.msk.f32.gmra.mrb[86].mxu0 %vm2261_vm15, %v8943_v14 }
 0x5e3   :  { %4567 = vmatprep.mubr.msk.f32.mxu0 %vm2266_vm13, %v8943_v14  ;;  %6450 = vmatpush3.bf16.msra.mxu1 %v7043_v32  ;;  %v2239_v57 = vpop.permute.xlu0 %2238 }
 0x5e4   :  { %6452 = vmatprep.subr.bf16.mxu1 %v7058_v37 }
 0x5e6   :  { %4568 = vmatmul.mubr.msk.f32.gmra.mrb[88].mxu0 %vm2265_vm12, %v8943_v14 }
 0x5e7   :  { %6454 = vmatpush3.bf16.msra.mxu1 %v7094_v49  ;;  %v2245_v25 = vpop.permute.xlu0 %2244 }
 0x5e8   :  { %6456 = vmatprep.subr.bf16.mxu1 %v7106_v53 }
 0x5eb   :  { %6458 = vmatpush3.bf16.msra.mxu1 %v7136_v63  ;;  %v6833_v63 = vpop.eup %6832  ;;  %v2251_v11 = vpop.permute.xlu0 %2250 }
 0x5ec   :  { %6460 = vmatprep.subr.bf16.mxu1 %v7148_v3 }
 0x5ef   :  { %6462 = vmatpush3.bf16.msra.mxu1 %v7178_v15 }
 0x5f0   :  { %6464 = vmatprep.subr.bf16.mxu1 %v7190_v21 }
 0x5f3   :  { %6466 = vmatpush3.bf16.msra.mxu1 %v7220_v35 }
 0x5f4   :  { %6468 = vmatprep.subr.bf16.mxu1 %v7232_v41  ;;  %v2084_v41 = vmul.f32 %v6833_v63, %v8105_v39 }
 0x5f7   :  { %6470 = vmatpush3.bf16.msra.mxu1 %v7256_v51  ;;  %v8976_v51 = vld [vmem:[#allocation6_spill] sm:$0xff] }
 0x5f8   :  { %6472 = vmatprep.subr.bf16.mxu1 %v7265_v56  ;;  %vm2260_vm10 = vcmp.eq.s32.totalorder %v8158_v22, %v8976_v51 }
 0x5fb   :  { %6474 = vmatpush3.bf16.msra.mxu1 %v8975_v17 }
 0x604   :  { %v2074_v24 = vpop.xlane.xlu1 %2073 }
 0x605   :  { %6834 = vrcp.f32 %v2074_v24 }
 0x608   :  { %v2218_v32 = vpop.permute.xlu1 %2217 }
 0x609   :  { %vm2270_vm12 = vcmp.eq.s32.totalorder %v2218_v32, %v7295_v6  ;;  %vm2269_vm13 = vcmp.eq.s32.totalorder %v2218_v32, %v7298_v7 }
 0x60a   :  { %4569 = vmatprep.mubr.msk.f32.mxu0 %vm2270_vm12, %v8943_v14 }
 0x60b   :  { %4570 = vmatmul.mubr.msk.f32.gmra.mrb[90].mxu0 %vm2269_vm13, %v8943_v14  ;;  %v5187_v37 = vpop.f32.mrb[84].mxu0 }
 0x60c   :  { %v8191_v49 = vpop.permute.xlu1 %2220  ;;  %v5188_v53 = vpop.f32.mrb[85].mxu0 }
 0x60d   :  { %vm2274_vm14 = vcmp.eq.s32.totalorder %v8191_v49, %v7295_v6  ;;  %vm2273_vm15 = vcmp.eq.s32.totalorder %v8191_v49, %v7298_v7  ;;  %v8198_v3 = vadd.f32 %v5188_v53, %v5187_v37 }
 0x60e   :  { %4571 = vmatprep.mubr.msk.f32.mxu0 %vm2274_vm14, %v8943_v14  ;;  %vm2256_vm14 = vcmp.eq.s32.totalorder %v8097_v42, %v8976_v51 }
 0x60f   :  { %v6835_v15 = vpop.eup %6834  ;;  %4572 = vmatmul.mubr.msk.f32.gmra.mrb[92].mxu0 %vm2273_vm15, %v8943_v14 }
 0x610   :  { %v8201_v21 = vpop.permute.xlu1 %2223  ;;  %v2082_v35 = vmul.f32 %v6835_v15, %v8123_v55 }
 0x611   :  { %vm2278_vm12 = vcmp.eq.s32.totalorder %v8201_v21, %v7295_v6  ;;  %vm2277_vm13 = vcmp.eq.s32.totalorder %v8201_v21, %v7298_v7 }
 0x612   :  { %5804 = vmatprep.mubr.f32.mxu1 %v2082_v35  ;;  %4573 = vmatprep.mubr.msk.f32.mxu0 %vm2278_vm12, %v8943_v14  ;;  %vm2259_vm12 = vcmp.eq.s32.totalorder %v8158_v22, %v7289_v2 }
 0x613   :  { %5805 = vmatmul.mubr.f32.gmra.mrb[50].mxu1 %v2084_v41  ;;  %4574 = vmatmul.mubr.msk.f32.gmra.mrb[94].mxu0 %vm2277_vm13, %v8943_v14 }
 0x614   :  { %v2227_v56 = vpop.permute.xlu1 %2226  ;;  %4531 = vmatprep.mubr.msk.f32.mxu1 %vm2256_vm14, %v8943_v14 }
 0x615   :  { %vm2282_vm15 = vcmp.eq.s32.totalorder %v2227_v56, %v7295_v6  ;;  %vm2281_vm11 = vcmp.eq.s32.totalorder %v2227_v56, %v7298_v7 }
 0x616   :  { %4575 = vmatprep.mubr.msk.f32.mxu0 %vm2282_vm15, %v8943_v14  ;;  %vm2263_vm15 = vcmp.eq.s32.totalorder %v8156_v16, %v7289_v2 }
 0x617   :  { %4532 = vmatmul.mubr.msk.f32.vlgmr.msra.gmra.mrb[52].mxu1 %vm2255_vm9, %v8943_v14  ;;  %4576 = vmatmul.mubr.msk.f32.gmra.mrb[96].mxu0 %vm2281_vm11, %v8943_v14  ;;  %vm2264_vm9 = vcmp.eq.s32.totalorder %v8156_v16, %v8976_v51 }
 0x618   :  { %v2230_v36 = vpop.permute.xlu1 %2229  ;;  %4533 = vmatprep.mubr.msk.f32.mxu1 %vm2260_vm10, %v8943_v14 }
 0x619   :  { %vm2286_vm13 = vcmp.eq.s32.totalorder %v2230_v36, %v7295_v6  ;;  %vm2285_vm14 = vcmp.eq.s32.totalorder %v2230_v36, %v7298_v7 }
 0x61a   :  { %4577 = vmatprep.mubr.msk.f32.mxu0 %vm2286_vm13, %v8943_v14 }
 0x61b   :  { %4534 = vmatmul.mubr.msk.f32.gmra.mrb[54].mxu1 %vm2259_vm12, %v8943_v14  ;;  %4578 = vmatmul.mubr.msk.f32.gmra.mrb[98].mxu0 %vm2285_vm14, %v8943_v14  ;;  %vm2268_vm12 = vcmp.eq.s32.totalorder %v2218_v32, %v8976_v51 }
 0x61c   :  { %v2233_v42 = vpop.permute.xlu1 %2232  ;;  %4535 = vmatprep.mubr.msk.f32.mxu1 %vm2264_vm9, %v8943_v14  ;;  %vm2267_vm9 = vcmp.eq.s32.totalorder %v2218_v32, %v7289_v2 }
 0x61d   :  { %vm2290_vm10 = vcmp.eq.s32.totalorder %v2233_v42, %v7295_v6  ;;  %vm2289_vm11 = vcmp.eq.s32.totalorder %v2233_v42, %v7298_v7 }
 0x61e   :  { %4579 = vmatprep.mubr.msk.f32.mxu0 %vm2290_vm10, %v8943_v14  ;;  %vm2272_vm10 = vcmp.eq.s32.totalorder %v8191_v49, %v8976_v51 }
 0x61f   :  { %4536 = vmatmul.mubr.msk.f32.gmra.mrb[56].mxu1 %vm2263_vm15, %v8943_v14  ;;  %4580 = vmatmul.mubr.msk.f32.gmra.mrb[100].mxu0 %vm2289_vm11, %v8943_v14  ;;  %vm2298_vm11 = vcmp.eq.s32.totalorder %v2239_v57, %v7295_v6  ;;  %vm2271_vm15 = vcmp.eq.s32.totalorder %v8191_v49, %v7289_v2 }
 0x620   :  { %v2236_v52 = vpop.permute.xlu1 %2235  ;;  %4537 = vmatprep.mubr.msk.f32.mxu1 %vm2268_vm12, %v8943_v14  ;;  %vm2297_vm12 = vcmp.eq.s32.totalorder %v2239_v57, %v7298_v7 }
 0x621   :  { %vm2294_vm13 = vcmp.eq.s32.totalorder %v2236_v52, %v7295_v6  ;;  %vm2293_vm14 = vcmp.eq.s32.totalorder %v2236_v52, %v7298_v7 }
 0x622   :  { %4581 = vmatprep.mubr.msk.f32.mxu0 %vm2294_vm13, %v8943_v14  ;;  %vm2276_vm13 = vcmp.eq.s32.totalorder %v8201_v21, %v8976_v51 }
 0x623   :  { %4538 = vmatmul.mubr.msk.f32.gmra.mrb[58].mxu1 %vm2267_vm9, %v8943_v14  ;;  %4582 = vmatmul.mubr.msk.f32.gmra.mrb[102].mxu0 %vm2293_vm14, %v8943_v14  ;;  %vm2275_vm9 = vcmp.eq.s32.totalorder %v8201_v21, %v7289_v2 }
 0x624   :  { %v2242_v62 = vpop.permute.xlu1 %2241  ;;  %4539 = vmatprep.mubr.msk.f32.mxu1 %vm2272_vm10, %v8943_v14  ;;  %4583 = vmatprep.mubr.msk.f32.mxu0 %vm2298_vm11, %v8943_v14  ;;  %vm2280_vm11 = vcmp.eq.s32.totalorder %v2227_v56, %v8976_v51 }
 0x625   :  { %vm2302_vm14 = vcmp.eq.s32.totalorder %v2242_v62, %v7295_v6  ;;  %vm2301_vm10 = vcmp.eq.s32.totalorder %v2242_v62, %v7298_v7 }
 0x627   :  { %4540 = vmatmul.mubr.msk.f32.gmra.mrb[60].mxu1 %vm2271_vm15, %v8943_v14  ;;  %4584 = vmatmul.mubr.msk.f32.gmra.mrb[104].mxu0 %vm2297_vm12, %v8943_v14  ;;  %vm2306_vm15 = vcmp.eq.s32.totalorder %v2245_v25, %v7295_v6  ;;  %vm2279_vm12 = vcmp.eq.s32.totalorder %v2227_v56, %v7289_v2 }
 0x628   :  { %4541 = vmatprep.mubr.msk.f32.mxu1 %vm2276_vm13, %v8943_v14  ;;  %4585 = vmatprep.mubr.msk.f32.mxu0 %vm2302_vm14, %v8943_v14  ;;  %v2248_v12 = vpop.permute.xlu1 %2247  ;;  %vm2305_vm13 = vcmp.eq.s32.totalorder %v2245_v25, %v7298_v7  ;;  %vm2284_vm14 = vcmp.eq.s32.totalorder %v2230_v36, %v8976_v51 }
 0x62b   :  { %4542 = vmatmul.mubr.msk.f32.gmra.mrb[62].mxu1 %vm2275_vm9, %v8943_v14  ;;  %4586 = vmatmul.mubr.msk.f32.gmra.mrb[106].mxu0 %vm2301_vm10, %v8943_v14  ;;  %vm2310_vm9 = vcmp.eq.s32.totalorder %v2248_v12, %v7295_v6  ;;  %vm2283_vm10 = vcmp.eq.s32.totalorder %v2230_v36, %v7289_v2 }
 0x62c   :  { %4543 = vmatprep.mubr.msk.f32.mxu1 %vm2280_vm11, %v8943_v14  ;;  %4587 = vmatprep.mubr.msk.f32.mxu0 %vm2306_vm15, %v8943_v14  ;;  %vm2309_vm11 = vcmp.eq.s32.totalorder %v2248_v12, %v7298_v7  ;;  %vm2288_vm15 = vcmp.eq.s32.totalorder %v2233_v42, %v8976_v51  ;;  %v2254_v39 = vpop.permute.xlu1 %2253 }
 0x62f   :  { %4544 = vmatmul.mubr.msk.f32.gmra.mrb[64].mxu1 %vm2279_vm12, %v8943_v14  ;;  %4588 = vmatmul.mubr.msk.f32.gmra.mrb[108].mxu0 %vm2305_vm13, %v8943_v14  ;;  %vm2314_vm12 = vcmp.eq.s32.totalorder %v2251_v11, %v7295_v6  ;;  %vm2287_vm13 = vcmp.eq.s32.totalorder %v2233_v42, %v7289_v2 }
 0x630   :  { %4545 = vmatprep.mubr.msk.f32.mxu1 %vm2284_vm14, %v8943_v14  ;;  %4589 = vmatprep.mubr.msk.f32.mxu0 %vm2310_vm9, %v8943_v14  ;;  %vm2313_vm14 = vcmp.eq.s32.totalorder %v2251_v11, %v7298_v7  ;;  %vm2292_vm9 = vcmp.eq.s32.totalorder %v2236_v52, %v8976_v51 }
 0x633   :  { %4546 = vmatmul.mubr.msk.f32.gmra.mrb[66].mxu1 %vm2283_vm10, %v8943_v14  ;;  %4590 = vmatmul.mubr.msk.f32.gmra.mrb[110].mxu0 %vm2309_vm11, %v8943_v14  ;;  %vm2318_vm10 = vcmp.eq.s32.totalorder %v2254_v39, %v7295_v6  ;;  %vm2291_vm11 = vcmp.eq.s32.totalorder %v2236_v52, %v7289_v2 }
 0x634   :  { %4547 = vmatprep.mubr.msk.f32.mxu1 %vm2288_vm15, %v8943_v14  ;;  %4591 = vmatprep.mubr.msk.f32.mxu0 %vm2314_vm12, %v8943_v14  ;;  %vm2317_vm15 = vcmp.eq.s32.totalorder %v2254_v39, %v7298_v7  ;;  %vm2296_vm12 = vcmp.eq.s32.totalorder %v2239_v57, %v8976_v51 }
 0x637   :  { %4548 = vmatmul.mubr.msk.f32.gmra.mrb[68].mxu1 %vm2287_vm13, %v8943_v14  ;;  %4592 = vmatmul.mubr.msk.f32.gmra.mrb[112].mxu0 %vm2313_vm14, %v8943_v14  ;;  %vm2295_vm13 = vcmp.eq.s32.totalorder %v2239_v57, %v7289_v2  ;;  %vm2300_vm14 = vcmp.eq.s32.totalorder %v2242_v62, %v8976_v51 }
 0x638   :  { %4549 = vmatprep.mubr.msk.f32.mxu1 %vm2292_vm9, %v8943_v14  ;;  %4593 = vmatprep.mubr.msk.f32.mxu0 %vm2318_vm10, %v8943_v14  ;;  %vm2299_vm9 = vcmp.eq.s32.totalorder %v2242_v62, %v7289_v2  ;;  %vm2304_vm10 = vcmp.eq.s32.totalorder %v2245_v25, %v8976_v51 }
 0x63b   :  { %4550 = vmatmul.mubr.msk.f32.gmra.mrb[70].mxu1 %vm2291_vm11, %v8943_v14  ;;  %4594 = vmatmul.mubr.msk.f32.gmra.mrb[114].mxu0 %vm2317_vm15, %v8943_v14  ;;  %vm2303_vm11 = vcmp.eq.s32.totalorder %v2245_v25, %v7289_v2  ;;  %vm2308_vm15 = vcmp.eq.s32.totalorder %v2248_v12, %v8976_v51 }
 0x63c   :  { %4551 = vmatprep.mubr.msk.f32.mxu1 %vm2296_vm12, %v8943_v14  ;;  %vm2307_vm12 = vcmp.eq.s32.totalorder %v2248_v12, %v7289_v2 }
 0x63f   :  { %4552 = vmatmul.mubr.msk.f32.gmra.mrb[72].mxu1 %vm2295_vm13, %v8943_v14  ;;  %vm2312_vm13 = vcmp.eq.s32.totalorder %v2251_v11, %v8976_v51 }
 0x640   :  { %4553 = vmatprep.mubr.msk.f32.mxu1 %vm2300_vm14, %v8943_v14  ;;  %vm2311_vm14 = vcmp.eq.s32.totalorder %v2251_v11, %v7289_v2 }
 0x643   :  { %4554 = vmatmul.mubr.msk.f32.gmra.mrb[74].mxu1 %vm2299_vm9, %v8943_v14  ;;  %vm2316_vm9 = vcmp.eq.s32.totalorder %v2254_v39, %v8976_v51 }
 0x644   :  { %4555 = vmatprep.mubr.msk.f32.mxu1 %vm2304_vm10, %v8943_v14  ;;  %vm2315_vm10 = vcmp.eq.s32.totalorder %v2254_v39, %v7289_v2 }
 0x647   :  { %4556 = vmatmul.mubr.msk.f32.gmra.mrb[76].mxu1 %vm2303_vm11, %v8943_v14  ;;  %vm8997_vm11 = vcmp.eq.s32.totalorder %v7289_v2, %v7496_v40  ;;  %v9006_v40 = vld [vmem:[#allocation17_spill] sm:$0xff] }
 0x648   :  { %4557 = vmatprep.mubr.msk.f32.mxu1 %vm2308_vm15, %v8943_v14  ;;  %vm8998_vm15 = vcmp.eq.s32.totalorder %v7289_v2, %v7502_v47  ;;  %v9008_v47 = vld [vmem:[#allocation19_spill] sm:$0xff] }
 0x64b   :  { %4558 = vmatmul.mubr.msk.f32.gmra.mrb[78].mxu1 %vm2307_vm12, %v8943_v14  ;;  %vm8999_vm12 = vcmp.eq.s32.totalorder %v7289_v2, %v7510_v48  ;;  %v9012_v48 = vld [vmem:[#allocation23_spill] sm:$0xff] }
 0x64c   :  { %4559 = vmatprep.mubr.msk.f32.mxu1 %vm2312_vm13, %v8943_v14 }
 0x64f   :  { %4560 = vmatmul.mubr.msk.f32.gmra.mrb[80].mxu1 %vm2311_vm14, %v8943_v14 }
 0x650   :  { %4561 = vmatprep.mubr.msk.f32.mxu1 %vm2316_vm9, %v8943_v14 }
 0x653   :  { %4562 = vmatmul.mubr.msk.f32.gmra.mrb[82].mxu1 %vm2315_vm10, %v8943_v14  ;;  %vm9007_vm10 = vcmp.eq.s32.totalorder %v7289_v2, %v9006_v40 }
 0x654   :  { %5839 = vmatprep.mubr.msk.f32.mxu1 %vm693_vm0, %v8943_v14 }
 0x6b1   :  { %v8329_v7 = vpop.f32.mrb[48].mxu1 }
 0x6b2   :  { %v8331_v59 = vpop.f32.mrb[49].mxu1 }
 0x6b5   :  { %v5190_v44 = vpop.f32.mrb[86].mxu0 }
 0x6b6   :  { %v5191_v58 = vpop.f32.mrb[87].mxu0 }
 0x6b7   :  { %v5192_v1 = vadd.f32 %v5191_v58, %v5190_v44 }
 0x6b9   :  { %v5193_v31 = vpop.f32.mrb[88].mxu0 }
 0x6ba   :  { %v5194_v8 = vpop.f32.mrb[89].mxu0 }
 0x6bb   :  { %v5195_v27 = vadd.f32 %v5194_v8, %v5193_v31 }
 0x6de   :  { %v5196_v55 = vpop.f32.mrb[90].mxu0 }
 0x6df   :  { %v5197_v20 = vpop.f32.mrb[91].mxu0 }
 0x6e0   :  { %v5198_v30 = vadd.f32 %v5197_v20, %v5196_v55 }
 0x6e2   :  { %v5199_v23 = vpop.f32.mrb[92].mxu0 }
 0x6e3   :  { %v5200_v60 = vpop.f32.mrb[93].mxu0 }
 0x6e4   :  { %v5201_v61 = vadd.f32 %v5200_v60, %v5199_v23 }
 0x6e6   :  { %v8333_v45 = vpop.f32.mrb[50].mxu1  ;;  %v5202_v29 = vpop.f32.mrb[94].mxu0 }
 0x6e7   :  { %v8335_v9 = vpop.f32.mrb[51].mxu1  ;;  %v5203_v13 = vpop.f32.mrb[95].mxu0 }
 0x6e8   :  { %v5204_v18 = vadd.f32 %v5203_v13, %v5202_v29 }
 0x6ea   :  { %v5107_v28 = vpop.f32.mrb[52].mxu1  ;;  %v5205_v33 = vpop.f32.mrb[96].mxu0 }
 0x6eb   :  { %v5108_v38 = vpop.f32.mrb[53].mxu1  ;;  %v5206_v50 = vpop.f32.mrb[97].mxu0 }
 0x6ec   :  { %v5109_v54 = vadd.f32 %v5108_v38, %v5107_v28  ;;  %v5207_v0 = vadd.f32 %v5206_v50, %v5205_v33 }
 0x6ee   :  { %v2659_v4 = vadd.f32 %v8198_v3, %v5109_v54  ;;  %v5110_v16 = vpop.f32.mrb[54].mxu1  ;;  %v5208_v22 = vpop.f32.mrb[98].mxu0 }
 0x6ef   :  { %v5111_v17 = vpop.f32.mrb[55].mxu1  ;;  %v5209_v24 = vpop.f32.mrb[99].mxu0 }
 0x6f0   :  { %v5112_v32 = vadd.f32 %v5111_v17, %v5110_v16  ;;  %v5210_v37 = vadd.f32 %v5209_v24, %v5208_v22 }
 0x6f2   :  { %v2664_v49 = vadd.f32 %v5192_v1, %v5112_v32  ;;  %v5113_v53 = vpop.f32.mrb[56].mxu1  ;;  %v5211_v63 = vpop.f32.mrb[100].mxu0 }
 0x6f3   :  { %v5114_v15 = vpop.f32.mrb[57].mxu1  ;;  %v5212_v21 = vpop.f32.mrb[101].mxu0 }
 0x6f4   :  { %v8338_v35 = vpack.c.bf16 %v2664_v49, %v2659_v4  ;;  %v5115_v41 = vadd.f32 %v5114_v15, %v5113_v53  ;;  %v5213_v51 = vadd.f32 %v5212_v21, %v5211_v63 }
 0x6f6   :  { %v2669_v56 = vadd.f32 %v5195_v27, %v5115_v41  ;;  %v5116_v36 = vpop.f32.mrb[58].mxu1  ;;  %v5214_v42 = vpop.f32.mrb[102].mxu0  ;;  %6508 = vmatprep.subr.bf16.mxu1 %v8338_v35 }
 0x6f7   :  { %v5117_v3 = vpop.f32.mrb[59].mxu1  ;;  %v5215_v52 = vpop.f32.mrb[103].mxu0  ;;  %6510 = vmatpush3.bf16.msra.mxu1 %v8338_v35 }
 0x6f8   :  { %v5118_v57 = vadd.f32 %v5117_v3, %v5116_v36  ;;  %v5216_v62 = vadd.f32 %v5215_v52, %v5214_v42  ;;  %v2882_v3 = vld [vmem:[%s8843_s2] sm:$0xff]  ;;  %v2884_v52 = vld [vmem:[%s8843_s2 + $0x10] sm:$0xff] }
 0x6fa   :  { %v2674_v25 = vadd.f32 %v5198_v30, %v5118_v57  ;;  %v5119_v12 = vpop.f32.mrb[60].mxu1  ;;  %v5217_v11 = vpop.f32.mrb[104].mxu0 }
 0x6fb   :  { %v5120_v39 = vpop.f32.mrb[61].mxu1  ;;  %v5218_v6 = vpop.f32.mrb[105].mxu0 }
 0x6fc   :  { %v8342_v44 = vpack.c.bf16 %v2674_v25, %v2669_v56  ;;  %v5121_v58 = vadd.f32 %v5120_v39, %v5119_v12  ;;  %v8344_v1 = vadd.f32 %v5218_v6, %v5217_v11  ;;  %v2885_v12 = vld [vmem:[%s8843_s2 + $0x18] sm:$0xff] }
 0x6fd   :  { %v6543_v6 = vpack.c.bf16 %v2885_v12, %v2884_v52 }
 0x6fe   :  { %v2679_v31 = vadd.f32 %v5201_v61, %v5121_v58  ;;  %v5122_v8 = vpop.f32.mrb[62].mxu1  ;;  %v5220_v27 = vpop.f32.mrb[106].mxu0  ;;  %6512 = vmatprep.subr.bf16.mxu1 %v8342_v44  ;;  %v2886_v58 = vld [vmem:[%s8843_s2 + $0x20] sm:$0xff] }
 0x6ff   :  { %v5123_v55 = vpop.f32.mrb[63].mxu1  ;;  %v5221_v20 = vpop.f32.mrb[107].mxu0  ;;  %6514 = vmatpush3.bf16.msra.mxu1 %v8342_v44 }
 0x700   :  { %v5124_v23 = vadd.f32 %v5123_v55, %v5122_v8  ;;  %v8348_v30 = vadd.f32 %v5221_v20, %v5220_v27 }
 0x702   :  { %v2684_v60 = vadd.f32 %v5204_v18, %v5124_v23  ;;  %v5125_v29 = vpop.f32.mrb[64].mxu1  ;;  %v5223_v13 = vpop.f32.mrb[108].mxu0 }
 0x703   :  { %v5126_v28 = vpop.f32.mrb[65].mxu1  ;;  %v5224_v33 = vpop.f32.mrb[109].mxu0 }
 0x704   :  { %v8350_v38 = vpack.c.bf16 %v2684_v60, %v2679_v31  ;;  %v5127_v50 = vadd.f32 %v5126_v28, %v5125_v29  ;;  %v5225_v61 = vadd.f32 %v5224_v33, %v5223_v13  ;;  %v2887_v31 = vld [vmem:[%s8843_s2 + $0x28] sm:$0xff]  ;;  %v2888_v29 = vld [vmem:[%s8843_s2 + $0x30] sm:$0xff]  ;;  %v2889_v13 = vld [vmem:[%s8843_s2 + $0x38] sm:$0xff] }
 0x705   :  { %v6547_v20 = vpack.c.bf16 %v2887_v31, %v2886_v58  ;;  %v8988_v58 = vld [vmem:[#allocation24_spill] sm:$0xff] }
 0x706   :  { %v2689_v54 = vadd.f32 %v5207_v0, %v5127_v50  ;;  %v5128_v4 = vpop.f32.mrb[66].mxu1  ;;  %v5226_v16 = vpop.f32.mrb[110].mxu0  ;;  %6516 = vmatprep.subr.bf16.mxu1 %v8350_v38  ;;  %v6551_v50 = vpack.c.bf16 %v2889_v13, %v2888_v29  ;;  %v9028_v31 = vld [vmem:[#allocation32_spill] sm:$0xff]  ;;  %v9042_v29 = vld [vmem:[#allocation39_spill] sm:$0xff] }
 0x707   :  { %v5129_v22 = vpop.f32.mrb[67].mxu1  ;;  %v5227_v17 = vpop.f32.mrb[111].mxu0  ;;  %6518 = vmatpush3.bf16.msra.mxu1 %v8350_v38  ;;  %v9044_v13 = vld [vmem:[#allocation40_spill] sm:$0xff] }
 0x708   :  { %v5130_v24 = vadd.f32 %v5129_v22, %v5128_v4  ;;  %v5228_v32 = vadd.f32 %v5227_v17, %v5226_v16 }
 0x70a   :  { %v2694_v18 = vadd.f32 %v5210_v37, %v5130_v24  ;;  %v5131_v49 = vpop.f32.mrb[68].mxu1  ;;  %v5229_v53 = vpop.f32.mrb[112].mxu0  ;;  %v2883_v37 = vld [vmem:[%s8843_s2 + $0x8] sm:$0xff] }
 0x70b   :  { %v5132_v63 = vpop.f32.mrb[69].mxu1  ;;  %v5230_v15 = vpop.f32.mrb[113].mxu0 }
 0x70c   :  { %v8354_v21 = vpack.c.bf16 %v2694_v18, %v2689_v54  ;;  %v5133_v41 = vadd.f32 %v5132_v63, %v5131_v49  ;;  %v5231_v56 = vadd.f32 %v5230_v15, %v5229_v53 }
 0x70e   :  { %v2699_v0 = vadd.f32 %v5213_v51, %v5133_v41  ;;  %v5134_v36 = vpop.f32.mrb[70].mxu1  ;;  %v5232_v42 = vpop.f32.mrb[114].mxu0  ;;  %6520 = vmatprep.subr.bf16.mxu1 %v8354_v21  ;;  %v6539_v51 = vpack.c.bf16 %v2883_v37, %v2882_v3 }
 0x70f   :  { %v5135_v57 = vpop.f32.mrb[71].mxu1  ;;  %v5233_v25 = vpop.f32.mrb[115].mxu0  ;;  %6522 = vmatpush3.bf16.msra.mxu1 %v8354_v21 }
 0x710   :  { %v5136_v11 = vadd.f32 %v5135_v57, %v5134_v36  ;;  %v5234_v39 = vadd.f32 %v5233_v25, %v5232_v42  ;;  %6540 = vmatprep.subr.bf16.mxu0 %v6539_v51 }
 0x711   :  { %6542 = vmatpush3.bf16.msra.mxu0 %v6539_v51 }
 0x712   :  { %v2704_v8 = vadd.f32 %v5216_v62, %v5136_v11  ;;  %v5137_v27 = vpop.f32.mrb[72].mxu1  ;;  %6544 = vmatprep.subr.bf16.mxu0 %v6543_v6 }
 0x713   :  { %v5138_v55 = vpop.f32.mrb[73].mxu1 }
 0x714   :  { %v8376_v23 = vpack.c.bf16 %v2704_v8, %v2699_v0  ;;  %v5139_v60 = vadd.f32 %v5138_v55, %v5137_v27  ;;  %v9030_v8 = vld [vmem:[#allocation33_spill] sm:$0xff]  ;;  %v9032_v27 = vld [vmem:[#allocation34_spill] sm:$0xff]  ;;  %v9034_v55 = vld [vmem:[#allocation35_spill] sm:$0xff] }
 0x715   :  { %6546 = vmatpush3.bf16.msra.mxu0 %v6543_v6  ;;  %v8986_v6 = vld [vmem:[#allocation22_spill] sm:$0xff] }
 0x716   :  { %v2709_v28 = vadd.f32 %v8344_v1, %v5139_v60  ;;  %v5140_v33 = vpop.f32.mrb[74].mxu1  ;;  %6524 = vmatprep.subr.bf16.mxu1 %v8376_v23  ;;  %6548 = vmatprep.subr.bf16.mxu0 %v6547_v20  ;;  %vm8987_vm0 = vcmp.eq.s32.totalorder %v7289_v2, %v8986_v6  ;;  %v9040_v60 = vld [vmem:[#allocation38_spill] sm:$0xff] }
 0x717   :  { %v5141_v62 = vpop.f32.mrb[75].mxu1  ;;  %6526 = vmatpush3.bf16.msra.mxu1 %v8376_v23 }
 0x718   :  { %v5142_v54 = vadd.f32 %v5141_v62, %v5140_v33  ;;  %v9048_v33 = vld [vmem:[#allocation42_spill] sm:$0xff]  ;;  %v9050_v62 = vld [vmem:[#allocation43_spill] sm:$0xff] }
 0x719   :  { %6550 = vmatpush3.bf16.msra.mxu0 %v6547_v20  ;;  %v9036_v20 = vld [vmem:[#allocation36_spill] sm:$0xff] }
 0x71a   :  { %v2714_v4 = vadd.f32 %v8348_v30, %v5142_v54  ;;  %v5143_v16 = vpop.f32.mrb[76].mxu1  ;;  %6552 = vmatprep.subr.bf16.mxu0 %v6551_v50  ;;  %v4644_v54 = vld [vmem:[%s8843_s2 + $0x48] sm:$0xff] }
 0x71b   :  { %v5144_v22 = vpop.f32.mrb[77].mxu1 }
 0x71c   :  { %v8388_v17 = vpack.c.bf16 %v2714_v4, %v2709_v28  ;;  %v5145_v24 = vadd.f32 %v5144_v22, %v5143_v16  ;;  %v9046_v28 = vld [vmem:[#allocation41_spill] sm:$0xff]  ;;  %v9052_v16 = vld [vmem:[#allocation44_spill] sm:$0xff] }
 0x71d   :  { %6554 = vmatpush3.bf16.msra.mxu0 %v6551_v50  ;;  %v4643_v50 = vld [vmem:[%s8843_s2 + $0x40] sm:$0xff] }
 0x71e   :  { %v2719_v1 = vadd.f32 %v5225_v61, %v5145_v24  ;;  %v5146_v18 = vpop.f32.mrb[78].mxu1  ;;  %6528 = vmatprep.subr.bf16.mxu1 %v8388_v17  ;;  %v6587_v4 = vpack.c.bf16 %v4644_v54, %v4643_v50  ;;  %v6868_v22 = vld [vmem:[%s8845_s4] sm:$0xff]  ;;  %v4646_v24 = vld [vmem:[%s8843_s2 + $0x58] sm:$0xff] }
 0x71f   :  { %v5147_v49 = vpop.f32.mrb[79].mxu1  ;;  %6530 = vmatpush3.bf16.msra.mxu1 %v8388_v17 }
 0x720   :  { %v5148_v53 = vadd.f32 %v5147_v49, %v5146_v18  ;;  %6588 = vmatprep.subr.bf16.mxu0 %v6587_v4 }
 0x722   :  { %v2724_v63 = vadd.f32 %v5228_v32, %v5148_v53  ;;  %v5149_v15 = vpop.f32.mrb[80].mxu1 }
 0x723   :  { %v5150_v41 = vpop.f32.mrb[81].mxu1 }
 0x724   :  { %v8392_v30 = vpack.c.bf16 %v2724_v63, %v2719_v1  ;;  %v5151_v0 = vadd.f32 %v5150_v41, %v5149_v15  ;;  %v4649_v41 = vld [vmem:[%s8843_s2 + $0x70] sm:$0xff] }
 0x726   :  { %v2729_v36 = vadd.f32 %v5231_v56, %v5151_v0  ;;  %v5152_v42 = vpop.f32.mrb[82].mxu1  ;;  %6532 = vmatprep.subr.bf16.mxu1 %v8392_v30 }
 0x727   :  { %v5153_v3 = vpop.f32.mrb[83].mxu1  ;;  %6534 = vmatpush3.bf16.msra.mxu1 %v8392_v30 }
 0x728   :  { %v5154_v61 = vadd.f32 %v5153_v3, %v5152_v42  ;;  %v4683_v3 = vld [vmem:[%s8843_s2 + $0x80] sm:$0xff] }
 0x72a   :  { %v2734_v37 = vadd.f32 %v5234_v39, %v5154_v61  ;;  %v4684_v61 = vld [vmem:[%s8843_s2 + $0x88] sm:$0xff] }
 0x72b   :  { %v6635_v32 = vpack.c.bf16 %v4684_v61, %v4683_v3 }
 0x72c   :  { %v8396_v52 = vpack.c.bf16 %v2734_v37, %v2729_v36 }
 0x72e   :  { %6536 = vmatprep.subr.bf16.mxu1 %v8396_v52 }
 0x72f   :  { %6538 = vmatpush3.bf16.msra.mxu1 %v8396_v52 }
 0x730   :  { %6556 = vmatprep.subr.bf16.mxu1 %v8338_v35 }
 0x732   :  { %5840 = vmatmul.mubr.msk.f32.vlgmr.msra.gmra.mrb[84].mxu1 %vm694_vm1, %v8943_v14  ;;  %vm8989_vm1 = vcmp.eq.s32.totalorder %v7289_v2, %v8988_v58  ;;  %v4685_v58 = vld [vmem:[%s8843_s2 + $0x90] sm:$0xff] }
 0x733   :  { %6558 = vmatpush3.bf16.msra.mxu1 %v8338_v35  ;;  %5842 = vmatprep.mubr.msk.f32.mxu1 %vm695_vm2, %v8943_v14  ;;  %vm8990_vm2 = vcmp.eq.s32.totalorder %v7289_v2, %v7621_v26  ;;  %v9010_v26 = vld [vmem:[#allocation21_spill] sm:$0xff] }
 0x734   :  { %6560 = vmatprep.subr.bf16.mxu1 %v8342_v44 }
 0x736   :  { %5843 = vmatmul.mubr.msk.f32.gmra.mrb[86].mxu1 %vm696_vm3, %v8943_v14  ;;  %vm8991_vm3 = vcmp.eq.s32.totalorder %v7289_v2, %v7630_v34  ;;  %v9018_v34 = vld [vmem:[#allocation27_spill] sm:$0xff] }
 0x737   :  { %6562 = vmatpush3.bf16.msra.mxu1 %v8342_v44  ;;  %5845 = vmatprep.mubr.msk.f32.mxu1 %vm697_vm4, %v8943_v14  ;;  %vm8992_vm4 = vcmp.eq.s32.totalorder %v7289_v2, %v7647_v5  ;;  %v9000_v5 = vld [vmem:[#allocation11_spill] sm:$0xff] }
 0x738   :  { %6564 = vmatprep.subr.bf16.mxu1 %v8350_v38  ;;  %vm9001_vm13 = vcmp.eq.s32.totalorder %v7289_v2, %v9000_v5  ;;  %v4686_v5 = vld [vmem:[%s8843_s2 + $0x98] sm:$0xff] }
 0x739   :  { %v6639_v40 = vpack.c.bf16 %v4686_v5, %v4685_v58 }
 0x73a   :  { %5846 = vmatmul.mubr.msk.f32.gmra.mrb[88].mxu1 %vm698_vm5, %v8943_v14  ;;  %vm8993_vm5 = vcmp.eq.s32.totalorder %v7289_v2, %v7656_v46  ;;  %v9014_v46 = vld [vmem:[#allocation25_spill] sm:$0xff] }
 0x73b   :  { %6566 = vmatpush3.bf16.msra.mxu1 %v8350_v38  ;;  %5848 = vmatprep.mubr.msk.f32.mxu1 %vm699_vm6, %v8943_v14  ;;  %vm8994_vm6 = vcmp.eq.s32.totalorder %v7289_v2, %v7670_v19  ;;  %v9016_v19 = vld [vmem:[#allocation26_spill] sm:$0xff] }
 0x73c   :  { %6568 = vmatprep.subr.bf16.mxu1 %v8354_v21 }
 0x73e   :  { %5849 = vmatmul.mubr.msk.f32.gmra.mrb[90].mxu1 %vm700_vm7, %v8943_v14  ;;  %vm8995_vm7 = vcmp.eq.s32.totalorder %v7289_v2, %v7429_v43  ;;  %v9002_v43 = vld [vmem:[#allocation13_spill] sm:$0xff] }
 0x73f   :  { %6570 = vmatpush3.bf16.msra.mxu1 %v8354_v21  ;;  %5851 = vmatprep.mubr.msk.f32.mxu1 %vm701_vm8, %v8943_v14  ;;  %vm8996_vm8 = vcmp.eq.s32.totalorder %v7289_v2, %v7493_v10  ;;  %vm9003_vm14 = vcmp.eq.s32.totalorder %v7289_v2, %v9002_v43  ;;  %v9004_v10 = vld [vmem:[#allocation15_spill] sm:$0xff] }
 0x740   :  { %6572 = vmatprep.subr.bf16.mxu1 %v8376_v23  ;;  %vm9005_vm9 = vcmp.eq.s32.totalorder %v7289_v2, %v9004_v10 }
 0x742   :  { %5852 = vmatmul.mubr.msk.f32.gmra.mrb[92].mxu1 %vm8987_vm0, %v8943_v14  ;;  %vm9009_vm0 = vcmp.eq.s32.totalorder %v7289_v2, %v9008_v47  ;;  %v4687_v47 = vld [vmem:[%s8843_s2 + $0xa0] sm:$0xff] }
 0x743   :  { %6574 = vmatpush3.bf16.msra.mxu1 %v8376_v23  ;;  %5854 = vmatprep.mubr.msk.f32.mxu1 %vm8989_vm1, %v8943_v14  ;;  %vm9011_vm1 = vcmp.eq.s32.totalorder %v7289_v2, %v9010_v26  ;;  %v4688_v26 = vld [vmem:[%s8843_s2 + $0xa8] sm:$0xff] }
 0x744   :  { %6576 = vmatprep.subr.bf16.mxu1 %v8388_v17 }
 0x746   :  { %5855 = vmatmul.mubr.msk.f32.gmra.mrb[94].mxu1 %vm8990_vm2, %v8943_v14  ;;  %vm9013_vm2 = vcmp.eq.s32.totalorder %v7289_v2, %v9012_v48 }
 0x747   :  { %6578 = vmatpush3.bf16.msra.mxu1 %v8388_v17  ;;  %5857 = vmatprep.mubr.msk.f32.mxu1 %vm8991_vm3, %v8943_v14  ;;  %vm9015_vm3 = vcmp.eq.s32.totalorder %v7289_v2, %v9014_v46 }
 0x748   :  { %6580 = vmatprep.subr.bf16.mxu1 %v8392_v30 }
 0x74a   :  { %5858 = vmatmul.mubr.msk.f32.gmra.mrb[96].mxu1 %vm8992_vm4, %v8943_v14  ;;  %vm9017_vm4 = vcmp.eq.s32.totalorder %v7289_v2, %v9016_v19  ;;  %v6643_v19 = vpack.c.bf16 %v4688_v26, %v4687_v47 }
 0x74b   :  { %6582 = vmatpush3.bf16.msra.mxu1 %v8392_v30  ;;  %5860 = vmatprep.mubr.msk.f32.mxu1 %vm8993_vm5, %v8943_v14  ;;  %vm9019_vm5 = vcmp.eq.s32.totalorder %v7289_v2, %v9018_v34  ;;  %v4689_v34 = vld [vmem:[%s8843_s2 + $0xb0] sm:$0xff] }
 0x74c   :  { %6584 = vmatprep.subr.bf16.mxu1 %v8396_v52 }
 0x74e   :  { %5861 = vmatmul.mubr.msk.f32.gmra.mrb[98].mxu1 %vm8994_vm6, %v8943_v14 }
 0x74f   :  { %6586 = vmatpush3.bf16.msra.mxu1 %v8396_v52  ;;  %5935 = vmatprep.mubr.msk.f32.mxu1 %vm8995_vm7, %v8943_v14 }
 0x750   :  { %6604 = vmatprep.subr.bf16.mxu1 %v8338_v35 }
 0x752   :  { %5936 = vmatmul.mubr.msk.f32.vlgmr.msra.gmra.mrb[100].mxu1 %vm8996_vm8, %v8943_v14 }
 0x753   :  { %6606 = vmatpush3.bf16.msra.mxu1 %v8338_v35  ;;  %5938 = vmatprep.mubr.msk.f32.mxu1 %vm8997_vm11, %v8943_v14  ;;  %v9020_v35 = vld [vmem:[#allocation28_spill] sm:$0xff] }
 0x754   :  { %6608 = vmatprep.subr.bf16.mxu1 %v8342_v44  ;;  %vm9021_vm6 = vcmp.eq.s32.totalorder %v7289_v2, %v9020_v35  ;;  %v4690_v35 = vld [vmem:[%s8843_s2 + $0xb8] sm:$0xff] }
 0x756   :  { %5939 = vmatmul.mubr.msk.f32.gmra.mrb[102].mxu1 %vm8998_vm15, %v8943_v14  ;;  %vm9029_vm15 = vcmp.eq.s32.totalorder %v7289_v2, %v9028_v31 }
 0x757   :  { %6610 = vmatpush3.bf16.msra.mxu1 %v8342_v44  ;;  %5941 = vmatprep.mubr.msk.f32.mxu1 %vm8999_vm12, %v8943_v14  ;;  %v9022_v44 = vld [vmem:[#allocation29_spill] sm:$0xff]  ;;  %vm9031_vm12 = vcmp.eq.s32.totalorder %v7289_v2, %v9030_v8 }
 0x758   :  { %6612 = vmatprep.subr.bf16.mxu1 %v8350_v38  ;;  %vm9023_vm7 = vcmp.eq.s32.totalorder %v7289_v2, %v9022_v44 }
 0x75a   :  { %5942 = vmatmul.mubr.msk.f32.gmra.mrb[104].mxu1 %vm9001_vm13, %v8943_v14  ;;  %vm9033_vm13 = vcmp.eq.s32.totalorder %v7289_v2, %v9032_v27 }
 0x75b   :  { %6614 = vmatpush3.bf16.msra.mxu1 %v8350_v38  ;;  %5944 = vmatprep.mubr.msk.f32.mxu1 %vm9003_vm14, %v8943_v14  ;;  %v9024_v38 = vld [vmem:[#allocation30_spill] sm:$0xff]  ;;  %vm9035_vm14 = vcmp.eq.s32.totalorder %v7289_v2, %v9034_v55 }
 0x75c   :  { %6616 = vmatprep.subr.bf16.mxu1 %v8354_v21  ;;  %vm9025_vm8 = vcmp.eq.s32.totalorder %v7289_v2, %v9024_v38 }
 0x75e   :  { %5945 = vmatmul.mubr.msk.f32.gmra.mrb[106].mxu1 %vm9005_vm9, %v8943_v14  ;;  %vm9037_vm9 = vcmp.eq.s32.totalorder %v7289_v2, %v9036_v20 }
 0x75f   :  { %6618 = vmatpush3.bf16.msra.mxu1 %v8354_v21  ;;  %5947 = vmatprep.mubr.msk.f32.mxu1 %vm9007_vm10, %v8943_v14  ;;  %v9026_v21 = vld [vmem:[#allocation31_spill] sm:$0xff] }
 0x760   :  { %6620 = vmatprep.subr.bf16.mxu1 %v8376_v23  ;;  %vm9027_vm11 = vcmp.eq.s32.totalorder %v7289_v2, %v9026_v21  ;;  %v6647_v21 = vpack.c.bf16 %v4690_v35, %v4689_v34 }
 0x762   :  { %5948 = vmatmul.mubr.msk.f32.gmra.mrb[108].mxu1 %vm9009_vm0, %v8943_v14  ;;  %vm9041_vm0 = vcmp.eq.s32.totalorder %v7289_v2, %v9040_v60 }
 0x763   :  { %6622 = vmatpush3.bf16.msra.mxu1 %v8376_v23  ;;  %5950 = vmatprep.mubr.msk.f32.mxu1 %vm9011_vm1, %v8943_v14  ;;  %v9038_v23 = vld [vmem:[#allocation37_spill] sm:$0xff]  ;;  %vm9043_vm1 = vcmp.eq.s32.totalorder %v7289_v2, %v9042_v29 }
 0x764   :  { %6624 = vmatprep.subr.bf16.mxu1 %v8388_v17  ;;  %vm9039_vm10 = vcmp.eq.s32.totalorder %v7289_v2, %v9038_v23 }
 0x766   :  { %5951 = vmatmul.mubr.msk.f32.gmra.mrb[110].mxu1 %vm9013_vm2, %v8943_v14  ;;  %vm9045_vm2 = vcmp.eq.s32.totalorder %v7289_v2, %v9044_v13 }
 0x767   :  { %6626 = vmatpush3.bf16.msra.mxu1 %v8388_v17  ;;  %5953 = vmatprep.mubr.msk.f32.mxu1 %vm9015_vm3, %v8943_v14  ;;  %vm9047_vm3 = vcmp.eq.s32.totalorder %v7289_v2, %v9046_v28  ;;  %v4645_v17 = vld [vmem:[%s8843_s2 + $0x50] sm:$0xff] }
 0x768   :  { %6628 = vmatprep.subr.bf16.mxu1 %v8392_v30  ;;  %v6591_v49 = vpack.c.bf16 %v4646_v24, %v4645_v17 }
 0x76a   :  { %5954 = vmatmul.mubr.msk.f32.gmra.mrb[112].mxu1 %vm9017_vm4, %v8943_v14  ;;  %vm9049_vm4 = vcmp.eq.s32.totalorder %v7289_v2, %v9048_v33 }
 0x76b   :  { %6630 = vmatpush3.bf16.msra.mxu1 %v8392_v30  ;;  %5956 = vmatprep.mubr.msk.f32.mxu1 %vm9019_vm5, %v8943_v14  ;;  %vm9051_vm5 = vcmp.eq.s32.totalorder %v7289_v2, %v9050_v62  ;;  %v4650_v30 = vld [vmem:[%s8843_s2 + $0x78] sm:$0xff] }
 0x76c   :  { %6632 = vmatprep.subr.bf16.mxu1 %v8396_v52  ;;  %v6599_v42 = vpack.c.bf16 %v4650_v30, %v4649_v41  ;;  %v8722_v41 = vld [vmem:[%s8844_s3] ss:$0 sm:$0xff] }
 0x76e   :  { %5957 = vmatmul.mubr.msk.f32.gmra.mrb[114].mxu1 %vm9021_vm6, %v8943_v14  ;;  %vm9053_vm6 = vcmp.eq.s32.totalorder %v7289_v2, %v9052_v16  ;;  %v4647_v2 = vld [vmem:[%s8843_s2 + $0x60] sm:$0xff] }
 0x76f   :  { %6634 = vmatpush3.bf16.msra.mxu1 %v8396_v52  ;;  %6031 = vmatprep.mubr.msk.f32.mxu1 %vm9023_vm7, %v8943_v14  ;;  %vm9054_vm7 = vcmask 523264  }
 0x772   :  { %6032 = vmatmul.mubr.msk.f32.vlgmr.msra.gmra.mrb[116].mxu1 %vm9025_vm8, %v8943_v14  ;;  %vm9055_vm8 = vmmov %vm9054_vm7 }
 0x773   :  { %6034 = vmatprep.mubr.msk.f32.mxu1 %vm9027_vm11, %v8943_v14  ;;  %vm9056_vm11 = vmmov %vm9054_vm7 }
 0x776   :  { %6035 = vmatmul.mubr.msk.f32.gmra.mrb[118].mxu1 %vm9029_vm15, %v8943_v14  ;;  %vm9057_vm15 = vmmov %vm9054_vm7 }
 0x777   :  { %6037 = vmatprep.mubr.msk.f32.mxu1 %vm9031_vm12, %v8943_v14  ;;  %vm9058_vm12 = vmmov %vm9054_vm7 }
 0x77a   :  { %6038 = vmatmul.mubr.msk.f32.gmra.mrb[120].mxu1 %vm9033_vm13, %v8943_v14  ;;  %vm9059_vm13 = vmmov %vm9054_vm7 }
 0x77b   :  { %6040 = vmatprep.mubr.msk.f32.mxu1 %vm9035_vm14, %v8943_v14  ;;  %vm9060_vm14 = vmmov %vm9054_vm7 }
 0x77e   :  { %6041 = vmatmul.mubr.msk.f32.gmra.mrb[122].mxu1 %vm9037_vm9, %v8943_v14  ;;  %vm9061_vm9 = vmmov %vm9054_vm7 }
 0x77f   :  { %6043 = vmatprep.mubr.msk.f32.mxu1 %vm9039_vm10, %v8943_v14  ;;  %vm9062_vm10 = vmmov %vm9054_vm7 }
 0x782   :  { %6044 = vmatmul.mubr.msk.f32.gmra.mrb[124].mxu1 %vm9041_vm0, %v8943_v14  ;;  %vm9063_vm0 = vmmov %vm9054_vm7 }
 0x783   :  { %6046 = vmatprep.mubr.msk.f32.mxu1 %vm9043_vm1, %v8943_v14  ;;  %vm9064_vm1 = vmmov %vm9063_vm0 }
 0x786   :  { %6047 = vmatmul.mubr.msk.f32.gmra.mrb[126].mxu1 %vm9045_vm2, %v8943_v14  ;;  %vm9065_vm2 = vmmov %vm9063_vm0 }
 0x787   :  { %6049 = vmatprep.mubr.msk.f32.mxu1 %vm9047_vm3, %v8943_v14  ;;  %vm9066_vm3 = vmmov %vm9063_vm0 }
 0x78a   :  { %6050 = vmatmul.mubr.msk.f32.gmra.mrb[128].mxu1 %vm9049_vm4, %v8943_v14  ;;  %vm9067_vm4 = vmmov %vm9063_vm0 }
 0x78b   :  { %6052 = vmatprep.mubr.msk.f32.mxu1 %vm9051_vm5, %v8943_v14  ;;  %vm9068_vm5 = vmmov %vm9063_vm0 }
 0x78e   :  { %6053 = vmatmul.mubr.msk.f32.gmra.mrb[130].mxu1 %vm9053_vm6, %v8943_v14  ;;  %v4648_v14 = vld [vmem:[%s8843_s2 + $0x68] sm:$0xff]  ;;  %vm9069_vm6 = vmmov %vm9063_vm0 }
 0x78f   :  { %6127 = vmatprep.mubr.f32.mxu1 %v6868_v22  ;;  %v6595_v15 = vpack.c.bf16 %v4648_v14, %v4647_v2 }
 0x805   :  { %v5841_v1 = vpop.f32.mrb[84].mxu1 }
 0x806   :  { %v2803_v18 = vpop.f32.mrb[85].mxu1 }
 0x807   :  { %5879 = vmatprep.mubr.msk.f32.mxu0 %vm9054_vm7, %v2803_v18  ;;  %vm9070_vm7 = vmmov %vm9063_vm0 }
 0x808   :  { %5880 = vmatmul.mubr.msk.f32.vlgmr.msra.gmra.mrb[116].mxu0 %vm9055_vm8, %v5841_v1  ;;  %vm9071_vm8 = vmmov %vm9063_vm0 }
 0x809   :  { %v5844_v53 = vpop.f32.mrb[86].mxu1  ;;  %6590 = vmatpush3.bf16.msra.mxu0 %v6587_v4 }
 0x80a   :  { %v2813_v63 = vpop.f32.mrb[87].mxu1  ;;  %6592 = vmatprep.subr.bf16.mxu0 %v6591_v49 }
 0x80b   :  { %5882 = vmatprep.mubr.msk.f32.mxu0 %vm9056_vm11, %v2813_v63  ;;  %vm9072_vm11 = vmmov %vm9063_vm0 }
 0x80c   :  { %5883 = vmatmul.mubr.msk.f32.gmra.mrb[118].mxu0 %vm9057_vm15, %v5844_v53  ;;  %vm9073_vm15 = vmmov %vm9063_vm0 }
 0x80d   :  { %v5847_v0 = vpop.f32.mrb[88].mxu1  ;;  %6594 = vmatpush3.bf16.msra.mxu0 %v6591_v49 }
 0x80e   :  { %v2823_v36 = vpop.f32.mrb[89].mxu1  ;;  %6596 = vmatprep.subr.bf16.mxu0 %v6595_v15 }
 0x80f   :  { %5885 = vmatprep.mubr.msk.f32.mxu0 %vm9058_vm12, %v2823_v36  ;;  %vm9074_vm12 = vmmov %vm9063_vm0 }
 0x810   :  { %5886 = vmatmul.mubr.msk.f32.gmra.mrb[120].mxu0 %vm9059_vm13, %v5847_v0  ;;  %vm9075_vm13 = vmmov %vm9063_vm0 }
 0x811   :  { %v5850_v37 = vpop.f32.mrb[90].mxu1  ;;  %6598 = vmatpush3.bf16.msra.mxu0 %v6595_v15 }
 0x812   :  { %v2833_v52 = vpop.f32.mrb[91].mxu1  ;;  %6600 = vmatprep.subr.bf16.mxu0 %v6599_v42 }
 0x813   :  { %5888 = vmatprep.mubr.msk.f32.mxu0 %vm9060_vm14, %v2833_v52  ;;  %vm9076_vm14 = vmmov %vm9063_vm0 }
 0x814   :  { %5889 = vmatmul.mubr.msk.f32.gmra.mrb[122].mxu0 %vm9061_vm9, %v5850_v37  ;;  %vm9077_vm9 = vmmov %vm9063_vm0 }
 0x815   :  { %v5853_v56 = vpop.f32.mrb[92].mxu1  ;;  %6602 = vmatpush3.bf16.msra.mxu0 %v6599_v42 }
 0x816   :  { %v2843_v57 = vpop.f32.mrb[93].mxu1  ;;  %6636 = vmatprep.subr.bf16.mxu0 %v6635_v32 }
 0x817   :  { %5891 = vmatprep.mubr.msk.f32.mxu0 %vm9062_vm10, %v2843_v57  ;;  %vm9078_vm10 = vmmov %vm9063_vm0 }
 0x818   :  { %5892 = vmatmul.mubr.msk.f32.gmra.mrb[124].mxu0 %vm9063_vm0, %v5853_v56 }
 0x819   :  { %v5856_v25 = vpop.f32.mrb[94].mxu1 }
 0x81a   :  { %v2853_v51 = vpop.f32.mrb[95].mxu1 }
 0x81b   :  { %5894 = vmatprep.mubr.msk.f32.mxu0 %vm9064_vm1, %v2853_v51  ;;  %vm9079_vm1 = vmmov %vm9063_vm0 }
 0x81c   :  { %5895 = vmatmul.mubr.msk.f32.gmra.mrb[126].mxu0 %vm9065_vm2, %v5856_v25  ;;  %vm9080_vm2 = vmmov %vm9063_vm0 }
 0x81d   :  { %v5859_v12 = vpop.f32.mrb[96].mxu1 }
 0x81e   :  { %v2863_v11 = vpop.f32.mrb[97].mxu1 }
 0x81f   :  { %5897 = vmatprep.mubr.msk.f32.mxu0 %vm9066_vm3, %v2863_v11  ;;  %vm9081_vm3 = vmmov %vm9063_vm0 }
 0x820   :  { %5898 = vmatmul.mubr.msk.f32.gmra.mrb[128].mxu0 %vm9067_vm4, %v5859_v12  ;;  %vm9082_vm4 = vmmov %vm9063_vm0 }
 0x821   :  { %v5862_v39 = vpop.f32.mrb[98].mxu1 }
 0x822   :  { %v2873_v6 = vpop.f32.mrb[99].mxu1 }
 0x823   :  { %5900 = vmatprep.mubr.msk.f32.mxu0 %vm9068_vm5, %v2873_v6  ;;  %vm9083_vm5 = vmmov %vm9063_vm0 }
 0x824   :  { %5901 = vmatmul.mubr.msk.f32.gmra.mrb[130].mxu0 %vm9069_vm6, %v5862_v39  ;;  %vm9084_vm6 = vmmov %vm9063_vm0 }
 0x825   :  { %v5937_v43 = vpop.f32.mrb[100].mxu1 }
 0x826   :  { %v3165_v10 = vpop.f32.mrb[101].mxu1 }
 0x827   :  { %5975 = vmatprep.mubr.msk.f32.mxu0 %vm9070_vm7, %v3165_v10  ;;  %vm9085_vm7 = vmmov %vm9063_vm0 }
 0x828   :  { %5976 = vmatmul.mubr.msk.f32.vlgmr.msra.gmra.mrb[116].mxu0 %vm9071_vm8, %v5937_v43  ;;  %vm9086_vm8 = vmmov %vm9063_vm0 }
 0x829   :  { %v5940_v48 = vpop.f32.mrb[102].mxu1  ;;  %6638 = vmatpush3.bf16.msra.mxu0 %v6635_v32 }
 0x82a   :  { %v3175_v46 = vpop.f32.mrb[103].mxu1  ;;  %6640 = vmatprep.subr.bf16.mxu0 %v6639_v40 }
 0x82b   :  { %5978 = vmatprep.mubr.msk.f32.mxu0 %vm9072_vm11, %v3175_v46  ;;  %vm9087_vm11 = vmmov %vm9063_vm0 }
 0x82c   :  { %5979 = vmatmul.mubr.msk.f32.gmra.mrb[118].mxu0 %vm9073_vm15, %v5940_v48  ;;  %vm9088_vm15 = vmmov %vm9063_vm0 }
 0x82d   :  { %v5943_v44 = vpop.f32.mrb[104].mxu1  ;;  %6642 = vmatpush3.bf16.msra.mxu0 %v6639_v40 }
 0x82e   :  { %v3185_v38 = vpop.f32.mrb[105].mxu1  ;;  %6644 = vmatprep.subr.bf16.mxu0 %v6643_v19 }
 0x82f   :  { %5981 = vmatprep.mubr.msk.f32.mxu0 %vm9074_vm12, %v3185_v38  ;;  %vm9089_vm12 = vmmov %vm9063_vm0 }
 0x830   :  { %5982 = vmatmul.mubr.msk.f32.gmra.mrb[120].mxu0 %vm9075_vm13, %v5943_v44  ;;  %vm9090_vm13 = vmmov %vm9063_vm0 }
 0x831   :  { %v5946_v31 = vpop.f32.mrb[106].mxu1  ;;  %6646 = vmatpush3.bf16.msra.mxu0 %v6643_v19 }
 0x832   :  { %v3195_v8 = vpop.f32.mrb[107].mxu1  ;;  %6648 = vmatprep.subr.bf16.mxu0 %v6647_v21 }
 0x833   :  { %5984 = vmatprep.mubr.msk.f32.mxu0 %vm9076_vm14, %v3195_v8  ;;  %vm9091_vm14 = vmmov %vm9063_vm0 }
 0x834   :  { %5985 = vmatmul.mubr.msk.f32.gmra.mrb[122].mxu0 %vm9077_vm9, %v5946_v31  ;;  %vm9092_vm9 = vmmov %vm9063_vm0 }
 0x835   :  { %v5949_v27 = vpop.f32.mrb[108].mxu1  ;;  %6650 = vmatpush3.bf16.msra.mxu0 %v6647_v21 }
 0x836   :  { %v3205_v55 = vpop.f32.mrb[109].mxu1 }
 0x837   :  { %5987 = vmatprep.mubr.msk.f32.mxu0 %vm9078_vm10, %v3205_v55  ;;  %vm9093_vm10 = vmmov %vm9063_vm0 }
 0x838   :  { %5988 = vmatmul.mubr.msk.f32.gmra.mrb[124].mxu0 %vm9063_vm0, %v5949_v27 }
 0x839   :  { %v5952_v20 = vpop.f32.mrb[110].mxu1 }
 0x83a   :  { %v3215_v23 = vpop.f32.mrb[111].mxu1 }
 0x83b   :  { %5990 = vmatprep.mubr.msk.f32.mxu0 %vm9079_vm1, %v3215_v23  ;;  %vm9094_vm1 = vmmov %vm9063_vm0 }
 0x83c   :  { %5991 = vmatmul.mubr.msk.f32.gmra.mrb[126].mxu0 %vm9080_vm2, %v5952_v20  ;;  %vm9095_vm2 = vmmov %vm9063_vm0 }
 0x83d   :  { %v5955_v60 = vpop.f32.mrb[112].mxu1 }
 0x83e   :  { %v3225_v29 = vpop.f32.mrb[113].mxu1 }
 0x83f   :  { %5993 = vmatprep.mubr.msk.f32.mxu0 %vm9081_vm3, %v3225_v29  ;;  %vm9096_vm3 = vmmov %vm9063_vm0 }
 0x840   :  { %5994 = vmatmul.mubr.msk.f32.gmra.mrb[128].mxu0 %vm9082_vm4, %v5955_v60  ;;  %vm9097_vm4 = vmmov %vm9063_vm0 }
 0x841   :  { %v5958_v13 = vpop.f32.mrb[114].mxu1 }
 0x842   :  { %v3235_v28 = vpop.f32.mrb[115].mxu1 }
 0x843   :  { %5996 = vmatprep.mubr.msk.f32.mxu0 %vm9083_vm5, %v3235_v28  ;;  %vm9098_vm5 = vmmov %vm9063_vm0 }
 0x844   :  { %5997 = vmatmul.mubr.msk.f32.gmra.mrb[130].mxu0 %vm9084_vm6, %v5958_v13  ;;  %vm9099_vm6 = vmmov %vm9063_vm0 }
 0x845   :  { %v6033_v33 = vpop.f32.mrb[116].mxu1 }
 0x846   :  { %v3527_v62 = vpop.f32.mrb[117].mxu1 }
 0x847   :  { %6071 = vmatprep.mubr.msk.f32.mxu0 %vm9085_vm7, %v3527_v62  ;;  %vm2186_vm7 = vcmask 7168  }
 0x848   :  { %6072 = vmatmul.mubr.msk.f32.vlgmr.msra.gmra.mrb[116].mxu0 %vm9086_vm8, %v6033_v33  ;;  %vm4077_vm8 = vcmask 15368  }
 0x849   :  { %v6036_v50 = vpop.f32.mrb[118].mxu1 }
 0x84a   :  { %v3537_v54 = vpop.f32.mrb[119].mxu1 }
 0x84b   :  { %6074 = vmatprep.mubr.msk.f32.mxu0 %vm9087_vm11, %v3537_v54  ;;  %vm4134_vm11 = vcmask 15360  }
 0x84c   :  { %6075 = vmatmul.mubr.msk.f32.gmra.mrb[118].mxu0 %vm9088_vm15, %v6036_v50  ;;  %vm4158_vm15 = vcmask 0  }
 0x84d   :  { %v6039_v4 = vpop.f32.mrb[120].mxu1 }
 0x84e   :  { %v3547_v16 = vpop.f32.mrb[121].mxu1 }
 0x84f   :  { %6077 = vmatprep.mubr.msk.f32.mxu0 %vm9089_vm12, %v3547_v16 }
 0x850   :  { %6078 = vmatmul.mubr.msk.f32.gmra.mrb[120].mxu0 %vm9090_vm13, %v6039_v4 }
 0x851   :  { %v6042_v22 = vpop.f32.mrb[122].mxu1 }
 0x852   :  { %v3557_v17 = vpop.f32.mrb[123].mxu1 }
 0x853   :  { %6080 = vmatprep.mubr.msk.f32.mxu0 %vm9091_vm14, %v3557_v17 }
 0x854   :  { %6081 = vmatmul.mubr.msk.f32.gmra.mrb[122].mxu0 %vm9092_vm9, %v6042_v22 }
 0x855   :  { %v6045_v24 = vpop.f32.mrb[124].mxu1 }
 0x856   :  { %v3567_v1 = vpop.f32.mrb[125].mxu1 }
 0x857   :  { %6083 = vmatprep.mubr.msk.f32.mxu0 %vm9093_vm10, %v3567_v1 }
 0x858   :  { %6084 = vmatmul.mubr.msk.f32.gmra.mrb[124].mxu0 %vm9063_vm0, %v6045_v24 }
 0x859   :  { %v6048_v18 = vpop.f32.mrb[126].mxu1 }
 0x85a   :  { %v3577_v49 = vpop.f32.mrb[127].mxu1 }
 0x85b   :  { %6086 = vmatprep.mubr.msk.f32.mxu0 %vm9094_vm1, %v3577_v49 }
 0x85c   :  { %6087 = vmatmul.mubr.msk.f32.gmra.mrb[126].mxu0 %vm9095_vm2, %v6048_v18 }
 0x85d   :  { %v6051_v2 = vpop.f32.mrb[128].mxu1 }
 0x85e   :  { %v3587_v14 = vpop.f32.mrb[129].mxu1 }
 0x85f   :  { %6089 = vmatprep.mubr.msk.f32.mxu0 %vm9096_vm3, %v3587_v14  ;;  %v6870_v14 = vld [vmem:[%s8845_s4 + $0x8] sm:$0xff] }
 0x860   :  { %6090 = vmatmul.mubr.msk.f32.gmra.mrb[128].mxu0 %vm9097_vm4, %v6051_v2 }
 0x861   :  { %v6054_v53 = vpop.f32.mrb[130].mxu1 }
 0x862   :  { %v3597_v63 = vpop.f32.mrb[131].mxu1 }
 0x863   :  { %6092 = vmatprep.mubr.msk.f32.mxu0 %vm9098_vm5, %v3597_v63  ;;  %v6872_v63 = vld [vmem:[%s8845_s4 + $0x18] sm:$0xff] }
 0x864   :  { %6093 = vmatmul.mubr.msk.f32.gmra.mrb[130].mxu0 %vm9099_vm6, %v6054_v53  ;;  %v6871_v53 = vld [vmem:[%s8845_s4 + $0x10] sm:$0xff] }
 0x91b   :  { %v6073_v15 = vpop.f32.mrb[116].mxu0 }
 0x91c   :  { %v6731_v30 = vadd.f32 %v8722_v41, %v6073_v15  ;;  %v3728_v0 = vpop.f32.mrb[117].mxu0 }
 0x91d   :  { %v6732_v36 = vadd.f32 %v8722_v41, %v3728_v0 }
 0x91e   :  { %v3824_v42 = vmax.f32 %v6731_v30, 0.0 }
 0x91f   :  { %v3823_v3 = vmax.f32 %v6732_v36, 0.0  ;;  %v6076_v61 = vpop.f32.mrb[118].mxu0 }
 0x920   :  { %v6733_v37 = vadd.f32 %v8722_v41, %v6076_v61  ;;  %v3738_v52 = vpop.f32.mrb[119].mxu0 }
 0x921   :  { %v6651_v32 = vpack.c.bf16 %v3824_v42, %v3823_v3  ;;  %v6734_v56 = vadd.f32 %v8722_v41, %v3738_v52 }
 0x922   :  { %v3826_v57 = vmax.f32 %v6733_v37, 0.0 }
 0x923   :  { %v3825_v25 = vmax.f32 %v6734_v56, 0.0  ;;  %v6079_v51 = vpop.f32.mrb[120].mxu0  ;;  %6652 = vmatprep.subr.bf16.mxu1 %v6651_v32  ;;  %6684 = vmatprep.subr.bf16.mxu0 %v6651_v32 }
 0x924   :  { %v6735_v12 = vadd.f32 %v8722_v41, %v6079_v51  ;;  %v3748_v11 = vpop.f32.mrb[121].mxu0  ;;  %6654 = vmatpush3.bf16.xpose.msra.mxu1 %v6651_v32  ;;  %6686 = vmatpush3.bf16.msra.mxu0 %v6651_v32 }
 0x925   :  { %v6655_v39 = vpack.c.bf16 %v3826_v57, %v3825_v25  ;;  %v6736_v6 = vadd.f32 %v8722_v41, %v3748_v11 }
 0x926   :  { %v3828_v58 = vmax.f32 %v6735_v12, 0.0 }
 0x927   :  { %v3827_v5 = vmax.f32 %v6736_v6, 0.0  ;;  %v6082_v43 = vpop.f32.mrb[122].mxu0  ;;  %6656 = vmatprep.subr.bf16.mxu1 %v6655_v39  ;;  %6688 = vmatprep.subr.bf16.mxu0 %v6655_v39 }
 0x928   :  { %v6737_v10 = vadd.f32 %v8722_v41, %v6082_v43  ;;  %v3758_v40 = vpop.f32.mrb[123].mxu0  ;;  %6690 = vmatpush3.bf16.msra.mxu0 %v6655_v39 }
 0x929   :  { %v6659_v47 = vpack.c.bf16 %v3828_v58, %v3827_v5  ;;  %v6738_v26 = vadd.f32 %v8722_v41, %v3758_v40 }
 0x92a   :  { %v3830_v48 = vmax.f32 %v6737_v10, 0.0 }
 0x92b   :  { %v3829_v46 = vmax.f32 %v6738_v26, 0.0  ;;  %v6085_v19 = vpop.f32.mrb[124].mxu0  ;;  %6692 = vmatprep.subr.bf16.mxu0 %v6659_v47 }
 0x92c   :  { %v6739_v34 = vadd.f32 %v8722_v41, %v6085_v19  ;;  %v3768_v35 = vpop.f32.mrb[125].mxu0  ;;  %6658 = vmatpush3.bf16.xpose.msra.mxu1 %v6655_v39  ;;  %6694 = vmatpush3.bf16.msra.mxu0 %v6659_v47 }
 0x92d   :  { %v6663_v44 = vpack.c.bf16 %v3830_v48, %v3829_v46  ;;  %v6740_v38 = vadd.f32 %v8722_v41, %v3768_v35  ;;  %6660 = vmatprep.subr.bf16.mxu1 %v6659_v47 }
 0x92e   :  { %v3832_v21 = vmax.f32 %v6739_v34, 0.0 }
 0x92f   :  { %v3831_v31 = vmax.f32 %v6740_v38, 0.0  ;;  %v6088_v8 = vpop.f32.mrb[126].mxu0  ;;  %6696 = vmatprep.subr.bf16.mxu0 %v6663_v44  ;;  %v124_v38 = vld [vmem:[%s8846_s5 + $0x8] sm:$0xff] }
 0x930   :  { %v6741_v27 = vadd.f32 %v8722_v41, %v6088_v8  ;;  %v3778_v55 = vpop.f32.mrb[127].mxu0  ;;  %6698 = vmatpush3.bf16.msra.mxu0 %v6663_v44 }
 0x931   :  { %v6667_v20 = vpack.c.bf16 %v3832_v21, %v3831_v31  ;;  %v6742_v23 = vadd.f32 %v8722_v41, %v3778_v55  ;;  %v123_v31 = vld [vmem:[%s8846_s5] sm:$0xff] }
 0x932   :  { %v3834_v60 = vmax.f32 %v6741_v27, 0.0 }
 0x933   :  { %v3833_v29 = vmax.f32 %v6742_v23, 0.0  ;;  %v6091_v13 = vpop.f32.mrb[128].mxu0  ;;  %6700 = vmatprep.subr.bf16.mxu0 %v6667_v20 }
 0x934   :  { %v6743_v28 = vadd.f32 %v8722_v41, %v6091_v13  ;;  %v3788_v33 = vpop.f32.mrb[129].mxu0  ;;  %6662 = vmatpush3.bf16.xpose.msra.mxu1 %v6659_v47  ;;  %6702 = vmatpush3.bf16.msra.mxu0 %v6667_v20 }
 0x935   :  { %v6671_v62 = vpack.c.bf16 %v3834_v60, %v3833_v29  ;;  %v6744_v50 = vadd.f32 %v8722_v41, %v3788_v33  ;;  %6664 = vmatprep.subr.bf16.mxu1 %v6663_v44  ;;  %v125_v60 = vld [vmem:[%s8846_s5 + $0x10] sm:$0xff]  ;;  %v2171_v33 = vmul.f32 %v8329_v7, %v124_v38 }
 0x936   :  { %v3836_v54 = vmax.f32 %v6743_v28, 0.0 }
 0x937   :  { %v3835_v4 = vmax.f32 %v6744_v50, 0.0  ;;  %v6094_v16 = vpop.f32.mrb[130].mxu0  ;;  %6704 = vmatprep.subr.bf16.mxu0 %v6671_v62 }
 0x938   :  { %v6745_v22 = vadd.f32 %v8722_v41, %v6094_v16  ;;  %v3798_v17 = vpop.f32.mrb[131].mxu0  ;;  %6706 = vmatpush3.bf16.msra.mxu0 %v6671_v62  ;;  %v127_v16 = vld [vmem:[%s8847_s6] sm:$0xff] }
 0x939   :  { %v6675_v24 = vpack.c.bf16 %v3836_v54, %v3835_v4  ;;  %v6746_v1 = vadd.f32 %v8722_v41, %v3798_v17  ;;  %v2172_v54 = vmul.f32 %v8335_v9, %v125_v60  ;;  %v128_v4 = vld [vmem:[%s8847_s6 + $0x8] sm:$0xff] }
 0x93a   :  { %v3838_v18 = vmax.f32 %v6745_v22, 0.0 }
 0x93b   :  { %v3837_v49 = vmax.f32 %v6746_v1, 0.0  ;;  %6708 = vmatprep.subr.bf16.mxu0 %v6675_v24 }
 0x93c   :  { %6666 = vmatpush3.bf16.xpose.msra.mxu1 %v6663_v44  ;;  %6710 = vmatpush3.bf16.msra.mxu0 %v6675_v24 }
 0x93d   :  { %v6679_v2 = vpack.c.bf16 %v3838_v18, %v3837_v49  ;;  %6668 = vmatprep.subr.bf16.mxu1 %v6667_v20  ;;  %v130_v18 = vld [vmem:[%s8847_s6 + $0x18] sm:$0xff] }
 0x93f   :  { %6712 = vmatprep.subr.bf16.mxu0 %v6679_v2 }
 0x940   :  { %6714 = vmatpush3.bf16.msra.mxu0 %v6679_v2 }
 0x944   :  { %6670 = vmatpush3.bf16.xpose.msra.mxu1 %v6667_v20  ;;  %v126_v20 = vld [vmem:[%s8846_s5 + $0x18] sm:$0xff] }
 0x945   :  { %6672 = vmatprep.subr.bf16.mxu1 %v6671_v62  ;;  %v2173_v50 = vmul.f32 %v8333_v45, %v126_v20  ;;  %v129_v45 = vld [vmem:[%s8847_s6 + $0x10] sm:$0xff] }
 0x94c   :  { %6674 = vmatpush3.bf16.xpose.msra.mxu1 %v6671_v62  ;;  %v2170_v62 = vmul.f32 %v8331_v59, %v123_v31 }
 0x94d   :  { %6676 = vmatprep.subr.bf16.mxu1 %v6675_v24 }
 0x954   :  { %6678 = vmatpush3.bf16.xpose.msra.mxu1 %v6675_v24 }
 0x955   :  { %6680 = vmatprep.subr.bf16.mxu1 %v6679_v2 }
 0x95c   :  { %6682 = vmatpush3.bf16.xpose.msra.mxu1 %v6679_v2 }
 0x963   :  { %6128 = vmatmul.mubr.f32.vlgmr.msra.gmra.mrb[132].mxu1 %v6870_v14 }
 0x964   :  { %6130 = vmatprep.mubr.f32.mxu1 %v6871_v53 }
 0x967   :  { %6131 = vmatmul.mubr.f32.gmra.mrb[134].mxu1 %v6872_v63 }
 0xa36   :  { %v6129_v15 = vpop.f32.mrb[132].mxu1 }
 0xa37   :  { %3926 = vmax.xlane.f32.xlu1 %v6129_v15  ;;  %v3905_v41 = vpop.f32.mrb[133].mxu1 }
 0xa38   :  { %3924 = vmax.xlane.f32.xlu0 %v3905_v41 }
 0xa3a   :  { %v6132_v30 = vpop.f32.mrb[134].mxu1 }
 0xa3b   :  { %v3915_v0 = vpop.f32.mrb[135].mxu1 }
 0xa3c   :  { %3928 = vmax.xlane.f32.xlu0 %v3915_v0 }
 0xa40   :  { %3930 = vmax.xlane.f32.xlu0 %v6132_v30 }
 0xac4   :  { %v3927_v36 = vpop.xlane.xlu1 %3926 }
 0xac5   :  { %v3933_v42 = vsub.f32 %v6129_v15, %v3927_v36  ;;  %v3925_v3 = vpop.xlane.xlu0 %3924 }
 0xac6   :  { %v3932_v61 = vsub.f32 %v3905_v41, %v3925_v3 }
 0xac7   :  { %v3938_v37 = vmul.f32 1.442695, %v3933_v42 }
 0xac8   :  { %v3936_v52 = vmul.f32 1.442695, %v3932_v61 }
 0xac9   :  { %6836 = vpow2.f32 %v3938_v37  ;;  %v3929_v32 = vpop.xlane.xlu0 %3928 }
 0xaca   :  { %6838 = vpow2.f32 %v3936_v52  ;;  %v3934_v56 = vsub.f32 %v3915_v0, %v3929_v32 }
 0xacc   :  { %v3940_v57 = vmul.f32 1.442695, %v3934_v56 }
 0xacd   :  { %v3931_v25 = vpop.xlane.xlu0 %3930 }
 0xace   :  { %6840 = vpow2.f32 %v3940_v57  ;;  %v3935_v51 = vsub.f32 %v6132_v30, %v3931_v25 }
 0xad0   :  { %v3942_v12 = vmul.f32 1.442695, %v3935_v51 }
 0xad2   :  { %6842 = vpow2.f32 %v3942_v12 }
 0xad3   :  { %v6837_v11 = vpop.eup %6836 }
 0xad4   :  { %v6839_v39 = vpop.eup %6838  ;;  %3946 = vadd.xlane.f32.xlu0 %v6837_v11 }
 0xad5   :  { %3944 = vadd.xlane.f32.xlu1 %v6839_v39 }
 0xad8   :  { %v6841_v6 = vpop.eup %6840 }
 0xad9   :  { %3948 = vadd.xlane.f32.xlu1 %v6841_v6 }
 0xadc   :  { %v6843_v58 = vpop.eup %6842 }
 0xadd   :  { %3950 = vadd.xlane.f32.xlu0 %v6843_v58 }
 0xb61   :  { %v3947_v5 = vpop.xlane.xlu0 %3946 }
 0xb62   :  { %6844 = vrcp.f32 %v3947_v5  ;;  %v3945_v43 = vpop.xlane.xlu1 %3944 }
 0xb63   :  { %6846 = vrcp.f32 %v3945_v43 }
 0xb66   :  { %v3949_v10 = vpop.xlane.xlu1 %3948 }
 0xb67   :  { %6848 = vrcp.f32 %v3949_v10 }
 0xb6a   :  { %v3951_v40 = vpop.xlane.xlu0 %3950 }
 0xb6b   :  { %6850 = vrcp.f32 %v3951_v40 }
 0xb6c   :  { %v6845_v47 = vpop.eup %6844 }
 0xb6d   :  { %v6847_v26 = vpop.eup %6846  ;;  %v3955_v46 = vmul.f32 %v6845_v47, %v6837_v11 }
 0xb6e   :  { %v3953_v48 = vmul.f32 %v6847_v26, %v6839_v39 }
 0xb70   :  { %6165 = vmatprep.mubr.f32.mxu0 %v3953_v48 }
 0xb71   :  { %v6849_v19 = vpop.eup %6848  ;;  %6166 = vmatmul.mubr.f32.vlgmr.msra.gmra.mrb[132].mxu0 %v3955_v46 }
 0xb72   :  { %v3957_v34 = vmul.f32 %v6849_v19, %v6841_v6  ;;  %v4087_v19 = vld [vmem:[%s8848_s7 + $0x8] sm:$0xff] }
 0xb74   :  { %6168 = vmatprep.mubr.f32.mxu0 %v3957_v34 }
 0xb75   :  { %v6851_v35 = vpop.eup %6850 }
 0xb76   :  { %v3959_v44 = vmul.f32 %v6851_v35, %v6843_v58  ;;  %v4086_v35 = vld [vmem:[%s8848_s7] sm:$0xff] }
 0xb78   :  { %6169 = vmatmul.mubr.f32.gmra.mrb[134].mxu0 %v3959_v44 }
 0xc44   :  { %v6167_v21 = vpop.f32.mrb[132].mxu0 }
 0xc45   :  { %v4046_v8 = vmul.f32 %v6167_v21, %v124_v38  ;;  %v4026_v27 = vpop.f32.mrb[133].mxu0 }
 0xc46   :  { %v4045_v55 = vmul.f32 %v4026_v27, %v123_v31 }
 0xc47   :  { %4051 = vadd.xlane.f32.xlu0 %v4046_v8 }
 0xc48   :  { %4049 = vadd.xlane.f32.xlu1 %v4045_v55 }
 0xc4b   :  { %v6170_v23 = vpop.f32.mrb[134].mxu0 }
 0xc4c   :  { %v4048_v29 = vmul.f32 %v6170_v23, %v126_v20  ;;  %v4036_v13 = vpop.f32.mrb[135].mxu0 }
 0xc4d   :  { %v4047_v28 = vmul.f32 %v4036_v13, %v125_v60 }
 0xc4e   :  { %4055 = vadd.xlane.f32.xlu0 %v4048_v29 }
 0xc4f   :  { %4053 = vadd.xlane.f32.xlu1 %v4047_v28 }
 0xc52   :  { %2176 = vadd.xlane.f32.xlu0 %v2171_v33  ;;  %v4088_v33 = vld [vmem:[%s8848_s7 + $0x10] sm:$0xff] }
 0xc53   :  { %2174 = vadd.xlane.f32.xlu1 %v2170_v62 }
 0xc56   :  { %2180 = vadd.xlane.f32.xlu0 %v2173_v50 }
 0xc57   :  { %2178 = vadd.xlane.f32.xlu1 %v2172_v54 }
 0xcd4   :  { %v4052_v22 = vpop.xlane.xlu0 %4051 }
 0xcd5   :  { %v4058_v7 = vadd.f32 %v4052_v22, %v128_v4  ;;  %v4050_v17 = vpop.xlane.xlu1 %4049 }
 0xcd6   :  { %v4057_v59 = vadd.f32 %v4050_v17, %v127_v16 }
 0xcd7   :  { %4067 = vrot.lane.b32.xlu0 %v4058_v7, %s6900_s21  ;;  %v4089_v7 = vld [vmem:[%s8848_s7 + $0x18] sm:$0xff]  ;;  %s6901_s7 = smov [#allocation2]  }
 0xcd8   :  { %4065 = vrot.lane.b32.xlu1 %v4057_v59, %s6900_s21  ;;  %s4168_s26 = sshll.u32 %s6901_s7, 4  ;;  %s4169_s26 = int_to_ptr.vmem [resolvable:$true] %s4168_s26 }
 0xcd9   :  { %s6873_s6 = scalar_lea.vmem %s4169_s26, 16  ;;  %s6877_s3 = scalar_lea.vmem %s4169_s26, 32 }
 0xcda   :  { %p6874_p0 = scmp.ne.s32.totalorder %s4169_s26, %s6873_s6  ;;  %p6878_p1 = scmp.lt.s32.totalorder %s4169_s26, %s4169_s26 }
 0xcdb   :  { %v4056_v9 = vpop.xlane.xlu0 %4055  ;;  %p6879_p2 = scmp.lt.s32.totalorder %s6877_s3, %s6873_s6 }
 0xcdc   :  { %v4054_v24 = vpop.xlane.xlu1 %4053  ;;  %v4060_v53 = vadd.f32 %v4056_v9, %v130_v18 }
 0xcdd   :  { %v4059_v1 = vadd.f32 %v4054_v24, %v129_v45  ;;  %p6880_p3 = por %p6879_p2, %p6878_p1 }
 0xcdf   :  { %4069 = vrot.lane.b32.xlu1 %v4059_v1, %s6900_s21  ;;  %v2177_v49 = vpop.xlane.xlu0 %2176  ;;  %p6881_p4 = pnand %p6880_p3, %p6874_p0 }
 0xce0   :  { %v2183_v2 = vadd.f32 %v2177_v49, %v128_v4  ;;  %v2175_v14 = vpop.xlane.xlu1 %2174 }
 0xce1   :  { %v2182_v63 = vadd.f32 %v2175_v14, %v127_v16 }
 0xce2   :  { %2188 = vst.msk [vmem:[%s8849_s8 + $0x8] sm:$0xff] %vm2186_vm7, %v2183_v2 }
 0xce3   :  { %2187 = vst.msk [vmem:[%s8849_s8] sm:$0xff] %vm2186_vm7, %v2182_v63  ;;  %4071 = vrot.lane.b32.xlu1 %v4060_v53, %s6900_s21  ;;  %v2181_v15 = vpop.xlane.xlu0 %2180 }
 0xce4   :  { %v2185_v41 = vadd.f32 %v2181_v15, %v130_v18  ;;  %v2179_v30 = vpop.xlane.xlu1 %2178 }
 0xce5   :  { %v2184_v0 = vadd.f32 %v2179_v30, %v129_v45 }
 0xce6   :  { %2190 = vst.msk [vmem:[%s8849_s8 + $0x18] sm:$0xff] %vm2186_vm7, %v2185_v41 }
 0xce7   :  { %2189 = vst.msk [vmem:[%s8849_s8 + $0x10] sm:$0xff] %vm2186_vm7, %v2184_v0 }
 0xd49   :  { %v4068_v36 = vpop.permute.xlu0 %4067 }
 0xd4a   :  { %4079 = vst.msk [vmem:[%s8849_s8 + $0x8] sm:$0xff] %vm4077_vm8, %v4068_v36  ;;  %v4066_v42 = vpop.permute.xlu1 %4065 }
 0xd4b   :  { %4078 = vst.msk [vmem:[%s8849_s8] sm:$0xff] %vm4077_vm8, %v4066_v42 }
 0xd51   :  { %v4070_v3 = vpop.permute.xlu1 %4069  ;;  %v4083_v61 = vld [vmem:[%s8849_s8 + $0x8] sm:$0xff] }
 0xd52   :  { %4080 = vst.msk [vmem:[%s8849_s8 + $0x10] sm:$0xff] %vm4077_vm8, %v4070_v3  ;;  %v4103_v37 = vand.u32 2147483647, %v4083_v61  ;;  %v4082_v52 = vld [vmem:[%s8849_s8] sm:$0xff]  ;;  %v4091_v38 = vmax.f32 %v4083_v61, 0.0  ;;  %v4095_v21 = vmul.f32 %v4087_v19, %v4083_v61 }
 0xd53   :  { %v4102_v32 = vand.u32 2147483647, %v4082_v52  ;;  %v4090_v31 = vmax.f32 %v4082_v52, 0.0  ;;  %v4094_v8 = vmul.f32 %v4086_v35, %v4082_v52 }
 0xd54   :  { %v4107_v56 = vsub.f32 0.0, %v4103_v37  ;;  %v4099_v60 = vsub.f32 %v4091_v38, %v4095_v21 }
 0xd55   :  { %v4072_v57 = vpop.permute.xlu1 %4071  ;;  %v4106_v25 = vsub.f32 0.0, %v4102_v32  ;;  %v4098_v13 = vsub.f32 %v4090_v31, %v4094_v8 }
 0xd56   :  { %4081 = vst.msk [vmem:[%s8849_s8 + $0x18] sm:$0xff] %vm4077_vm8, %v4072_v57  ;;  %v4112_v51 = vmul.f32 1.442695, %v4107_v56 }
 0xd57   :  { %v4110_v12 = vmul.f32 1.442695, %v4106_v25 }
 0xd58   :  { %6852 = vpow2.f32 %v4112_v51 }
 0xd59   :  { %6854 = vpow2.f32 %v4110_v12  ;;  %v4084_v11 = vld [vmem:[%s8849_s8 + $0x10] sm:$0xff] }
 0xd5a   :  { %v4104_v39 = vand.u32 2147483647, %v4084_v11  ;;  %v4092_v4 = vmax.f32 %v4084_v11, 0.0  ;;  %v4096_v16 = vmul.f32 %v4088_v33, %v4084_v11 }
 0xd5c   :  { %v4108_v6 = vsub.f32 0.0, %v4104_v39  ;;  %v4100_v59 = vsub.f32 %v4092_v4, %v4096_v16 }
 0xd5d   :  { %v4085_v58 = vld [vmem:[%s8849_s8 + $0x18] sm:$0xff] }
 0xd5e   :  { %v4114_v5 = vmul.f32 1.442695, %v4108_v6  ;;  %v4105_v43 = vand.u32 2147483647, %v4085_v58  ;;  %v4093_v9 = vmax.f32 %v4085_v58, 0.0  ;;  %v4097_v24 = vmul.f32 %v4089_v7, %v4085_v58 }
 0xd60   :  { %6856 = vpow2.f32 %v4114_v5  ;;  %v4109_v10 = vsub.f32 0.0, %v4105_v43  ;;  %v4101_v2 = vsub.f32 %v4093_v9, %v4097_v24 }
 0xd62   :  { %v6853_v40 = vpop.eup %6852  ;;  %v4116_v47 = vmul.f32 1.442695, %v4109_v10 }
 0xd63   :  { %v6855_v26 = vpop.eup %6854  ;;  %v4119_v48 = vadd.f32 1.0, %v6853_v40 }
 0xd64   :  { %v4118_v46 = vadd.f32 1.0, %v6855_v26  ;;  %6858 = vpow2.f32 %v4116_v47 }
 0xd65   :  { %6860 = vlog2.f32 %v4119_v48 }
 0xd66   :  { %6862 = vlog2.f32 %v4118_v46 }
 0xd6a   :  { %v6857_v34 = vpop.eup %6856 }
 0xd6b   :  { %v4120_v44 = vadd.f32 1.0, %v6857_v34 }
 0xd6d   :  { %6864 = vlog2.f32 %v4120_v44 }
 0xd6e   :  { %v6859_v27 = vpop.eup %6858 }
 0xd6f   :  { %v6861_v55 = vpop.eup %6860  ;;  %v4121_v20 = vadd.f32 1.0, %v6859_v27 }
 0xd70   :  { %v6863_v23 = vpop.eup %6862  ;;  %v4125_v29 = vmul.f32 0.6931472, %v6861_v55 }
 0xd71   :  { %v4123_v28 = vmul.f32 0.6931472, %v6863_v23  ;;  %6866 = vlog2.f32 %v4121_v20 }
 0xd72   :  { %v4131_v62 = vadd.f32 %v4125_v29, %v4099_v60 }
 0xd73   :  { %v4130_v50 = vadd.f32 %v4123_v28, %v4098_v13 }
 0xd74   :  { %v4138_v54 = vsel %vm4134_vm11, %v4131_v62, 0.0 }
 0xd75   :  { %4139 = vadd.xlane.f32.xlu1 %v4138_v54  ;;  %v4135_v22 = vsel %vm4134_vm11, %v4130_v50, 0.0 }
 0xd76   :  { %4136 = vadd.xlane.f32.xlu0 %v4135_v22 }
 0xd77   :  { %v6865_v17 = vpop.eup %6864 }
 0xd78   :  { %v4127_v45 = vmul.f32 0.6931472, %v6865_v17 }
 0xd7a   :  { %v4132_v1 = vadd.f32 %v4127_v45, %v4100_v59 }
 0xd7b   :  { %v6867_v18 = vpop.eup %6866 }
 0xd7c   :  { %v4141_v49 = vsel %vm4134_vm11, %v4132_v1, 0.0  ;;  %v4129_v14 = vmul.f32 0.6931472, %v6867_v18 }
 0xd7d   :  { %4142 = vadd.xlane.f32.xlu0 %v4141_v49 }
 0xd7e   :  { %v4133_v53 = vadd.f32 %v4129_v14, %v4101_v2 }
 0xd80   :  { %v4144_v63 = vsel %vm4134_vm11, %v4133_v53, 0.0 }
 0xd81   :  { %4145 = vadd.xlane.f32.xlu0 %v4144_v63 }
 0xe02   :  { %v4140_v41 = vpop.xlane.xlu1 %4139 }
 0xe03   :  { %v4137_v15 = vpop.xlane.xlu0 %4136 }
 0xe04   :  { %v4147_v0 = vadd.f32 %v4140_v41, %v4137_v15 }
 0xe0a   :  { %v4143_v30 = vpop.xlane.xlu0 %4142 }
 0xe0b   :  { %v4148_v36 = vadd.f32 %v4147_v0, %v4143_v30 }
 0xe0e   :  { %v4146_v42 = vpop.xlane.xlu0 %4145 }
 0xe0f   :  { %v4149_v3 = vadd.f32 %v4148_v36, %v4146_v42 }
 0xe11   :  { %v4150_v61 = vrot.slane %v4149_v3, 4 }
 0xe13   :  { %v4151_v37 = vadd.f32 %v4150_v61, %v4149_v3 }
 0xe15   :  { %v4152_v52 = vrot.slane %v4151_v37, 2 }
 0xe17   :  { %v4153_v32 = vadd.f32 %v4152_v52, %v4151_v37 }
 0xe19   :  { %v4154_v56 = vrot.slane %v4153_v32, 1 }
 0xe1b   :  { %v4155_v57 = vadd.f32 %v4154_v56, %v4153_v32 }
 0xe1d   :  { %v4157_v25 = vmul.f32 0.015625, %v4155_v57 }
 0xe1f   :  { %4159 = vst.msk [vmem:[#allocation2] sm:$0x1] %vm4158_vm15, %v4157_v25 }
 0xe20   :  { %6884 = shalt.err (!%p6881_p4)
}
 0xe21   :  { %s6885_s29 = scalar_lea.hbm %s8850_s9, 16 }
 0xe22   :  { %p6886_p5 = scmp.ne.s32.totalorder %s8850_s9, %s6885_s29  ;;  %p6889_p6 = scmp.lt.u32.totalorder %s6885_s29, %s8850_s9 }
 0xe24   :  { %p6891_p7 = pnand %p6889_p6, %p6886_p5 }
 0xe26   :  { %6894 = shalt.err (!%p6891_p7)
}
 0xe27   :  { %4171 = dma.vmem_to_hbm [thread:$0]  %s4169_s26, 16, %s8850_s9, [#allocation3]  }
 0xe28   :  { %6895 = dma.done.wait [#allocation3], 16  }
 0xe29   :  { %6896 = vsyncadd [#allocation3], 4294967280 }
 0xe2a   :  { %4177 = vsyncpa [#allocation3], 1 }

</bundles_post_ra>
